<compile_context>
chip_gen: v6e
topology: v6e:2x2x1
jax: 0.10.0
libtpu: 0.0.40
codegen_flags: <defaults>
</compile_context>

<pallas_src>
import jax
import jax.numpy as jnp
from jax import lax
from jax.experimental import pallas as pl
from jax.experimental.pallas import tpu as pltpu

EPS = 1e-5  # BatchNorm2d default eps

# bf16 is the native MXU input dtype on v5e/v6e/v7x; accumulation is f32.
# (Numerical check tolerance below is loosened accordingly vs a pure-f32 run.)
MATMUL_DTYPE = jnp.bfloat16


# ---------------------------------------------------------------------------
# tiling helpers
# ---------------------------------------------------------------------------
def _pick_tile(n, target):
    t = max(1, min(n, target))
    while n % t:
        t -= 1
    return t


def _pick_tile_div8(n, target):
    """Largest divisor of n that is <= target and (multiple of 8 or == n)."""
    for d in range(max(1, min(n, target)), 0, -1):
        if n % d == 0 and (d % 8 == 0 or d == n):
            return d
    return n


def _pick_conv_row_tile(ho, wo, c2, kc, co):
    """Output-row tile: aim for MXU M = tho*Wo >= 256, under a VMEM budget."""
    target = max(8, -(-256 // wo))                    # ceil(256 / Wo)
    budget = 40 * 1024 * 1024                         # conservative for v7x 64 MiB

    def est(t):
        return (2 * (2 * t) * (wo + 2) * c2 * 4       # main operand, 2 buffers
                + 2 * 2 * (wo + 2) * c2 * 4           # halo operand, 2 buffers
                + (2 * t + 2) * (wo + 2) * c2 * 4     # acon'd values
                + t * wo * kc * 4                     # f32 patch scratch
                + 2 * kc * co * 2                     # bf16 weight, 2 buffers
                + 2 * t * wo * co * 4)                # y output, 2 buffers

    while target > 1 and est(target) > budget:
        target //= 2
    for d in range(max(1, min(ho, target)), 0, -1):
        if ho % d == 0 and ((d * wo) % 8 == 0 or d == ho):
            return d
    return ho


# ---------------------------------------------------------------------------
# Kernel 1: per-(batch) spatial sum over the pair view [N, H, W/2, 2C],
# tiled over (N, H-row-tiles).  Output block revisited across the row axis
# (accumulator -> "arbitrary"); the tiny fc1/fc2/sigmoid MLP runs in plain JAX.
# ---------------------------------------------------------------------------
def _pool_sum_kernel(x_ref, o_ref):
    @pl.when(pl.program_id(1) == 0)
    def _init():
        o_ref[...] = jnp.zeros_like(o_ref)

    x = x_ref[0].astype(jnp.float32)                      # [TR, Wo, 2C]
    o_ref[...] += jnp.sum(x, axis=(0, 1))[None, None, :]  # [1, 1, 2C]


def spatial_channel_sums(x2, *, row_tile):
    N, H, Wo, C2 = x2.shape
    assert H % row_tile == 0
    return pl.pallas_call(
        _pool_sum_kernel,
        out_shape=jax.ShapeDtypeStruct((N, 1, C2), jnp.float32),
        grid=(N, H // row_tile),
        in_specs=[pl.BlockSpec((1, row_tile, Wo, C2), lambda n, r: (n, r, 0, 0))],
        out_specs=pl.BlockSpec((1, 1, C2), lambda n, r: (n, 0, 0)),
        compiler_params=pltpu.CompilerParams(
            dimension_semantics=("parallel", "arbitrary")),
    )(x2)


# ---------------------------------------------------------------------------
# Kernel 2: fused MetaAconC-apply + Conv2d(4,2,1) + bias + BN partial stats.
# Grid = (N, Ho/THO).  Input is the padded pair view xpp[N, H+2, Wo+2, 2C]:
# lanes [0:C] are even input columns, lanes [C:2C] are odd input columns, the
# first/last pair columns and first/last rows are the conv zero padding.
# The 2 extra rows each tile needs come from a second BlockSpec on the same
# array (no in-kernel concatenation).  Patches are assembled by direct stores
# into a VMEM scratch, then one bf16 MXU matmul per tile.
# ---------------------------------------------------------------------------
def _make_conv_kernel(tho, wo, c):
    c2 = 2 * c

    def kernel(xm_ref, xh_ref, beta_ref, p1_ref, p2_ref, w_ref, b_ref,
               y_ref, st_ref, pmat_ref):
        p1 = p1_ref[...].astype(jnp.float32)              # [1, 2C]
        p2 = p2_ref[...].astype(jnp.float32)
        bt = beta_ref[0].astype(jnp.float32)              # [1, 2C] (per-batch)
        dp = p1 - p2

        def acon(v):                                      # MetaAconC; acon(0)=0,
            d = dp * v                                    # so padded zeros stay 0
            return d * jax.nn.sigmoid(bt * d) + p2 * v

        a_main = acon(xm_ref[0].astype(jnp.float32))      # [2*THO, Wo+2, 2C]
        a_halo = acon(xh_ref[0].astype(jnp.float32))      # [2,     Wo+2, 2C]

        # Patch assembly: direct stores into the scratch (no concat tree, no
        # main+halo concat).  Every row/column of pmat is rewritten each step.
        # TODO(synk): for C >= 128 store bf16 directly (halves scratch/stores)
        # or switch to shift-and-accumulate matmuls with K = C per tap.
        for t in range(tho):
            r0 = t * wo
            for kh in range(4):
                r = 2 * t + kh
                src = a_main[r] if r < 2 * tho else a_halo[r - 2 * tho]
                base = kh * 4 * c
                # kw=0: odd half of pairs [x]      (left pad pair supplies x=0)
                pmat_ref[r0:r0 + wo, base:base + c] = src[0:wo, c:c2]
                # kw=1,2: both halves of pairs [x+1]
                pmat_ref[r0:r0 + wo, base + c:base + 3 * c] = src[1:1 + wo, :]
                # kw=3: even half of pairs [x+2]   (right pad pair gives x=Wo-1)
                pmat_ref[r0:r0 + wo, base + 3 * c:base + 4 * c] = src[2:2 + wo, 0:c]

        res = jnp.dot(pmat_ref[...].astype(MATMUL_DTYPE), w_ref[...],
                      preferred_element_type=jnp.float32) + b_ref[...]
        # TODO(synk): store y in bf16 for large stages (stats stay exact below).
        y_ref[0] = res.astype(y_ref.dtype)                # [THO*Wo, Cout]

        # BatchNorm partial stats for this tile: (tile mean, sum sq. deviations)
        m = jnp.mean(res, axis=0, keepdims=True)          # [1, Cout]
        dev = res - m
        st_ref[0, 0] = jnp.concatenate(
            [m, jnp.sum(dev * dev, axis=0, keepdims=True)], axis=0)  # [2, Cout]

    return kernel


def acon_conv_fused(xpp, beta2, p1_2, p2_2, wmat, bias, *, tho, wo, c, co):
    N, Hp, Wop, C2 = xpp.shape
    ho = (Hp - 2) // 2
    assert ho % tho == 0
    hb = ho // tho
    Kc = wmat.shape[0]
    kernel = _make_conv_kernel(tho, wo, c)
    # TODO(synk): single-buffer the grid-invariant operands (wmat/bias/p1/p2/
    # beta) via pipeline_mode=pl.Buffered(1) once validated, to save weight
    # VMEM on v7x/v5e for large stages.
    return pl.pallas_call(
        kernel,
        out_shape=(
            jax.ShapeDtypeStruct((N, ho * wo, co), jnp.float32),
            jax.ShapeDtypeStruct((N, hb, 2, co), jnp.float32),
        ),
        grid=(N, hb),
        in_specs=[
            # padded pair view: main rows + 2-row halo (same array, 2 specs)
            pl.BlockSpec((1, 2 * tho, Wop, C2), lambda n, h: (n, h, 0, 0)),
            pl.BlockSpec((1, 2, Wop, C2), lambda n, h: (n, tho * (h + 1), 0, 0)),
            pl.BlockSpec((1, 1, C2), lambda n, h: (n, 0, 0)),   # beta (per-batch)
            pl.BlockSpec((1, C2), lambda n, h: (0, 0)),         # p1 (dup halves)
            pl.BlockSpec((1, C2), lambda n, h: (0, 0)),         # p2 (dup halves)
            pl.BlockSpec((Kc, co), lambda n, h: (0, 0)),        # bf16 weight
            pl.BlockSpec((1, co), lambda n, h: (0, 0)),         # conv bias (f32)
        ],
        out_specs=(
            pl.BlockSpec((1, tho * wo, co), lambda n, h: (n, h, 0)),
            pl.BlockSpec((1, 1, 2, co), lambda n, h: (n, h, 0, 0)),
        ),
        scratch_shapes=[pltpu.VMEM((tho * wo, Kc), jnp.float32)],
        compiler_params=pltpu.CompilerParams(
            dimension_semantics=("parallel", "parallel"),
            vmem_limit_bytes=64 * 1024 * 1024),
    )(xpp, xpp, beta2, p1_2, p2_2, wmat, bias)


# ---------------------------------------------------------------------------
# Kernel 3: BatchNorm apply (elementwise) on the flattened [N*Ho*Wo, Cout]
# conv output with precomputed scale/shift, large mem-bound tiles.
# ---------------------------------------------------------------------------
def _bn_apply_kernel(y_ref, s_ref, t_ref, o_ref):
    o_ref[...] = (y_ref[...].astype(jnp.float32) * s_ref[...]
                  + t_ref[...]).astype(o_ref.dtype)


def bn_apply(y_flat, scale, shift, *, tile):
    M, Co = y_flat.shape
    assert M % tile == 0
    return pl.pallas_call(
        _bn_apply_kernel,
        out_shape=jax.ShapeDtypeStruct((M, Co), jnp.float32),
        grid=(M // tile,),
        in_specs=[
            pl.BlockSpec((tile, Co), lambda m: (m, 0)),
            pl.BlockSpec((1, Co), lambda m: (0, 0)),
            pl.BlockSpec((1, Co), lambda m: (0, 0)),
        ],
        out_specs=pl.BlockSpec((tile, Co), lambda m: (m, 0)),
        compiler_params=pltpu.CompilerParams(dimension_semantics=("parallel",)),
    )(y_flat, scale, shift)


# ---------------------------------------------------------------------------
# Forward (NHWC core + NCHW wrapper), parameter init, pure-JAX reference.
# ---------------------------------------------------------------------------
def unet_down_forward_nhwc(x_nhwc, params):
    N, H, W, C = x_nhwc.shape
    assert H % 2 == 0 and W % 2 == 0
    Ho, Wo = H // 2, W // 2
    C2 = 2 * C

    # free, layout-preserving view: (W, C) -> (Wo, 2C) column pairs
    x2 = x_nhwc.reshape(N, H, Wo, C2)

    # ---- MetaAconC beta: tiled pooled sums + tiny [N,C] MLP (plain JAX) ----
    sums = spatial_channel_sums(x2, row_tile=_pick_tile(H, 64))   # [N,1,2C]
    pooled = (sums[:, 0, :C] + sums[:, 0, C:]) / float(H * W)     # [N, C]
    hid = pooled @ params["fc1_w"] + params["fc1_b"]
    beta = jax.nn.sigmoid(hid @ params["fc2_w"] + params["fc2_b"])  # [N, C]

    # duplicate per-channel ACON params onto both parity lane halves
    beta2 = jnp.concatenate([beta, beta], axis=-1)[:, None, :]    # [N,1,2C]
    p1_2 = jnp.concatenate([params["p1"], params["p1"]], axis=-1)  # [1,2C]
    p2_2 = jnp.concatenate([params["p2"], params["p2"]], axis=-1)

    # single remaining HBM pad pass (+1 row top/bottom, +1 pair left/right).
    # TODO(synk): fold this pad into the conv kernel (clamped halo specs +
    # pl.when boundary zeroing) so the conv reads the raw activation directly.
    xpp = jnp.pad(x2, ((0, 0), (1, 1), (1, 1), (0, 0)))

    co = params["conv_w"].shape[0]
    Kc = 16 * C
    # weight as [kh*4C + kw*C + cin, cout], pre-cast to bf16 in the wrapper
    wmat = jnp.transpose(params["conv_w"], (2, 3, 1, 0)).reshape(Kc, co)
    wmat = wmat.astype(MATMUL_DTYPE)
    bias = params["conv_b"]                                       # [1, co] f32

    tho = _pick_conv_row_tile(Ho, Wo, C2, Kc, co)
    y, stats = acon_conv_fused(xpp, beta2, p1_2, p2_2, wmat, bias,
                               tho=tho, wo=Wo, c=C, co=co)

    # ---- combine per-tile stats (Chan / parallel variance), BN apply -------
    m_t = stats[:, :, 0, :]                                       # [N, HB, co]
    s_t = stats[:, :, 1, :]
    cnt = tho * Wo                                                # equal per tile
    mean = jnp.mean(m_t, axis=(0, 1))
    m2 = jnp.sum(s_t, axis=(0, 1)) + cnt * jnp.sum((m_t - mean) ** 2, axis=(0, 1))
    var = m2 / (N * Ho * Wo)                                      # biased (BN2d)
    scale = params["bn_g"] * lax.rsqrt(var + EPS)[None, :]
    shift = params["bn_b"] - mean[None, :] * scale

    Mtot = N * Ho * Wo
    tile_m = _pick_tile_div8(Mtot, max(512, Mtot // 8))
    out = bn_apply(y.reshape(Mtot, co), scale, shift, tile=tile_m)
    return out.reshape(N, Ho, Wo, co)


def unet_down_forward(x_nchw, params):
    # Boundary transposes only — in an NHWC pipeline call
    # unet_down_forward_nhwc directly and skip these two HBM passes.
    x = jnp.transpose(x_nchw, (0, 2, 3, 1))                       # NCHW -> NHWC
    y = unet_down_forward_nhwc(x, params)
    return jnp.transpose(y, (0, 3, 1, 2))                         # NHWC -> NCHW


def init_params(key, c_in, c_out, r=16):
    ch = max(r, c_in // r)                                        # MetaAconC hidden
    ks = jax.random.split(key, 9)

    def rnd(k, shape, scale=0.1):
        return scale * jax.random.normal(k, shape, jnp.float32)

    return {
        "p1": rnd(ks[0], (1, c_in), 1.0),                 # MetaAconC p1 (1,C,1,1) flat
        "p2": rnd(ks[1], (1, c_in), 1.0),
        "fc1_w": rnd(ks[2], (c_in, ch)),                  # 1x1 conv as [Cin, Ch] matmul
        "fc1_b": rnd(ks[3], (1, ch)),
        "fc2_w": rnd(ks[4], (ch, c_in)),
        "fc2_b": rnd(ks[5], (1, c_in)),
        "conv_w": rnd(ks[6], (c_out, c_in, 4, 4)),        # PyTorch OIHW layout
        "conv_b": rnd(ks[7], (1, c_out)),
        "bn_g": 1.0 + rnd(ks[8], (1, c_out)),
        "bn_b": jnp.zeros((1, c_out), jnp.float32),
    }


# Pure-JAX f32 reference (mirrors the PyTorch forward) used only for checking.
def reference(x_nchw, p):
    c_in = x_nchw.shape[1]
    y = jnp.mean(x_nchw, axis=(2, 3))                     # [N, C]
    h = y @ p["fc1_w"] + p["fc1_b"]
    beta = jax.nn.sigmoid(h @ p["fc2_w"] + p["fc2_b"])[:, :, None, None]
    p1 = p["p1"].reshape(1, c_in, 1, 1)
    p2 = p["p2"].reshape(1, c_in, 1, 1)
    dpx = (p1 - p2) * x_nchw
    a = dpx * jax.nn.sigmoid(beta * dpx) + p2 * x_nchw
    conv = lax.conv_general_dilated(
        a, p["conv_w"], (2, 2), ((1, 1), (1, 1)),
        dimension_numbers=("NCHW", "OIHW", "NCHW"),
    ) + p["conv_b"].reshape(1, -1, 1, 1)
    mu = conv.mean(axis=(0, 2, 3), keepdims=True)
    var = conv.var(axis=(0, 2, 3), keepdims=True)         # biased
    return (conv - mu) / jnp.sqrt(var + EPS) * p["bn_g"].reshape(1, -1, 1, 1) \
        + p["bn_b"].reshape(1, -1, 1, 1)


if __name__ == "__main__":
    key = jax.random.PRNGKey(0)
    kx, kp = jax.random.split(key)
    N, C_in, H, W = 2, 4, 16, 16
    C_out = 8

    x = jax.random.normal(kx, (N, C_in, H, W), jnp.float32)
    params = init_params(kp, C_in, C_out)

    fwd = jax.jit(unet_down_forward)
    out = jax.block_until_ready(fwd(x, params))

    assert out.shape == (N, C_out, H // 2, W // 2), out.shape
    ref = reference(x, params)
    err = float(jnp.max(jnp.abs(out - ref)))
    # bf16 MXU inputs (f32 accumulate) vs pure-f32 reference -> loosened tol.
    assert err < 5e-2, f"max abs error vs reference: {err}"
    print("KERNEL_OK")
</pallas_src>

<mosaic_0001>
module attributes {stable_mosaic.version = 11 : i64} {
  func.func @_pool_sum_kernel(%arg0: i32, %arg1: i32, %arg2: memref<1x16x8x8xf32, #tpu.memory_space<vmem>>, %arg3: memref<1x1x8xf32, #tpu.memory_space<vmem>>) attributes {dimension_semantics = [#tpu.dimension_semantics<parallel>, #tpu.dimension_semantics<arbitrary>], iteration_bounds = array<i64: 2, 1>, scalar_prefetch = 0 : i64, scratch_operands = 0 : i64, tpu.core_type = #tpu.core_type<tc>, window_params = [{transform_indices = @transform_0, window_bounds = array<i64: 1, 16, 8, 8>}, {transform_indices = @transform_1, window_bounds = array<i64: 1, 1, 8>}]} {
    %c0_i32 = arith.constant 0 : i32
    %0 = arith.cmpi eq, %arg1, %c0_i32 : i32
    %1 = arith.extui %0 : i1 to i32
    %c0_i32_0 = arith.constant 0 : i32
    %2 = arith.cmpi ne, %1, %c0_i32_0 : i32
    scf.if %2 {
      %cst_10 = arith.constant 0.000000e+00 : f32
      %10 = vector.broadcast %cst_10 : f32 to vector<1x1x8xf32>
      %c0_11 = arith.constant 0 : index
      %c0_12 = arith.constant 0 : index
      %c0_13 = arith.constant 0 : index
      %11 = vector.load %arg3[%c0_11, %c0_12, %c0_13] : memref<1x1x8xf32, #tpu.memory_space<vmem>>, vector<1x1x8xf32>
      tpu.vector_store %arg3[%c0_11, %c0_12, %c0_13], %10 {strides = array<i32>} : memref<1x1x8xf32, #tpu.memory_space<vmem>>, vector<1x1x8xf32>,
    } else {
    }
    %c0 = arith.constant 0 : index
    %c0_1 = arith.constant 0 : index
    %c0_2 = arith.constant 0 : index
    %c0_3 = arith.constant 0 : index
    %3 = vector.load %arg2[%c0, %c0_1, %c0_2, %c0_3] : memref<1x16x8x8xf32, #tpu.memory_space<vmem>>, vector<1x16x8x8xf32>
    %4 = vector.shape_cast %3 : vector<1x16x8x8xf32> to vector<16x8x8xf32>
    %c0_4 = arith.constant 0 : index
    %c0_5 = arith.constant 0 : index
    %c0_6 = arith.constant 0 : index
    %5 = vector.load %arg3[%c0_4, %c0_5, %c0_6] : memref<1x1x8xf32, #tpu.memory_space<vmem>>, vector<1x1x8xf32>
    %cst = arith.constant dense<0.000000e+00> : vector<8xf32>
    %6 = vector.multi_reduction <add>, %4, %cst [0, 1] : vector<16x8x8xf32> to vector<8xf32>
    %7 = vector.shape_cast %6 : vector<8xf32> to vector<1x1x8xf32>
    %8 = arith.addf %5, %7 : vector<1x1x8xf32>
    %c0_7 = arith.constant 0 : index
    %c0_8 = arith.constant 0 : index
    %c0_9 = arith.constant 0 : index
    %9 = vector.load %arg3[%c0_7, %c0_8, %c0_9] : memref<1x1x8xf32, #tpu.memory_space<vmem>>, vector<1x1x8xf32>
    tpu.vector_store %arg3[%c0_7, %c0_8, %c0_9], %8 {strides = array<i32>} : memref<1x1x8xf32, #tpu.memory_space<vmem>>, vector<1x1x8xf32>,
    return
  }
  func.func @transform_0(%arg0: i32, %arg1: i32) -> (i32, i32, i32, i32) {
    %c0_i32 = arith.constant 0 : i32
    %c0_i32_0 = arith.constant 0 : i32
    %c0_i32_1 = arith.constant 0 : i32
    return %arg0, %arg1, %c0_i32, %c0_i32_0 : i32, i32, i32, i32
  }
  func.func @transform_1(%arg0: i32, %arg1: i32) -> (i32, i32, i32) {
    %c0_i32 = arith.constant 0 : i32
    %c0_i32_0 = arith.constant 0 : i32
    %c0_i32_1 = arith.constant 0 : i32
    return %arg0, %c0_i32, %c0_i32_0 : i32, i32, i32
  }
}

module attributes {stable_mosaic.version = 11 : i64} {
  func.func @kernel(%arg0: i32, %arg1: i32, %arg2: memref<1x16x10x8xf32, #tpu.memory_space<vmem>>, %arg3: memref<1x2x10x8xf32, #tpu.memory_space<vmem>>, %arg4: memref<1x1x8xf32, #tpu.memory_space<vmem>>, %arg5: memref<1x8xf32, #tpu.memory_space<vmem>>, %arg6: memref<1x8xf32, #tpu.memory_space<vmem>>, %arg7: memref<64x8xbf16, #tpu.memory_space<vmem>>, %arg8: memref<1x8xf32, #tpu.memory_space<vmem>>, %arg9: memref<1x64x8xf32, #tpu.memory_space<vmem>>, %arg10: memref<1x1x2x8xf32, #tpu.memory_space<vmem>>, %arg11: memref<64x64xf32, #tpu.memory_space<vmem>>) attributes {dimension_semantics = [#tpu.dimension_semantics<parallel>, #tpu.dimension_semantics<parallel>], iteration_bounds = array<i64: 2, 1>, scalar_prefetch = 0 : i64, scratch_operands = 1 : i64, tpu.core_type = #tpu.core_type<tc>, window_params = [{transform_indices = @transform_0, window_bounds = array<i64: 1, 16, 10, 8>}, {transform_indices = @transform_1, window_bounds = array<i64: 1, 2, 10, 8>}, {transform_indices = @transform_2, window_bounds = array<i64: 1, 1, 8>}, {pipeline_mode = #tpu.pipeline_mode<synchronous>, transform_indices = @transform_3, window_bounds = array<i64: 1, 8>}, {pipeline_mode = #tpu.pipeline_mode<synchronous>, transform_indices = @transform_4, window_bounds = array<i64: 1, 8>}, {pipeline_mode = #tpu.pipeline_mode<synchronous>, transform_indices = @transform_5, window_bounds = array<i64: 64, 8>}, {pipeline_mode = #tpu.pipeline_mode<synchronous>, transform_indices = @transform_6, window_bounds = array<i64: 1, 8>}, {transform_indices = @transform_7, window_bounds = array<i64: 1, 64, 8>}, {transform_indices = @transform_8, window_bounds = array<i64: 1, 1, 2, 8>}]} {
    %c0 = arith.constant 0 : index
    %c0_0 = arith.constant 0 : index
    %0 = vector.load %arg5[%c0, %c0_0] : memref<1x8xf32, #tpu.memory_space<vmem>>, vector<1x8xf32>
    %c0_1 = arith.constant 0 : index
    %c0_2 = arith.constant 0 : index
    %1 = vector.load %arg6[%c0_1, %c0_2] : memref<1x8xf32, #tpu.memory_space<vmem>>, vector<1x8xf32>
    %c0_3 = arith.constant 0 : index
    %c0_4 = arith.constant 0 : index
    %c0_5 = arith.constant 0 : index
    %2 = vector.load %arg4[%c0_3, %c0_4, %c0_5] : memref<1x1x8xf32, #tpu.memory_space<vmem>>, vector<1x1x8xf32>
    %3 = vector.shape_cast %2 : vector<1x1x8xf32> to vector<1x8xf32>
    %4 = arith.subf %0, %1 : vector<1x8xf32>
    %c0_6 = arith.constant 0 : index
    %c0_7 = arith.constant 0 : index
    %c0_8 = arith.constant 0 : index
    %c0_9 = arith.constant 0 : index
    %5 = vector.load %arg2[%c0_6, %c0_7, %c0_8, %c0_9] : memref<1x16x10x8xf32, #tpu.memory_space<vmem>>, vector<1x16x10x8xf32>
    %6 = vector.shape_cast %5 : vector<1x16x10x8xf32> to vector<16x10x8xf32>
    %7 = vector.shape_cast %4 : vector<1x8xf32> to vector<1x1x8xf32>
    %8 = vector.broadcast %7 : vector<1x1x8xf32> to vector<16x10x8xf32>
    %9 = arith.mulf %8, %6 : vector<16x10x8xf32>
    %10 = vector.shape_cast %3 : vector<1x8xf32> to vector<1x1x8xf32>
    %11 = vector.broadcast %10 : vector<1x1x8xf32> to vector<16x10x8xf32>
    %12 = arith.mulf %11, %9 : vector<16x10x8xf32>
    %13 = arith.negf %12 : vector<16x10x8xf32>
    %14 = math.exp %13 : vector<16x10x8xf32>
    %cst = arith.constant 1.000000e+00 : f32
    %15 = vector.broadcast %cst : f32 to vector<16x10x8xf32>
    %16 = arith.addf %15, %14 : vector<16x10x8xf32>
    %17 = arith.divf %15, %16 : vector<16x10x8xf32>
    %18 = arith.mulf %9, %17 : vector<16x10x8xf32>
    %19 = vector.shape_cast %1 : vector<1x8xf32> to vector<1x1x8xf32>
    %20 = vector.broadcast %19 : vector<1x1x8xf32> to vector<16x10x8xf32>
    %21 = arith.mulf %20, %6 : vector<16x10x8xf32>
    %22 = arith.addf %18, %21 : vector<16x10x8xf32>
    %c0_10 = arith.constant 0 : index
    %c0_11 = arith.constant 0 : index
    %c0_12 = arith.constant 0 : index
    %c0_13 = arith.constant 0 : index
    %23 = vector.load %arg3[%c0_10, %c0_11, %c0_12, %c0_13] : memref<1x2x10x8xf32, #tpu.memory_space<vmem>>, vector<1x2x10x8xf32>
    %24 = vector.shape_cast %23 : vector<1x2x10x8xf32> to vector<2x10x8xf32>
    %25 = vector.shape_cast %4 : vector<1x8xf32> to vector<1x1x8xf32>
    %26 = vector.broadcast %25 : vector<1x1x8xf32> to vector<2x10x8xf32>
    %27 = arith.mulf %26, %24 : vector<2x10x8xf32>
    %28 = vector.shape_cast %3 : vector<1x8xf32> to vector<1x1x8xf32>
    %29 = vector.broadcast %28 : vector<1x1x8xf32> to vector<2x10x8xf32>
    %30 = arith.mulf %29, %27 : vector<2x10x8xf32>
    %31 = arith.negf %30 : vector<2x10x8xf32>
    %32 = math.exp %31 : vector<2x10x8xf32>
    %cst_14 = arith.constant 1.000000e+00 : f32
    %33 = vector.broadcast %cst_14 : f32 to vector<2x10x8xf32>
    %34 = arith.addf %33, %32 : vector<2x10x8xf32>
    %35 = arith.divf %33, %34 : vector<2x10x8xf32>
    %36 = arith.mulf %27, %35 : vector<2x10x8xf32>
    %37 = vector.shape_cast %1 : vector<1x8xf32> to vector<1x1x8xf32>
    %38 = vector.broadcast %37 : vector<1x1x8xf32> to vector<2x10x8xf32>
    %39 = arith.mulf %38, %24 : vector<2x10x8xf32>
    %40 = arith.addf %36, %39 : vector<2x10x8xf32>
    %41 = vector.extract_strided_slice %22 {offsets = [0, 0, 0], sizes = [1, 10, 8], strides = [1, 1, 1]} : vector<16x10x8xf32> to vector<1x10x8xf32>
    %42 = vector.shape_cast %41 : vector<1x10x8xf32> to vector<10x8xf32>
    %43 = vector.extract_strided_slice %42 {offsets = [0, 4], sizes = [8, 4], strides = [1, 1]} : vector<10x8xf32> to vector<8x4xf32>
    %c0_15 = arith.constant 0 : index
    %c0_16 = arith.constant 0 : index
    %44 = vector.load %arg11[%c0_15, %c0_16] : memref<64x64xf32, #tpu.memory_space<vmem>>, vector<8x4xf32>
    tpu.vector_store %arg11[%c0_15, %c0_16], %43 {strides = array<i32>} : memref<64x64xf32, #tpu.memory_space<vmem>>, vector<8x4xf32>,
    %45 = vector.extract_strided_slice %42 {offsets = [1, 0], sizes = [8, 8], strides = [1, 1]} : vector<10x8xf32> to vector<8x8xf32>
    %c0_17 = arith.constant 0 : index
    %c4 = arith.constant 4 : index
    %46 = vector.load %arg11[%c0_17, %c4] : memref<64x64xf32, #tpu.memory_space<vmem>>, vector<8x8xf32>
    tpu.vector_store %arg11[%c0_17, %c4], %45 {strides = array<i32>} : memref<64x64xf32, #tpu.memory_space<vmem>>, vector<8x8xf32>,
    %47 = vector.extract_strided_slice %42 {offsets = [2, 0], sizes = [8, 4], strides = [1, 1]} : vector<10x8xf32> to vector<8x4xf32>
    %c0_18 = arith.constant 0 : index
    %c12 = arith.constant 12 : index
    %48 = vector.load %arg11[%c0_18, %c12] : memref<64x64xf32, #tpu.memory_space<vmem>>, vector<8x4xf32>
    tpu.vector_store %arg11[%c0_18, %c12], %47 {strides = array<i32>} : memref<64x64xf32, #tpu.memory_space<vmem>>, vector<8x4xf32>,
    %49 = vector.extract_strided_slice %22 {offsets = [1, 0, 0], sizes = [1, 10, 8], strides = [1, 1, 1]} : vector<16x10x8xf32> to vector<1x10x8xf32>
    %50 = vector.shape_cast %49 : vector<1x10x8xf32> to vector<10x8xf32>
    %51 = vector.extract_strided_slice %50 {offsets = [0, 4], sizes = [8, 4], strides = [1, 1]} : vector<10x8xf32> to vector<8x4xf32>
    %c0_19 = arith.constant 0 : index
    %c16 = arith.constant 16 : index
    %52 = vector.load %arg11[%c0_19, %c16] : memref<64x64xf32, #tpu.memory_space<vmem>>, vector<8x4xf32>
    tpu.vector_store %arg11[%c0_19, %c16], %51 {strides = array<i32>} : memref<64x64xf32, #tpu.memory_space<vmem>>, vector<8x4xf32>,
    %53 = vector.extract_strided_slice %50 {offsets = [1, 0], sizes = [8, 8], strides = [1, 1]} : vector<10x8xf32> to vector<8x8xf32>
    %c0_20 = arith.constant 0 : index
    %c20 = arith.constant 20 : index
    %54 = vector.load %arg11[%c0_20, %c20] : memref<64x64xf32, #tpu.memory_space<vmem>>, vector<8x8xf32>
    tpu.vector_store %arg11[%c0_20, %c20], %53 {strides = array<i32>} : memref<64x64xf32, #tpu.memory_space<vmem>>, vector<8x8xf32>,
    %55 = vector.extract_strided_slice %50 {offsets = [2, 0], sizes = [8, 4], strides = [1, 1]} : vector<10x8xf32> to vector<8x4xf32>
    %c0_21 = arith.constant 0 : index
    %c28 = arith.constant 28 : index
    %56 = vector.load %arg11[%c0_21, %c28] : memref<64x64xf32, #tpu.memory_space<vmem>>, vector<8x4xf32>
    tpu.vector_store %arg11[%c0_21, %c28], %55 {strides = array<i32>} : memref<64x64xf32, #tpu.memory_space<vmem>>, vector<8x4xf32>,
    %57 = vector.extract_strided_slice %22 {offsets = [2, 0, 0], sizes = [1, 10, 8], strides = [1, 1, 1]} : vector<16x10x8xf32> to vector<1x10x8xf32>
    %58 = vector.shape_cast %57 : vector<1x10x8xf32> to vector<10x8xf32>
    %59 = vector.extract_strided_slice %58 {offsets = [0, 4], sizes = [8, 4], strides = [1, 1]} : vector<10x8xf32> to vector<8x4xf32>
    %c0_22 = arith.constant 0 : index
    %c32 = arith.constant 32 : index
    %60 = vector.load %arg11[%c0_22, %c32] : memref<64x64xf32, #tpu.memory_space<vmem>>, vector<8x4xf32>
    tpu.vector_store %arg11[%c0_22, %c32], %59 {strides = array<i32>} : memref<64x64xf32, #tpu.memory_space<vmem>>, vector<8x4xf32>,
    %61 = vector.extract_strided_slice %58 {offsets = [1, 0], sizes = [8, 8], strides = [1, 1]} : vector<10x8xf32> to vector<8x8xf32>
    %c0_23 = arith.constant 0 : index
    %c36 = arith.constant 36 : index
    %62 = vector.load %arg11[%c0_23, %c36] : memref<64x64xf32, #tpu.memory_space<vmem>>, vector<8x8xf32>
    tpu.vector_store %arg11[%c0_23, %c36], %61 {strides = array<i32>} : memref<64x64xf32, #tpu.memory_space<vmem>>, vector<8x8xf32>,
    %63 = vector.extract_strided_slice %58 {offsets = [2, 0], sizes = [8, 4], strides = [1, 1]} : vector<10x8xf32> to vector<8x4xf32>
    %c0_24 = arith.constant 0 : index
    %c44 = arith.constant 44 : index
    %64 = vector.load %arg11[%c0_24, %c44] : memref<64x64xf32, #tpu.memory_space<vmem>>, vector<8x4xf32>
    tpu.vector_store %arg11[%c0_24, %c44], %63 {strides = array<i32>} : memref<64x64xf32, #tpu.memory_space<vmem>>, vector<8x4xf32>,
    %65 = vector.extract_strided_slice %22 {offsets = [3, 0, 0], sizes = [1, 10, 8], strides = [1, 1, 1]} : vector<16x10x8xf32> to vector<1x10x8xf32>
    %66 = vector.shape_cast %65 : vector<1x10x8xf32> to vector<10x8xf32>
    %67 = vector.extract_strided_slice %66 {offsets = [0, 4], sizes = [8, 4], strides = [1, 1]} : vector<10x8xf32> to vector<8x4xf32>
    %c0_25 = arith.constant 0 : index
    %c48 = arith.constant 48 : index
    %68 = vector.load %arg11[%c0_25, %c48] : memref<64x64xf32, #tpu.memory_space<vmem>>, vector<8x4xf32>
    tpu.vector_store %arg11[%c0_25, %c48], %67 {strides = array<i32>} : memref<64x64xf32, #tpu.memory_space<vmem>>, vector<8x4xf32>,
    %69 = vector.extract_strided_slice %66 {offsets = [1, 0], sizes = [8, 8], strides = [1, 1]} : vector<10x8xf32> to vector<8x8xf32>
    %c0_26 = arith.constant 0 : index
    %c52 = arith.constant 52 : index
    %70 = vector.load %arg11[%c0_26, %c52] : memref<64x64xf32, #tpu.memory_space<vmem>>, vector<8x8xf32>
    tpu.vector_store %arg11[%c0_26, %c52], %69 {strides = array<i32>} : memref<64x64xf32, #tpu.memory_space<vmem>>, vector<8x8xf32>,
    %71 = vector.extract_strided_slice %66 {offsets = [2, 0], sizes = [8, 4], strides = [1, 1]} : vector<10x8xf32> to vector<8x4xf32>
    %c0_27 = arith.constant 0 : index
    %c60 = arith.constant 60 : index
    %72 = vector.load %arg11[%c0_27, %c60] : memref<64x64xf32, #tpu.memory_space<vmem>>, vector<8x4xf32>
    tpu.vector_store %arg11[%c0_27, %c60], %71 {strides = array<i32>} : memref<64x64xf32, #tpu.memory_space<vmem>>, vector<8x4xf32>,
    %73 = vector.extract_strided_slice %22 {offsets = [2, 0, 0], sizes = [1, 10, 8], strides = [1, 1, 1]} : vector<16x10x8xf32> to vector<1x10x8xf32>
    %74 = vector.shape_cast %73 : vector<1x10x8xf32> to vector<10x8xf32>
    %75 = vector.extract_strided_slice %74 {offsets = [0, 4], sizes = [8, 4], strides = [1, 1]} : vector<10x8xf32> to vector<8x4xf32>
    %c8 = arith.constant 8 : index
    %c0_28 = arith.constant 0 : index
    %76 = vector.load %arg11[%c8, %c0_28] : memref<64x64xf32, #tpu.memory_space<vmem>>, vector<8x4xf32>
    tpu.vector_store %arg11[%c8, %c0_28], %75 {strides = array<i32>} : memref<64x64xf32, #tpu.memory_space<vmem>>, vector<8x4xf32>,
    %77 = vector.extract_strided_slice %74 {offsets = [1, 0], sizes = [8, 8], strides = [1, 1]} : vector<10x8xf32> to vector<8x8xf32>
    %c8_29 = arith.constant 8 : index
    %c4_30 = arith.constant 4 : index
    %78 = vector.load %arg11[%c8_29, %c4_30] : memref<64x64xf32, #tpu.memory_space<vmem>>, vector<8x8xf32>
    tpu.vector_store %arg11[%c8_29, %c4_30], %77 {strides = array<i32>} : memref<64x64xf32, #tpu.memory_space<vmem>>, vector<8x8xf32>,
    %79 = vector.extract_strided_slice %74 {offsets = [2, 0], sizes = [8, 4], strides = [1, 1]} : vector<10x8xf32> to vector<8x4xf32>
    %c8_31 = arith.constant 8 : index
    %c12_32 = arith.constant 12 : index
    %80 = vector.load %arg11[%c8_31, %c12_32] : memref<64x64xf32, #tpu.memory_space<vmem>>, vector<8x4xf32>
    tpu.vector_store %arg11[%c8_31, %c12_32], %79 {strides = array<i32>} : memref<64x64xf32, #tpu.memory_space<vmem>>, vector<8x4xf32>,
    %81 = vector.extract_strided_slice %22 {offsets = [3, 0, 0], sizes = [1, 10, 8], strides = [1, 1, 1]} : vector<16x10x8xf32> to vector<1x10x8xf32>
    %82 = vector.shape_cast %81 : vector<1x10x8xf32> to vector<10x8xf32>
    %83 = vector.extract_strided_slice %82 {offsets = [0, 4], sizes = [8, 4], strides = [1, 1]} : vector<10x8xf32> to vector<8x4xf32>
    %c8_33 = arith.constant 8 : index
    %c16_34 = arith.constant 16 : index
    %84 = vector.load %arg11[%c8_33, %c16_34] : memref<64x64xf32, #tpu.memory_space<vmem>>, vector<8x4xf32>
    tpu.vector_store %arg11[%c8_33, %c16_34], %83 {strides = array<i32>} : memref<64x64xf32, #tpu.memory_space<vmem>>, vector<8x4xf32>,
    %85 = vector.extract_strided_slice %82 {offsets = [1, 0], sizes = [8, 8], strides = [1, 1]} : vector<10x8xf32> to vector<8x8xf32>
    %c8_35 = arith.constant 8 : index
    %c20_36 = arith.constant 20 : index
    %86 = vector.load %arg11[%c8_35, %c20_36] : memref<64x64xf32, #tpu.memory_space<vmem>>, vector<8x8xf32>
    tpu.vector_store %arg11[%c8_35, %c20_36], %85 {strides = array<i32>} : memref<64x64xf32, #tpu.memory_space<vmem>>, vector<8x8xf32>,
    %87 = vector.extract_strided_slice %82 {offsets = [2, 0], sizes = [8, 4], strides = [1, 1]} : vector<10x8xf32> to vector<8x4xf32>
    %c8_37 = arith.constant 8 : index
    %c28_38 = arith.constant 28 : index
    %88 = vector.load %arg11[%c8_37, %c28_38] : memref<64x64xf32, #tpu.memory_space<vmem>>, vector<8x4xf32>
    tpu.vector_store %arg11[%c8_37, %c28_38], %87 {strides = array<i32>} : memref<64x64xf32, #tpu.memory_space<vmem>>, vector<8x4xf32>,
    %89 = vector.extract_strided_slice %22 {offsets = [4, 0, 0], sizes = [1, 10, 8], strides = [1, 1, 1]} : vector<16x10x8xf32> to vector<1x10x8xf32>
    %90 = vector.shape_cast %89 : vector<1x10x8xf32> to vector<10x8xf32>
    %91 = vector.extract_strided_slice %90 {offsets = [0, 4], sizes = [8, 4], strides = [1, 1]} : vector<10x8xf32> to vector<8x4xf32>
    %c8_39 = arith.constant 8 : index
    %c32_40 = arith.constant 32 : index
    %92 = vector.load %arg11[%c8_39, %c32_40] : memref<64x64xf32, #tpu.memory_space<vmem>>, vector<8x4xf32>
    tpu.vector_store %arg11[%c8_39, %c32_40], %91 {strides = array<i32>} : memref<64x64xf32, #tpu.memory_space<vmem>>, vector<8x4xf32>,
    %93 = vector.extract_strided_slice %90 {offsets = [1, 0], sizes = [8, 8], strides = [1, 1]} : vector<10x8xf32> to vector<8x8xf32>
    %c8_41 = arith.constant 8 : index
    %c36_42 = arith.constant 36 : index
    %94 = vector.load %arg11[%c8_41, %c36_42] : memref<64x64xf32, #tpu.memory_space<vmem>>, vector<8x8xf32>
    tpu.vector_store %arg11[%c8_41, %c36_42], %93 {strides = array<i32>} : memref<64x64xf32, #tpu.memory_space<vmem>>, vector<8x8xf32>,
    %95 = vector.extract_strided_slice %90 {offsets = [2, 0], sizes = [8, 4], strides = [1, 1]} : vector<10x8xf32> to vector<8x4xf32>
    %c8_43 = arith.constant 8 : index
    %c44_44 = arith.constant 44 : index
    %96 = vector.load %arg11[%c8_43, %c44_44] : memref<64x64xf32, #tpu.memory_space<vmem>>, vector<8x4xf32>
    tpu.vector_store %arg11[%c8_43, %c44_44], %95 {strides = array<i32>} : memref<64x64xf32, #tpu.memory_space<vmem>>, vector<8x4xf32>,
    %97 = vector.extract_strided_slice %22 {offsets = [5, 0, 0], sizes = [1, 10, 8], strides = [1, 1, 1]} : vector<16x10x8xf32> to vector<1x10x8xf32>
    %98 = vector.shape_cast %97 : vector<1x10x8xf32> to vector<10x8xf32>
    %99 = vector.extract_strided_slice %98 {offsets = [0, 4], sizes = [8, 4], strides = [1, 1]} : vector<10x8xf32> to vector<8x4xf32>
    %c8_45 = arith.constant 8 : index
    %c48_46 = arith.constant 48 : index
    %100 = vector.load %arg11[%c8_45, %c48_46] : memref<64x64xf32, #tpu.memory_space<vmem>>, vector<8x4xf32>
    tpu.vector_store %arg11[%c8_45, %c48_46], %99 {strides = array<i32>} : memref<64x64xf32, #tpu.memory_space<vmem>>, vector<8x4xf32>,
    %101 = vector.extract_strided_slice %98 {offsets = [1, 0], sizes = [8, 8], strides = [1, 1]} : vector<10x8xf32> to vector<8x8xf32>
    %c8_47 = arith.constant 8 : index
    %c52_48 = arith.constant 52 : index
    %102 = vector.load %arg11[%c8_47, %c52_48] : memref<64x64xf32, #tpu.memory_space<vmem>>, vector<8x8xf32>
    tpu.vector_store %arg11[%c8_47, %c52_48], %101 {strides = array<i32>} : memref<64x64xf32, #tpu.memory_space<vmem>>, vector<8x8xf32>,
    %103 = vector.extract_strided_slice %98 {offsets = [2, 0], sizes = [8, 4], strides = [1, 1]} : vector<10x8xf32> to vector<8x4xf32>
    %c8_49 = arith.constant 8 : index
    %c60_50 = arith.constant 60 : index
    %104 = vector.load %arg11[%c8_49, %c60_50] : memref<64x64xf32, #tpu.memory_space<vmem>>, vector<8x4xf32>
    tpu.vector_store %arg11[%c8_49, %c60_50], %103 {strides = array<i32>} : memref<64x64xf32, #tpu.memory_space<vmem>>, vector<8x4xf32>,
    %105 = vector.extract_strided_slice %22 {offsets = [4, 0, 0], sizes = [1, 10, 8], strides = [1, 1, 1]} : vector<16x10x8xf32> to vector<1x10x8xf32>
    %106 = vector.shape_cast %105 : vector<1x10x8xf32> to vector<10x8xf32>
    %107 = vector.extract_strided_slice %106 {offsets = [0, 4], sizes = [8, 4], strides = [1, 1]} : vector<10x8xf32> to vector<8x4xf32>
    %c16_51 = arith.constant 16 : index
    %c0_52 = arith.constant 0 : index
    %108 = vector.load %arg11[%c16_51, %c0_52] : memref<64x64xf32, #tpu.memory_space<vmem>>, vector<8x4xf32>
    tpu.vector_store %arg11[%c16_51, %c0_52], %107 {strides = array<i32>} : memref<64x64xf32, #tpu.memory_space<vmem>>, vector<8x4xf32>,
    %109 = vector.extract_strided_slice %106 {offsets = [1, 0], sizes = [8, 8], strides = [1, 1]} : vector<10x8xf32> to vector<8x8xf32>
    %c16_53 = arith.constant 16 : index
    %c4_54 = arith.constant 4 : index
    %110 = vector.load %arg11[%c16_53, %c4_54] : memref<64x64xf32, #tpu.memory_space<vmem>>, vector<8x8xf32>
    tpu.vector_store %arg11[%c16_53, %c4_54], %109 {strides = array<i32>} : memref<64x64xf32, #tpu.memory_space<vmem>>, vector<8x8xf32>,
    %111 = vector.extract_strided_slice %106 {offsets = [2, 0], sizes = [8, 4], strides = [1, 1]} : vector<10x8xf32> to vector<8x4xf32>
    %c16_55 = arith.constant 16 : index
    %c12_56 = arith.constant 12 : index
    %112 = vector.load %arg11[%c16_55, %c12_56] : memref<64x64xf32, #tpu.memory_space<vmem>>, vector<8x4xf32>
    tpu.vector_store %arg11[%c16_55, %c12_56], %111 {strides = array<i32>} : memref<64x64xf32, #tpu.memory_space<vmem>>, vector<8x4xf32>,
    %113 = vector.extract_strided_slice %22 {offsets = [5, 0, 0], sizes = [1, 10, 8], strides = [1, 1, 1]} : vector<16x10x8xf32> to vector<1x10x8xf32>
    %114 = vector.shape_cast %113 : vector<1x10x8xf32> to vector<10x8xf32>
    %115 = vector.extract_strided_slice %114 {offsets = [0, 4], sizes = [8, 4], strides = [1, 1]} : vector<10x8xf32> to vector<8x4xf32>
    %c16_57 = arith.constant 16 : index
    %c16_58 = arith.constant 16 : index
    %116 = vector.load %arg11[%c16_57, %c16_58] : memref<64x64xf32, #tpu.memory_space<vmem>>, vector<8x4xf32>
    tpu.vector_store %arg11[%c16_57, %c16_58], %115 {strides = array<i32>} : memref<64x64xf32, #tpu.memory_space<vmem>>, vector<8x4xf32>,
    %117 = vector.extract_strided_slice %114 {offsets = [1, 0], sizes = [8, 8], strides = [1, 1]} : vector<10x8xf32> to vector<8x8xf32>
    %c16_59 = arith.constant 16 : index
    %c20_60 = arith.constant 20 : index
    %118 = vector.load %arg11[%c16_59, %c20_60] : memref<64x64xf32, #tpu.memory_space<vmem>>, vector<8x8xf32>
    tpu.vector_store %arg11[%c16_59, %c20_60], %117 {strides = array<i32>} : memref<64x64xf32, #tpu.memory_space<vmem>>, vector<8x8xf32>,
    %119 = vector.extract_strided_slice %114 {offsets = [2, 0], sizes = [8, 4], strides = [1, 1]} : vector<10x8xf32> to vector<8x4xf32>
    %c16_61 = arith.constant 16 : index
    %c28_62 = arith.constant 28 : index
    %120 = vector.load %arg11[%c16_61, %c28_62] : memref<64x64xf32, #tpu.memory_space<vmem>>, vector<8x4xf32>
    tpu.vector_store %arg11[%c16_61, %c28_62], %119 {strides = array<i32>} : memref<64x64xf32, #tpu.memory_space<vmem>>, vector<8x4xf32>,
    %121 = vector.extract_strided_slice %22 {offsets = [6, 0, 0], sizes = [1, 10, 8], strides = [1, 1, 1]} : vector<16x10x8xf32> to vector<1x10x8xf32>
    %122 = vector.shape_cast %121 : vector<1x10x8xf32> to vector<10x8xf32>
    %123 = vector.extract_strided_slice %122 {offsets = [0, 4], sizes = [8, 4], strides = [1, 1]} : vector<10x8xf32> to vector<8x4xf32>
    %c16_63 = arith.constant 16 : index
    %c32_64 = arith.constant 32 : index
    %124 = vector.load %arg11[%c16_63, %c32_64] : memref<64x64xf32, #tpu.memory_space<vmem>>, vector<8x4xf32>
    tpu.vector_store %arg11[%c16_63, %c32_64], %123 {strides = array<i32>} : memref<64x64xf32, #tpu.memory_space<vmem>>, vector<8x4xf32>,
    %125 = vector.extract_strided_slice %122 {offsets = [1, 0], sizes = [8, 8], strides = [1, 1]} : vector<10x8xf32> to vector<8x8xf32>
    %c16_65 = arith.constant 16 : index
    %c36_66 = arith.constant 36 : index
    %126 = vector.load %arg11[%c16_65, %c36_66] : memref<64x64xf32, #tpu.memory_space<vmem>>, vector<8x8xf32>
    tpu.vector_store %arg11[%c16_65, %c36_66], %125 {strides = array<i32>} : memref<64x64xf32, #tpu.memory_space<vmem>>, vector<8x8xf32>,
    %127 = vector.extract_strided_slice %122 {offsets = [2, 0], sizes = [8, 4], strides = [1, 1]} : vector<10x8xf32> to vector<8x4xf32>
    %c16_67 = arith.constant 16 : index
    %c44_68 = arith.constant 44 : index
    %128 = vector.load %arg11[%c16_67, %c44_68] : memref<64x64xf32, #tpu.memory_space<vmem>>, vector<8x4xf32>
    tpu.vector_store %arg11[%c16_67, %c44_68], %127 {strides = array<i32>} : memref<64x64xf32, #tpu.memory_space<vmem>>, vector<8x4xf32>,
    %129 = vector.extract_strided_slice %22 {offsets = [7, 0, 0], sizes = [1, 10, 8], strides = [1, 1, 1]} : vector<16x10x8xf32> to vector<1x10x8xf32>
    %130 = vector.shape_cast %129 : vector<1x10x8xf32> to vector<10x8xf32>
    %131 = vector.extract_strided_slice %130 {offsets = [0, 4], sizes = [8, 4], strides = [1, 1]} : vector<10x8xf32> to vector<8x4xf32>
    %c16_69 = arith.constant 16 : index
    %c48_70 = arith.constant 48 : index
    %132 = vector.load %arg11[%c16_69, %c48_70] : memref<64x64xf32, #tpu.memory_space<vmem>>, vector<8x4xf32>
    tpu.vector_store %arg11[%c16_69, %c48_70], %131 {strides = array<i32>} : memref<64x64xf32, #tpu.memory_space<vmem>>, vector<8x4xf32>,
    %133 = vector.extract_strided_slice %130 {offsets = [1, 0], sizes = [8, 8], strides = [1, 1]} : vector<10x8xf32> to vector<8x8xf32>
    %c16_71 = arith.constant 16 : index
    %c52_72 = arith.constant 52 : index
    %134 = vector.load %arg11[%c16_71, %c52_72] : memref<64x64xf32, #tpu.memory_space<vmem>>, vector<8x8xf32>
    tpu.vector_store %arg11[%c16_71, %c52_72], %133 {strides = array<i32>} : memref<64x64xf32, #tpu.memory_space<vmem>>, vector<8x8xf32>,
    %135 = vector.extract_strided_slice %130 {offsets = [2, 0], sizes = [8, 4], strides = [1, 1]} : vector<10x8xf32> to vector<8x4xf32>
    %c16_73 = arith.constant 16 : index
    %c60_74 = arith.constant 60 : index
    %136 = vector.load %arg11[%c16_73, %c60_74] : memref<64x64xf32, #tpu.memory_space<vmem>>, vector<8x4xf32>
    tpu.vector_store %arg11[%c16_73, %c60_74], %135 {strides = array<i32>} : memref<64x64xf32, #tpu.memory_space<vmem>>, vector<8x4xf32>,
    %137 = vector.extract_strided_slice %22 {offsets = [6, 0, 0], sizes = [1, 10, 8], strides = [1, 1, 1]} : vector<16x10x8xf32> to vector<1x10x8xf32>
    %138 = vector.shape_cast %137 : vector<1x10x8xf32> to vector<10x8xf32>
    %139 = vector.extract_strided_slice %138 {offsets = [0, 4], sizes = [8, 4], strides = [1, 1]} : vector<10x8xf32> to vector<8x4xf32>
    %c24 = arith.constant 24 : index
    %c0_75 = arith.constant 0 : index
    %140 = vector.load %arg11[%c24, %c0_75] : memref<64x64xf32, #tpu.memory_space<vmem>>, vector<8x4xf32>
    tpu.vector_store %arg11[%c24, %c0_75], %139 {strides = array<i32>} : memref<64x64xf32, #tpu.memory_space<vmem>>, vector<8x4xf32>,
    %141 = vector.extract_strided_slice %138 {offsets = [1, 0], sizes = [8, 8], strides = [1, 1]} : vector<10x8xf32> to vector<8x8xf32>
    %c24_76 = arith.constant 24 : index
    %c4_77 = arith.constant 4 : index
    %142 = vector.load %arg11[%c24_76, %c4_77] : memref<64x64xf32, #tpu.memory_space<vmem>>, vector<8x8xf32>
    tpu.vector_store %arg11[%c24_76, %c4_77], %141 {strides = array<i32>} : memref<64x64xf32, #tpu.memory_space<vmem>>, vector<8x8xf32>,
    %143 = vector.extract_strided_slice %138 {offsets = [2, 0], sizes = [8, 4], strides = [1, 1]} : vector<10x8xf32> to vector<8x4xf32>
    %c24_78 = arith.constant 24 : index
    %c12_79 = arith.constant 12 : index
    %144 = vector.load %arg11[%c24_78, %c12_79] : memref<64x64xf32, #tpu.memory_space<vmem>>, vector<8x4xf32>
    tpu.vector_store %arg11[%c24_78, %c12_79], %143 {strides = array<i32>} : memref<64x64xf32, #tpu.memory_space<vmem>>, vector<8x4xf32>,
    %145 = vector.extract_strided_slice %22 {offsets = [7, 0, 0], sizes = [1, 10, 8], strides = [1, 1, 1]} : vector<16x10x8xf32> to vector<1x10x8xf32>
    %146 = vector.shape_cast %145 : vector<1x10x8xf32> to vector<10x8xf32>
    %147 = vector.extract_strided_slice %146 {offsets = [0, 4], sizes = [8, 4], strides = [1, 1]} : vector<10x8xf32> to vector<8x4xf32>
    %c24_80 = arith.constant 24 : index
    %c16_81 = arith.constant 16 : index
    %148 = vector.load %arg11[%c24_80, %c16_81] : memref<64x64xf32, #tpu.memory_space<vmem>>, vector<8x4xf32>
    tpu.vector_store %arg11[%c24_80, %c16_81], %147 {strides = array<i32>} : memref<64x64xf32, #tpu.memory_space<vmem>>, vector<8x4xf32>,
    %149 = vector.extract_strided_slice %146 {offsets = [1, 0], sizes = [8, 8], strides = [1, 1]} : vector<10x8xf32> to vector<8x8xf32>
    %c24_82 = arith.constant 24 : index
    %c20_83 = arith.constant 20 : index
    %150 = vector.load %arg11[%c24_82, %c20_83] : memref<64x64xf32, #tpu.memory_space<vmem>>, vector<8x8xf32>
    tpu.vector_store %arg11[%c24_82, %c20_83], %149 {strides = array<i32>} : memref<64x64xf32, #tpu.memory_space<vmem>>, vector<8x8xf32>,
    %151 = vector.extract_strided_slice %146 {offsets = [2, 0], sizes = [8, 4], strides = [1, 1]} : vector<10x8xf32> to vector<8x4xf32>
    %c24_84 = arith.constant 24 : index
    %c28_85 = arith.constant 28 : index
    %152 = vector.load %arg11[%c24_84, %c28_85] : memref<64x64xf32, #tpu.memory_space<vmem>>, vector<8x4xf32>
    tpu.vector_store %arg11[%c24_84, %c28_85], %151 {strides = array<i32>} : memref<64x64xf32, #tpu.memory_space<vmem>>, vector<8x4xf32>,
    %153 = vector.extract_strided_slice %22 {offsets = [8, 0, 0], sizes = [1, 10, 8], strides = [1, 1, 1]} : vector<16x10x8xf32> to vector<1x10x8xf32>
    %154 = vector.shape_cast %153 : vector<1x10x8xf32> to vector<10x8xf32>
    %155 = vector.extract_strided_slice %154 {offsets = [0, 4], sizes = [8, 4], strides = [1, 1]} : vector<10x8xf32> to vector<8x4xf32>
    %c24_86 = arith.constant 24 : index
    %c32_87 = arith.constant 32 : index
    %156 = vector.load %arg11[%c24_86, %c32_87] : memref<64x64xf32, #tpu.memory_space<vmem>>, vector<8x4xf32>
    tpu.vector_store %arg11[%c24_86, %c32_87], %155 {strides = array<i32>} : memref<64x64xf32, #tpu.memory_space<vmem>>, vector<8x4xf32>,
    %157 = vector.extract_strided_slice %154 {offsets = [1, 0], sizes = [8, 8], strides = [1, 1]} : vector<10x8xf32> to vector<8x8xf32>
    %c24_88 = arith.constant 24 : index
    %c36_89 = arith.constant 36 : index
    %158 = vector.load %arg11[%c24_88, %c36_89] : memref<64x64xf32, #tpu.memory_space<vmem>>, vector<8x8xf32>
    tpu.vector_store %arg11[%c24_88, %c36_89], %157 {strides = array<i32>} : memref<64x64xf32, #tpu.memory_space<vmem>>, vector<8x8xf32>,
    %159 = vector.extract_strided_slice %154 {offsets = [2, 0], sizes = [8, 4], strides = [1, 1]} : vector<10x8xf32> to vector<8x4xf32>
    %c24_90 = arith.constant 24 : index
    %c44_91 = arith.constant 44 : index
    %160 = vector.load %arg11[%c24_90, %c44_91] : memref<64x64xf32, #tpu.memory_space<vmem>>, vector<8x4xf32>
    tpu.vector_store %arg11[%c24_90, %c44_91], %159 {strides = array<i32>} : memref<64x64xf32, #tpu.memory_space<vmem>>, vector<8x4xf32>,
    %161 = vector.extract_strided_slice %22 {offsets = [9, 0, 0], sizes = [1, 10, 8], strides = [1, 1, 1]} : vector<16x10x8xf32> to vector<1x10x8xf32>
    %162 = vector.shape_cast %161 : vector<1x10x8xf32> to vector<10x8xf32>
    %163 = vector.extract_strided_slice %162 {offsets = [0, 4], sizes = [8, 4], strides = [1, 1]} : vector<10x8xf32> to vector<8x4xf32>
    %c24_92 = arith.constant 24 : index
    %c48_93 = arith.constant 48 : index
    %164 = vector.load %arg11[%c24_92, %c48_93] : memref<64x64xf32, #tpu.memory_space<vmem>>, vector<8x4xf32>
    tpu.vector_store %arg11[%c24_92, %c48_93], %163 {strides = array<i32>} : memref<64x64xf32, #tpu.memory_space<vmem>>, vector<8x4xf32>,
    %165 = vector.extract_strided_slice %162 {offsets = [1, 0], sizes = [8, 8], strides = [1, 1]} : vector<10x8xf32> to vector<8x8xf32>
    %c24_94 = arith.constant 24 : index
    %c52_95 = arith.constant 52 : index
    %166 = vector.load %arg11[%c24_94, %c52_95] : memref<64x64xf32, #tpu.memory_space<vmem>>, vector<8x8xf32>
    tpu.vector_store %arg11[%c24_94, %c52_95], %165 {strides = array<i32>} : memref<64x64xf32, #tpu.memory_space<vmem>>, vector<8x8xf32>,
    %167 = vector.extract_strided_slice %162 {offsets = [2, 0], sizes = [8, 4], strides = [1, 1]} : vector<10x8xf32> to vector<8x4xf32>
    %c24_96 = arith.constant 24 : index
    %c60_97 = arith.constant 60 : index
    %168 = vector.load %arg11[%c24_96, %c60_97] : memref<64x64xf32, #tpu.memory_space<vmem>>, vector<8x4xf32>
    tpu.vector_store %arg11[%c24_96, %c60_97], %167 {strides = array<i32>} : memref<64x64xf32, #tpu.memory_space<vmem>>, vector<8x4xf32>,
    %169 = vector.extract_strided_slice %22 {offsets = [8, 0, 0], sizes = [1, 10, 8], strides = [1, 1, 1]} : vector<16x10x8xf32> to vector<1x10x8xf32>
    %170 = vector.shape_cast %169 : vector<1x10x8xf32> to vector<10x8xf32>
    %171 = vector.extract_strided_slice %170 {offsets = [0, 4], sizes = [8, 4], strides = [1, 1]} : vector<10x8xf32> to vector<8x4xf32>
    %c32_98 = arith.constant 32 : index
    %c0_99 = arith.constant 0 : index
    %172 = vector.load %arg11[%c32_98, %c0_99] : memref<64x64xf32, #tpu.memory_space<vmem>>, vector<8x4xf32>
    tpu.vector_store %arg11[%c32_98, %c0_99], %171 {strides = array<i32>} : memref<64x64xf32, #tpu.memory_space<vmem>>, vector<8x4xf32>,
    %173 = vector.extract_strided_slice %170 {offsets = [1, 0], sizes = [8, 8], strides = [1, 1]} : vector<10x8xf32> to vector<8x8xf32>
    %c32_100 = arith.constant 32 : index
    %c4_101 = arith.constant 4 : index
    %174 = vector.load %arg11[%c32_100, %c4_101] : memref<64x64xf32, #tpu.memory_space<vmem>>, vector<8x8xf32>
    tpu.vector_store %arg11[%c32_100, %c4_101], %173 {strides = array<i32>} : memref<64x64xf32, #tpu.memory_space<vmem>>, vector<8x8xf32>,
    %175 = vector.extract_strided_slice %170 {offsets = [2, 0], sizes = [8, 4], strides = [1, 1]} : vector<10x8xf32> to vector<8x4xf32>
    %c32_102 = arith.constant 32 : index
    %c12_103 = arith.constant 12 : index
    %176 = vector.load %arg11[%c32_102, %c12_103] : memref<64x64xf32, #tpu.memory_space<vmem>>, vector<8x4xf32>
    tpu.vector_store %arg11[%c32_102, %c12_103], %175 {strides = array<i32>} : memref<64x64xf32, #tpu.memory_space<vmem>>, vector<8x4xf32>,
    %177 = vector.extract_strided_slice %22 {offsets = [9, 0, 0], sizes = [1, 10, 8], strides = [1, 1, 1]} : vector<16x10x8xf32> to vector<1x10x8xf32>
    %178 = vector.shape_cast %177 : vector<1x10x8xf32> to vector<10x8xf32>
    %179 = vector.extract_strided_slice %178 {offsets = [0, 4], sizes = [8, 4], strides = [1, 1]} : vector<10x8xf32> to vector<8x4xf32>
    %c32_104 = arith.constant 32 : index
    %c16_105 = arith.constant 16 : index
    %180 = vector.load %arg11[%c32_104, %c16_105] : memref<64x64xf32, #tpu.memory_space<vmem>>, vector<8x4xf32>
    tpu.vector_store %arg11[%c32_104, %c16_105], %179 {strides = array<i32>} : memref<64x64xf32, #tpu.memory_space<vmem>>, vector<8x4xf32>,
    %181 = vector.extract_strided_slice %178 {offsets = [1, 0], sizes = [8, 8], strides = [1, 1]} : vector<10x8xf32> to vector<8x8xf32>
    %c32_106 = arith.constant 32 : index
    %c20_107 = arith.constant 20 : index
    %182 = vector.load %arg11[%c32_106, %c20_107] : memref<64x64xf32, #tpu.memory_space<vmem>>, vector<8x8xf32>
    tpu.vector_store %arg11[%c32_106, %c20_107], %181 {strides = array<i32>} : memref<64x64xf32, #tpu.memory_space<vmem>>, vector<8x8xf32>,
    %183 = vector.extract_strided_slice %178 {offsets = [2, 0], sizes = [8, 4], strides = [1, 1]} : vector<10x8xf32> to vector<8x4xf32>
    %c32_108 = arith.constant 32 : index
    %c28_109 = arith.constant 28 : index
    %184 = vector.load %arg11[%c32_108, %c28_109] : memref<64x64xf32, #tpu.memory_space<vmem>>, vector<8x4xf32>
    tpu.vector_store %arg11[%c32_108, %c28_109], %183 {strides = array<i32>} : memref<64x64xf32, #tpu.memory_space<vmem>>, vector<8x4xf32>,
    %185 = vector.extract_strided_slice %22 {offsets = [10, 0, 0], sizes = [1, 10, 8], strides = [1, 1, 1]} : vector<16x10x8xf32> to vector<1x10x8xf32>
    %186 = vector.shape_cast %185 : vector<1x10x8xf32> to vector<10x8xf32>
    %187 = vector.extract_strided_slice %186 {offsets = [0, 4], sizes = [8, 4], strides = [1, 1]} : vector<10x8xf32> to vector<8x4xf32>
    %c32_110 = arith.constant 32 : index
    %c32_111 = arith.constant 32 : index
    %188 = vector.load %arg11[%c32_110, %c32_111] : memref<64x64xf32, #tpu.memory_space<vmem>>, vector<8x4xf32>
    tpu.vector_store %arg11[%c32_110, %c32_111], %187 {strides = array<i32>} : memref<64x64xf32, #tpu.memory_space<vmem>>, vector<8x4xf32>,
    %189 = vector.extract_strided_slice %186 {offsets = [1, 0], sizes = [8, 8], strides = [1, 1]} : vector<10x8xf32> to vector<8x8xf32>
    %c32_112 = arith.constant 32 : index
    %c36_113 = arith.constant 36 : index
    %190 = vector.load %arg11[%c32_112, %c36_113] : memref<64x64xf32, #tpu.memory_space<vmem>>, vector<8x8xf32>
    tpu.vector_store %arg11[%c32_112, %c36_113], %189 {strides = array<i32>} : memref<64x64xf32, #tpu.memory_space<vmem>>, vector<8x8xf32>,
    %191 = vector.extract_strided_slice %186 {offsets = [2, 0], sizes = [8, 4], strides = [1, 1]} : vector<10x8xf32> to vector<8x4xf32>
    %c32_114 = arith.constant 32 : index
    %c44_115 = arith.constant 44 : index
    %192 = vector.load %arg11[%c32_114, %c44_115] : memref<64x64xf32, #tpu.memory_space<vmem>>, vector<8x4xf32>
    tpu.vector_store %arg11[%c32_114, %c44_115], %191 {strides = array<i32>} : memref<64x64xf32, #tpu.memory_space<vmem>>, vector<8x4xf32>,
    %193 = vector.extract_strided_slice %22 {offsets = [11, 0, 0], sizes = [1, 10, 8], strides = [1, 1, 1]} : vector<16x10x8xf32> to vector<1x10x8xf32>
    %194 = vector.shape_cast %193 : vector<1x10x8xf32> to vector<10x8xf32>
    %195 = vector.extract_strided_slice %194 {offsets = [0, 4], sizes = [8, 4], strides = [1, 1]} : vector<10x8xf32> to vector<8x4xf32>
    %c32_116 = arith.constant 32 : index
    %c48_117 = arith.constant 48 : index
    %196 = vector.load %arg11[%c32_116, %c48_117] : memref<64x64xf32, #tpu.memory_space<vmem>>, vector<8x4xf32>
    tpu.vector_store %arg11[%c32_116, %c48_117], %195 {strides = array<i32>} : memref<64x64xf32, #tpu.memory_space<vmem>>, vector<8x4xf32>,
    %197 = vector.extract_strided_slice %194 {offsets = [1, 0], sizes = [8, 8], strides = [1, 1]} : vector<10x8xf32> to vector<8x8xf32>
    %c32_118 = arith.constant 32 : index
    %c52_119 = arith.constant 52 : index
    %198 = vector.load %arg11[%c32_118, %c52_119] : memref<64x64xf32, #tpu.memory_space<vmem>>, vector<8x8xf32>
    tpu.vector_store %arg11[%c32_118, %c52_119], %197 {strides = array<i32>} : memref<64x64xf32, #tpu.memory_space<vmem>>, vector<8x8xf32>,
    %199 = vector.extract_strided_slice %194 {offsets = [2, 0], sizes = [8, 4], strides = [1, 1]} : vector<10x8xf32> to vector<8x4xf32>
    %c32_120 = arith.constant 32 : index
    %c60_121 = arith.constant 60 : index
    %200 = vector.load %arg11[%c32_120, %c60_121] : memref<64x64xf32, #tpu.memory_space<vmem>>, vector<8x4xf32>
    tpu.vector_store %arg11[%c32_120, %c60_121], %199 {strides = array<i32>} : memref<64x64xf32, #tpu.memory_space<vmem>>, vector<8x4xf32>,
    %201 = vector.extract_strided_slice %22 {offsets = [10, 0, 0], sizes = [1, 10, 8], strides = [1, 1, 1]} : vector<16x10x8xf32> to vector<1x10x8xf32>
    %202 = vector.shape_cast %201 : vector<1x10x8xf32> to vector<10x8xf32>
    %203 = vector.extract_strided_slice %202 {offsets = [0, 4], sizes = [8, 4], strides = [1, 1]} : vector<10x8xf32> to vector<8x4xf32>
    %c40 = arith.constant 40 : index
    %c0_122 = arith.constant 0 : index
    %204 = vector.load %arg11[%c40, %c0_122] : memref<64x64xf32, #tpu.memory_space<vmem>>, vector<8x4xf32>
    tpu.vector_store %arg11[%c40, %c0_122], %203 {strides = array<i32>} : memref<64x64xf32, #tpu.memory_space<vmem>>, vector<8x4xf32>,
    %205 = vector.extract_strided_slice %202 {offsets = [1, 0], sizes = [8, 8], strides = [1, 1]} : vector<10x8xf32> to vector<8x8xf32>
    %c40_123 = arith.constant 40 : index
    %c4_124 = arith.constant 4 : index
    %206 = vector.load %arg11[%c40_123, %c4_124] : memref<64x64xf32, #tpu.memory_space<vmem>>, vector<8x8xf32>
    tpu.vector_store %arg11[%c40_123, %c4_124], %205 {strides = array<i32>} : memref<64x64xf32, #tpu.memory_space<vmem>>, vector<8x8xf32>,
    %207 = vector.extract_strided_slice %202 {offsets = [2, 0], sizes = [8, 4], strides = [1, 1]} : vector<10x8xf32> to vector<8x4xf32>
    %c40_125 = arith.constant 40 : index
    %c12_126 = arith.constant 12 : index
    %208 = vector.load %arg11[%c40_125, %c12_126] : memref<64x64xf32, #tpu.memory_space<vmem>>, vector<8x4xf32>
    tpu.vector_store %arg11[%c40_125, %c12_126], %207 {strides = array<i32>} : memref<64x64xf32, #tpu.memory_space<vmem>>, vector<8x4xf32>,
    %209 = vector.extract_strided_slice %22 {offsets = [11, 0, 0], sizes = [1, 10, 8], strides = [1, 1, 1]} : vector<16x10x8xf32> to vector<1x10x8xf32>
    %210 = vector.shape_cast %209 : vector<1x10x8xf32> to vector<10x8xf32>
    %211 = vector.extract_strided_slice %210 {offsets = [0, 4], sizes = [8, 4], strides = [1, 1]} : vector<10x8xf32> to vector<8x4xf32>
    %c40_127 = arith.constant 40 : index
    %c16_128 = arith.constant 16 : index
    %212 = vector.load %arg11[%c40_127, %c16_128] : memref<64x64xf32, #tpu.memory_space<vmem>>, vector<8x4xf32>
    tpu.vector_store %arg11[%c40_127, %c16_128], %211 {strides = array<i32>} : memref<64x64xf32, #tpu.memory_space<vmem>>, vector<8x4xf32>,
    %213 = vector.extract_strided_slice %210 {offsets = [1, 0], sizes = [8, 8], strides = [1, 1]} : vector<10x8xf32> to vector<8x8xf32>
    %c40_129 = arith.constant 40 : index
    %c20_130 = arith.constant 20 : index
    %214 = vector.load %arg11[%c40_129, %c20_130] : memref<64x64xf32, #tpu.memory_space<vmem>>, vector<8x8xf32>
    tpu.vector_store %arg11[%c40_129, %c20_130], %213 {strides = array<i32>} : memref<64x64xf32, #tpu.memory_space<vmem>>, vector<8x8xf32>,
    %215 = vector.extract_strided_slice %210 {offsets = [2, 0], sizes = [8, 4], strides = [1, 1]} : vector<10x8xf32> to vector<8x4xf32>
    %c40_131 = arith.constant 40 : index
    %c28_132 = arith.constant 28 : index
    %216 = vector.load %arg11[%c40_131, %c28_132] : memref<64x64xf32, #tpu.memory_space<vmem>>, vector<8x4xf32>
    tpu.vector_store %arg11[%c40_131, %c28_132], %215 {strides = array<i32>} : memref<64x64xf32, #tpu.memory_space<vmem>>, vector<8x4xf32>,
    %217 = vector.extract_strided_slice %22 {offsets = [12, 0, 0], sizes = [1, 10, 8], strides = [1, 1, 1]} : vector<16x10x8xf32> to vector<1x10x8xf32>
    %218 = vector.shape_cast %217 : vector<1x10x8xf32> to vector<10x8xf32>
    %219 = vector.extract_strided_slice %218 {offsets = [0, 4], sizes = [8, 4], strides = [1, 1]} : vector<10x8xf32> to vector<8x4xf32>
    %c40_133 = arith.constant 40 : index
    %c32_134 = arith.constant 32 : index
    %220 = vector.load %arg11[%c40_133, %c32_134] : memref<64x64xf32, #tpu.memory_space<vmem>>, vector<8x4xf32>
    tpu.vector_store %arg11[%c40_133, %c32_134], %219 {strides = array<i32>} : memref<64x64xf32, #tpu.memory_space<vmem>>, vector<8x4xf32>,
    %221 = vector.extract_strided_slice %218 {offsets = [1, 0], sizes = [8, 8], strides = [1, 1]} : vector<10x8xf32> to vector<8x8xf32>
    %c40_135 = arith.constant 40 : index
    %c36_136 = arith.constant 36 : index
    %222 = vector.load %arg11[%c40_135, %c36_136] : memref<64x64xf32, #tpu.memory_space<vmem>>, vector<8x8xf32>
    tpu.vector_store %arg11[%c40_135, %c36_136], %221 {strides = array<i32>} : memref<64x64xf32, #tpu.memory_space<vmem>>, vector<8x8xf32>,
    %223 = vector.extract_strided_slice %218 {offsets = [2, 0], sizes = [8, 4], strides = [1, 1]} : vector<10x8xf32> to vector<8x4xf32>
    %c40_137 = arith.constant 40 : index
    %c44_138 = arith.constant 44 : index
    %224 = vector.load %arg11[%c40_137, %c44_138] : memref<64x64xf32, #tpu.memory_space<vmem>>, vector<8x4xf32>
    tpu.vector_store %arg11[%c40_137, %c44_138], %223 {strides = array<i32>} : memref<64x64xf32, #tpu.memory_space<vmem>>, vector<8x4xf32>,
    %225 = vector.extract_strided_slice %22 {offsets = [13, 0, 0], sizes = [1, 10, 8], strides = [1, 1, 1]} : vector<16x10x8xf32> to vector<1x10x8xf32>
    %226 = vector.shape_cast %225 : vector<1x10x8xf32> to vector<10x8xf32>
    %227 = vector.extract_strided_slice %226 {offsets = [0, 4], sizes = [8, 4], strides = [1, 1]} : vector<10x8xf32> to vector<8x4xf32>
    %c40_139 = arith.constant 40 : index
    %c48_140 = arith.constant 48 : index
    %228 = vector.load %arg11[%c40_139, %c48_140] : memref<64x64xf32, #tpu.memory_space<vmem>>, vector<8x4xf32>
    tpu.vector_store %arg11[%c40_139, %c48_140], %227 {strides = array<i32>} : memref<64x64xf32, #tpu.memory_space<vmem>>, vector<8x4xf32>,
    %229 = vector.extract_strided_slice %226 {offsets = [1, 0], sizes = [8, 8], strides = [1, 1]} : vector<10x8xf32> to vector<8x8xf32>
    %c40_141 = arith.constant 40 : index
    %c52_142 = arith.constant 52 : index
    %230 = vector.load %arg11[%c40_141, %c52_142] : memref<64x64xf32, #tpu.memory_space<vmem>>, vector<8x8xf32>
    tpu.vector_store %arg11[%c40_141, %c52_142], %229 {strides = array<i32>} : memref<64x64xf32, #tpu.memory_space<vmem>>, vector<8x8xf32>,
    %231 = vector.extract_strided_slice %226 {offsets = [2, 0], sizes = [8, 4], strides = [1, 1]} : vector<10x8xf32> to vector<8x4xf32>
    %c40_143 = arith.constant 40 : index
    %c60_144 = arith.constant 60 : index
    %232 = vector.load %arg11[%c40_143, %c60_144] : memref<64x64xf32, #tpu.memory_space<vmem>>, vector<8x4xf32>
    tpu.vector_store %arg11[%c40_143, %c60_144], %231 {strides = array<i32>} : memref<64x64xf32, #tpu.memory_space<vmem>>, vector<8x4xf32>,
    %233 = vector.extract_strided_slice %22 {offsets = [12, 0, 0], sizes = [1, 10, 8], strides = [1, 1, 1]} : vector<16x10x8xf32> to vector<1x10x8xf32>
    %234 = vector.shape_cast %233 : vector<1x10x8xf32> to vector<10x8xf32>
    %235 = vector.extract_strided_slice %234 {offsets = [0, 4], sizes = [8, 4], strides = [1, 1]} : vector<10x8xf32> to vector<8x4xf32>
    %c48_145 = arith.constant 48 : index
    %c0_146 = arith.constant 0 : index
    %236 = vector.load %arg11[%c48_145, %c0_146] : memref<64x64xf32, #tpu.memory_space<vmem>>, vector<8x4xf32>
    tpu.vector_store %arg11[%c48_145, %c0_146], %235 {strides = array<i32>} : memref<64x64xf32, #tpu.memory_space<vmem>>, vector<8x4xf32>,
    %237 = vector.extract_strided_slice %234 {offsets = [1, 0], sizes = [8, 8], strides = [1, 1]} : vector<10x8xf32> to vector<8x8xf32>
    %c48_147 = arith.constant 48 : index
    %c4_148 = arith.constant 4 : index
    %238 = vector.load %arg11[%c48_147, %c4_148] : memref<64x64xf32, #tpu.memory_space<vmem>>, vector<8x8xf32>
    tpu.vector_store %arg11[%c48_147, %c4_148], %237 {strides = array<i32>} : memref<64x64xf32, #tpu.memory_space<vmem>>, vector<8x8xf32>,
    %239 = vector.extract_strided_slice %234 {offsets = [2, 0], sizes = [8, 4], strides = [1, 1]} : vector<10x8xf32> to vector<8x4xf32>
    %c48_149 = arith.constant 48 : index
    %c12_150 = arith.constant 12 : index
    %240 = vector.load %arg11[%c48_149, %c12_150] : memref<64x64xf32, #tpu.memory_space<vmem>>, vector<8x4xf32>
    tpu.vector_store %arg11[%c48_149, %c12_150], %239 {strides = array<i32>} : memref<64x64xf32, #tpu.memory_space<vmem>>, vector<8x4xf32>,
    %241 = vector.extract_strided_slice %22 {offsets = [13, 0, 0], sizes = [1, 10, 8], strides = [1, 1, 1]} : vector<16x10x8xf32> to vector<1x10x8xf32>
    %242 = vector.shape_cast %241 : vector<1x10x8xf32> to vector<10x8xf32>
    %243 = vector.extract_strided_slice %242 {offsets = [0, 4], sizes = [8, 4], strides = [1, 1]} : vector<10x8xf32> to vector<8x4xf32>
    %c48_151 = arith.constant 48 : index
    %c16_152 = arith.constant 16 : index
    %244 = vector.load %arg11[%c48_151, %c16_152] : memref<64x64xf32, #tpu.memory_space<vmem>>, vector<8x4xf32>
    tpu.vector_store %arg11[%c48_151, %c16_152], %243 {strides = array<i32>} : memref<64x64xf32, #tpu.memory_space<vmem>>, vector<8x4xf32>,
    %245 = vector.extract_strided_slice %242 {offsets = [1, 0], sizes = [8, 8], strides = [1, 1]} : vector<10x8xf32> to vector<8x8xf32>
    %c48_153 = arith.constant 48 : index
    %c20_154 = arith.constant 20 : index
    %246 = vector.load %arg11[%c48_153, %c20_154] : memref<64x64xf32, #tpu.memory_space<vmem>>, vector<8x8xf32>
    tpu.vector_store %arg11[%c48_153, %c20_154], %245 {strides = array<i32>} : memref<64x64xf32, #tpu.memory_space<vmem>>, vector<8x8xf32>,
    %247 = vector.extract_strided_slice %242 {offsets = [2, 0], sizes = [8, 4], strides = [1, 1]} : vector<10x8xf32> to vector<8x4xf32>
    %c48_155 = arith.constant 48 : index
    %c28_156 = arith.constant 28 : index
    %248 = vector.load %arg11[%c48_155, %c28_156] : memref<64x64xf32, #tpu.memory_space<vmem>>, vector<8x4xf32>
    tpu.vector_store %arg11[%c48_155, %c28_156], %247 {strides = array<i32>} : memref<64x64xf32, #tpu.memory_space<vmem>>, vector<8x4xf32>,
    %249 = vector.extract_strided_slice %22 {offsets = [14, 0, 0], sizes = [1, 10, 8], strides = [1, 1, 1]} : vector<16x10x8xf32> to vector<1x10x8xf32>
    %250 = vector.shape_cast %249 : vector<1x10x8xf32> to vector<10x8xf32>
    %251 = vector.extract_strided_slice %250 {offsets = [0, 4], sizes = [8, 4], strides = [1, 1]} : vector<10x8xf32> to vector<8x4xf32>
    %c48_157 = arith.constant 48 : index
    %c32_158 = arith.constant 32 : index
    %252 = vector.load %arg11[%c48_157, %c32_158] : memref<64x64xf32, #tpu.memory_space<vmem>>, vector<8x4xf32>
    tpu.vector_store %arg11[%c48_157, %c32_158], %251 {strides = array<i32>} : memref<64x64xf32, #tpu.memory_space<vmem>>, vector<8x4xf32>,
    %253 = vector.extract_strided_slice %250 {offsets = [1, 0], sizes = [8, 8], strides = [1, 1]} : vector<10x8xf32> to vector<8x8xf32>
    %c48_159 = arith.constant 48 : index
    %c36_160 = arith.constant 36 : index
    %254 = vector.load %arg11[%c48_159, %c36_160] : memref<64x64xf32, #tpu.memory_space<vmem>>, vector<8x8xf32>
    tpu.vector_store %arg11[%c48_159, %c36_160], %253 {strides = array<i32>} : memref<64x64xf32, #tpu.memory_space<vmem>>, vector<8x8xf32>,
    %255 = vector.extract_strided_slice %250 {offsets = [2, 0], sizes = [8, 4], strides = [1, 1]} : vector<10x8xf32> to vector<8x4xf32>
    %c48_161 = arith.constant 48 : index
    %c44_162 = arith.constant 44 : index
    %256 = vector.load %arg11[%c48_161, %c44_162] : memref<64x64xf32, #tpu.memory_space<vmem>>, vector<8x4xf32>
    tpu.vector_store %arg11[%c48_161, %c44_162], %255 {strides = array<i32>} : memref<64x64xf32, #tpu.memory_space<vmem>>, vector<8x4xf32>,
    %257 = vector.extract_strided_slice %22 {offsets = [15, 0, 0], sizes = [1, 10, 8], strides = [1, 1, 1]} : vector<16x10x8xf32> to vector<1x10x8xf32>
    %258 = vector.shape_cast %257 : vector<1x10x8xf32> to vector<10x8xf32>
    %259 = vector.extract_strided_slice %258 {offsets = [0, 4], sizes = [8, 4], strides = [1, 1]} : vector<10x8xf32> to vector<8x4xf32>
    %c48_163 = arith.constant 48 : index
    %c48_164 = arith.constant 48 : index
    %260 = vector.load %arg11[%c48_163, %c48_164] : memref<64x64xf32, #tpu.memory_space<vmem>>, vector<8x4xf32>
    tpu.vector_store %arg11[%c48_163, %c48_164], %259 {strides = array<i32>} : memref<64x64xf32, #tpu.memory_space<vmem>>, vector<8x4xf32>,
    %261 = vector.extract_strided_slice %258 {offsets = [1, 0], sizes = [8, 8], strides = [1, 1]} : vector<10x8xf32> to vector<8x8xf32>
    %c48_165 = arith.constant 48 : index
    %c52_166 = arith.constant 52 : index
    %262 = vector.load %arg11[%c48_165, %c52_166] : memref<64x64xf32, #tpu.memory_space<vmem>>, vector<8x8xf32>
    tpu.vector_store %arg11[%c48_165, %c52_166], %261 {strides = array<i32>} : memref<64x64xf32, #tpu.memory_space<vmem>>, vector<8x8xf32>,
    %263 = vector.extract_strided_slice %258 {offsets = [2, 0], sizes = [8, 4], strides = [1, 1]} : vector<10x8xf32> to vector<8x4xf32>
    %c48_167 = arith.constant 48 : index
    %c60_168 = arith.constant 60 : index
    %264 = vector.load %arg11[%c48_167, %c60_168] : memref<64x64xf32, #tpu.memory_space<vmem>>, vector<8x4xf32>
    tpu.vector_store %arg11[%c48_167, %c60_168], %263 {strides = array<i32>} : memref<64x64xf32, #tpu.memory_space<vmem>>, vector<8x4xf32>,
    %265 = vector.extract_strided_slice %22 {offsets = [14, 0, 0], sizes = [1, 10, 8], strides = [1, 1, 1]} : vector<16x10x8xf32> to vector<1x10x8xf32>
    %266 = vector.shape_cast %265 : vector<1x10x8xf32> to vector<10x8xf32>
    %267 = vector.extract_strided_slice %266 {offsets = [0, 4], sizes = [8, 4], strides = [1, 1]} : vector<10x8xf32> to vector<8x4xf32>
    %c56 = arith.constant 56 : index
    %c0_169 = arith.constant 0 : index
    %268 = vector.load %arg11[%c56, %c0_169] : memref<64x64xf32, #tpu.memory_space<vmem>>, vector<8x4xf32>
    tpu.vector_store %arg11[%c56, %c0_169], %267 {strides = array<i32>} : memref<64x64xf32, #tpu.memory_space<vmem>>, vector<8x4xf32>,
    %269 = vector.extract_strided_slice %266 {offsets = [1, 0], sizes = [8, 8], strides = [1, 1]} : vector<10x8xf32> to vector<8x8xf32>
    %c56_170 = arith.constant 56 : index
    %c4_171 = arith.constant 4 : index
    %270 = vector.load %arg11[%c56_170, %c4_171] : memref<64x64xf32, #tpu.memory_space<vmem>>, vector<8x8xf32>
    tpu.vector_store %arg11[%c56_170, %c4_171], %269 {strides = array<i32>} : memref<64x64xf32, #tpu.memory_space<vmem>>, vector<8x8xf32>,
    %271 = vector.extract_strided_slice %266 {offsets = [2, 0], sizes = [8, 4], strides = [1, 1]} : vector<10x8xf32> to vector<8x4xf32>
    %c56_172 = arith.constant 56 : index
    %c12_173 = arith.constant 12 : index
    %272 = vector.load %arg11[%c56_172, %c12_173] : memref<64x64xf32, #tpu.memory_space<vmem>>, vector<8x4xf32>
    tpu.vector_store %arg11[%c56_172, %c12_173], %271 {strides = array<i32>} : memref<64x64xf32, #tpu.memory_space<vmem>>, vector<8x4xf32>,
    %273 = vector.extract_strided_slice %22 {offsets = [15, 0, 0], sizes = [1, 10, 8], strides = [1, 1, 1]} : vector<16x10x8xf32> to vector<1x10x8xf32>
    %274 = vector.shape_cast %273 : vector<1x10x8xf32> to vector<10x8xf32>
    %275 = vector.extract_strided_slice %274 {offsets = [0, 4], sizes = [8, 4], strides = [1, 1]} : vector<10x8xf32> to vector<8x4xf32>
    %c56_174 = arith.constant 56 : index
    %c16_175 = arith.constant 16 : index
    %276 = vector.load %arg11[%c56_174, %c16_175] : memref<64x64xf32, #tpu.memory_space<vmem>>, vector<8x4xf32>
    tpu.vector_store %arg11[%c56_174, %c16_175], %275 {strides = array<i32>} : memref<64x64xf32, #tpu.memory_space<vmem>>, vector<8x4xf32>,
    %277 = vector.extract_strided_slice %274 {offsets = [1, 0], sizes = [8, 8], strides = [1, 1]} : vector<10x8xf32> to vector<8x8xf32>
    %c56_176 = arith.constant 56 : index
    %c20_177 = arith.constant 20 : index
    %278 = vector.load %arg11[%c56_176, %c20_177] : memref<64x64xf32, #tpu.memory_space<vmem>>, vector<8x8xf32>
    tpu.vector_store %arg11[%c56_176, %c20_177], %277 {strides = array<i32>} : memref<64x64xf32, #tpu.memory_space<vmem>>, vector<8x8xf32>,
    %279 = vector.extract_strided_slice %274 {offsets = [2, 0], sizes = [8, 4], strides = [1, 1]} : vector<10x8xf32> to vector<8x4xf32>
    %c56_178 = arith.constant 56 : index
    %c28_179 = arith.constant 28 : index
    %280 = vector.load %arg11[%c56_178, %c28_179] : memref<64x64xf32, #tpu.memory_space<vmem>>, vector<8x4xf32>
    tpu.vector_store %arg11[%c56_178, %c28_179], %279 {strides = array<i32>} : memref<64x64xf32, #tpu.memory_space<vmem>>, vector<8x4xf32>,
    %281 = vector.extract_strided_slice %40 {offsets = [0, 0, 0], sizes = [1, 10, 8], strides = [1, 1, 1]} : vector<2x10x8xf32> to vector<1x10x8xf32>
    %282 = vector.shape_cast %281 : vector<1x10x8xf32> to vector<10x8xf32>
    %283 = vector.extract_strided_slice %282 {offsets = [0, 4], sizes = [8, 4], strides = [1, 1]} : vector<10x8xf32> to vector<8x4xf32>
    %c56_180 = arith.constant 56 : index
    %c32_181 = arith.constant 32 : index
    %284 = vector.load %arg11[%c56_180, %c32_181] : memref<64x64xf32, #tpu.memory_space<vmem>>, vector<8x4xf32>
    tpu.vector_store %arg11[%c56_180, %c32_181], %283 {strides = array<i32>} : memref<64x64xf32, #tpu.memory_space<vmem>>, vector<8x4xf32>,
    %285 = vector.extract_strided_slice %282 {offsets = [1, 0], sizes = [8, 8], strides = [1, 1]} : vector<10x8xf32> to vector<8x8xf32>
    %c56_182 = arith.constant 56 : index
    %c36_183 = arith.constant 36 : index
    %286 = vector.load %arg11[%c56_182, %c36_183] : memref<64x64xf32, #tpu.memory_space<vmem>>, vector<8x8xf32>
    tpu.vector_store %arg11[%c56_182, %c36_183], %285 {strides = array<i32>} : memref<64x64xf32, #tpu.memory_space<vmem>>, vector<8x8xf32>,
    %287 = vector.extract_strided_slice %282 {offsets = [2, 0], sizes = [8, 4], strides = [1, 1]} : vector<10x8xf32> to vector<8x4xf32>
    %c56_184 = arith.constant 56 : index
    %c44_185 = arith.constant 44 : index
    %288 = vector.load %arg11[%c56_184, %c44_185] : memref<64x64xf32, #tpu.memory_space<vmem>>, vector<8x4xf32>
    tpu.vector_store %arg11[%c56_184, %c44_185], %287 {strides = array<i32>} : memref<64x64xf32, #tpu.memory_space<vmem>>, vector<8x4xf32>,
    %289 = vector.extract_strided_slice %40 {offsets = [1, 0, 0], sizes = [1, 10, 8], strides = [1, 1, 1]} : vector<2x10x8xf32> to vector<1x10x8xf32>
    %290 = vector.shape_cast %289 : vector<1x10x8xf32> to vector<10x8xf32>
    %291 = vector.extract_strided_slice %290 {offsets = [0, 4], sizes = [8, 4], strides = [1, 1]} : vector<10x8xf32> to vector<8x4xf32>
    %c56_186 = arith.constant 56 : index
    %c48_187 = arith.constant 48 : index
    %292 = vector.load %arg11[%c56_186, %c48_187] : memref<64x64xf32, #tpu.memory_space<vmem>>, vector<8x4xf32>
    tpu.vector_store %arg11[%c56_186, %c48_187], %291 {strides = array<i32>} : memref<64x64xf32, #tpu.memory_space<vmem>>, vector<8x4xf32>,
    %293 = vector.extract_strided_slice %290 {offsets = [1, 0], sizes = [8, 8], strides = [1, 1]} : vector<10x8xf32> to vector<8x8xf32>
    %c56_188 = arith.constant 56 : index
    %c52_189 = arith.constant 52 : index
    %294 = vector.load %arg11[%c56_188, %c52_189] : memref<64x64xf32, #tpu.memory_space<vmem>>, vector<8x8xf32>
    tpu.vector_store %arg11[%c56_188, %c52_189], %293 {strides = array<i32>} : memref<64x64xf32, #tpu.memory_space<vmem>>, vector<8x8xf32>,
    %295 = vector.extract_strided_slice %290 {offsets = [2, 0], sizes = [8, 4], strides = [1, 1]} : vector<10x8xf32> to vector<8x4xf32>
    %c56_190 = arith.constant 56 : index
    %c60_191 = arith.constant 60 : index
    %296 = vector.load %arg11[%c56_190, %c60_191] : memref<64x64xf32, #tpu.memory_space<vmem>>, vector<8x4xf32>
    tpu.vector_store %arg11[%c56_190, %c60_191], %295 {strides = array<i32>} : memref<64x64xf32, #tpu.memory_space<vmem>>, vector<8x4xf32>,
    %c0_192 = arith.constant 0 : index
    %c0_193 = arith.constant 0 : index
    %297 = vector.load %arg11[%c0_192, %c0_193] : memref<64x64xf32, #tpu.memory_space<vmem>>, vector<64x64xf32>
    %298 = arith.truncf %297 : vector<64x64xf32> to vector<64x64xbf16>
    %c0_194 = arith.constant 0 : index
    %c0_195 = arith.constant 0 : index
    %299 = vector.load %arg7[%c0_194, %c0_195] : memref<64x8xbf16, #tpu.memory_space<vmem>>, vector<64x8xbf16>
    %cst_196 = arith.constant dense<0.000000e+00> : vector<64x8xf32>
    %300 = tpu.matmul %298, %299, %cst_196 {dimension_numbers = #tpu.dot_dimension_numbers<[1], [0], [0], [1], [0, 0, 1, 1], [], []>} : vector<64x64xbf16>, vector<64x8xbf16>, vector<64x8xf32> -> vector<64x8xf32>
    %c0_197 = arith.constant 0 : index
    %c0_198 = arith.constant 0 : index
    %301 = vector.load %arg8[%c0_197, %c0_198] : memref<1x8xf32, #tpu.memory_space<vmem>>, vector<1x8xf32>
    %302 = vector.broadcast %301 : vector<1x8xf32> to vector<64x8xf32>
    %303 = arith.addf %300, %302 : vector<64x8xf32>
    %c0_199 = arith.constant 0 : index
    %c0_200 = arith.constant 0 : index
    %c0_201 = arith.constant 0 : index
    %304 = vector.load %arg9[%c0_199, %c0_200, %c0_201] : memref<1x64x8xf32, #tpu.memory_space<vmem>>, vector<1x64x8xf32>
    %305 = vector.shape_cast %304 : vector<1x64x8xf32> to vector<64x8xf32>
    %306 = vector.shape_cast %303 : vector<64x8xf32> to vector<1x64x8xf32>
    tpu.vector_store %arg9[%c0_199, %c0_200, %c0_201], %306 {strides = array<i32>} : memref<1x64x8xf32, #tpu.memory_space<vmem>>, vector<1x64x8xf32>,
    %cst_202 = arith.constant dense<0.000000e+00> : vector<8xf32>
    %307 = vector.multi_reduction <add>, %303, %cst_202 [0] : vector<64x8xf32> to vector<8xf32>
    %308 = vector.shape_cast %307 : vector<8xf32> to vector<1x8xf32>
    %cst_203 = arith.constant 6.400000e+01 : f32
    %309 = vector.broadcast %cst_203 : f32 to vector<1x8xf32>
    %310 = arith.divf %308, %309 : vector<1x8xf32>
    %311 = vector.broadcast %310 : vector<1x8xf32> to vector<64x8xf32>
    %312 = arith.subf %303, %311 : vector<64x8xf32>
    %313 = arith.mulf %312, %312 : vector<64x8xf32>
    %cst_204 = arith.constant dense<0.000000e+00> : vector<8xf32>
    %314 = vector.multi_reduction <add>, %313, %cst_204 [0] : vector<64x8xf32> to vector<8xf32>
    %315 = vector.shape_cast %314 : vector<8xf32> to vector<1x8xf32>
    %316 = tpu.concatenate %310, %315 in 0 : vector<1x8xf32>, vector<1x8xf32> -> vector<2x8xf32>
    %c0_205 = arith.constant 0 : index
    %c0_206 = arith.constant 0 : index
    %c0_207 = arith.constant 0 : index
    %c0_208 = arith.constant 0 : index
    %317 = vector.load %arg10[%c0_205, %c0_206, %c0_207, %c0_208] : memref<1x1x2x8xf32, #tpu.memory_space<vmem>>, vector<1x1x2x8xf32>
    %318 = vector.shape_cast %317 : vector<1x1x2x8xf32> to vector<2x8xf32>
    %319 = vector.shape_cast %316 : vector<2x8xf32> to vector<1x1x2x8xf32>
    tpu.vector_store %arg10[%c0_205, %c0_206, %c0_207, %c0_208], %319 {strides = array<i32>} : memref<1x1x2x8xf32, #tpu.memory_space<vmem>>, vector<1x1x2x8xf32>,
    return
  }
  func.func @transform_0(%arg0: i32, %arg1: i32) -> (i32, i32, i32, i32) {
    %c0_i32 = arith.constant 0 : i32
    %c0_i32_0 = arith.constant 0 : i32
    %c0_i32_1 = arith.constant 0 : i32
    return %arg0, %arg1, %c0_i32, %c0_i32_0 : i32, i32, i32, i32
  }
  func.func @transform_1(%arg0: i32, %arg1: i32) -> (i32, i32, i32, i32) {
    %c1_i32 = arith.constant 1 : i32
    %0 = arith.addi %arg1, %c1_i32 : i32
    %c8_i32 = arith.constant 8 : i32
    %1 = arith.muli %c8_i32, %0 : i32
    %c0_i32 = arith.constant 0 : i32
    %c0_i32_0 = arith.constant 0 : i32
    %c0_i32_1 = arith.constant 0 : i32
    return %arg0, %1, %c0_i32, %c0_i32_0 : i32, i32, i32, i32
  }
  func.func @transform_2(%arg0: i32, %arg1: i32) -> (i32, i32, i32) {
    %c0_i32 = arith.constant 0 : i32
    %c0_i32_0 = arith.constant 0 : i32
    %c0_i32_1 = arith.constant 0 : i32
    return %arg0, %c0_i32, %c0_i32_0 : i32, i32, i32
  }
  func.func @transform_3(%arg0: i32, %arg1: i32) -> (i32, i32) {
    %c0_i32 = arith.constant 0 : i32
    %c0_i32_0 = arith.constant 0 : i32
    %c0_i32_1 = arith.constant 0 : i32
    return %c0_i32, %c0_i32_0 : i32, i32
  }
  func.func @transform_4(%arg0: i32, %arg1: i32) -> (i32, i32) {
    %c0_i32 = arith.constant 0 : i32
    %c0_i32_0 = arith.constant 0 : i32
    %c0_i32_1 = arith.constant 0 : i32
    return %c0_i32, %c0_i32_0 : i32, i32
  }
  func.func @transform_5(%arg0: i32, %arg1: i32) -> (i32, i32) {
    %c0_i32 = arith.constant 0 : i32
    %c0_i32_0 = arith.constant 0 : i32
    %c0_i32_1 = arith.constant 0 : i32
    return %c0_i32, %c0_i32_0 : i32, i32
  }
  func.func @transform_6(%arg0: i32, %arg1: i32) -> (i32, i32) {
    %c0_i32 = arith.constant 0 : i32
    %c0_i32_0 = arith.constant 0 : i32
    %c0_i32_1 = arith.constant 0 : i32
    return %c0_i32, %c0_i32_0 : i32, i32
  }
  func.func @transform_7(%arg0: i32, %arg1: i32) -> (i32, i32, i32) {
    %c0_i32 = arith.constant 0 : i32
    %c0_i32_0 = arith.constant 0 : i32
    return %arg0, %arg1, %c0_i32 : i32, i32, i32
  }
  func.func @transform_8(%arg0: i32, %arg1: i32) -> (i32, i32, i32, i32) {
    %c0_i32 = arith.constant 0 : i32
    %c0_i32_0 = arith.constant 0 : i32
    %c0_i32_1 = arith.constant 0 : i32
    return %arg0, %arg1, %c0_i32, %c0_i32_0 : i32, i32, i32, i32
  }
}

module attributes {stable_mosaic.version = 11 : i64} {
  func.func @_bn_apply_kernel(%arg0: i32, %arg1: memref<128x8xf32, #tpu.memory_space<vmem>>, %arg2: memref<1x8xf32, #tpu.memory_space<vmem>>, %arg3: memref<1x8xf32, #tpu.memory_space<vmem>>, %arg4: memref<128x8xf32, #tpu.memory_space<vmem>>) attributes {dimension_semantics = [#tpu.dimension_semantics<parallel>], iteration_bounds = array<i64: 1>, scalar_prefetch = 0 : i64, scratch_operands = 0 : i64, tpu.core_type = #tpu.core_type<tc>, window_params = [{transform_indices = @transform_0, window_bounds = array<i64: 128, 8>}, {pipeline_mode = #tpu.pipeline_mode<synchronous>, transform_indices = @transform_1, window_bounds = array<i64: 1, 8>}, {pipeline_mode = #tpu.pipeline_mode<synchronous>, transform_indices = @transform_2, window_bounds = array<i64: 1, 8>}, {transform_indices = @transform_3, window_bounds = array<i64: 128, 8>}]} {
    %c0 = arith.constant 0 : index
    %c0_0 = arith.constant 0 : index
    %0 = vector.load %arg1[%c0, %c0_0] : memref<128x8xf32, #tpu.memory_space<vmem>>, vector<128x8xf32>
    %c0_1 = arith.constant 0 : index
    %c0_2 = arith.constant 0 : index
    %1 = vector.load %arg2[%c0_1, %c0_2] : memref<1x8xf32, #tpu.memory_space<vmem>>, vector<1x8xf32>
    %2 = vector.broadcast %1 : vector<1x8xf32> to vector<128x8xf32>
    %3 = arith.mulf %0, %2 : vector<128x8xf32>
    %c0_3 = arith.constant 0 : index
    %c0_4 = arith.constant 0 : index
    %4 = vector.load %arg3[%c0_3, %c0_4] : memref<1x8xf32, #tpu.memory_space<vmem>>, vector<1x8xf32>
    %5 = vector.broadcast %4 : vector<1x8xf32> to vector<128x8xf32>
    %6 = arith.addf %3, %5 : vector<128x8xf32>
    %c0_5 = arith.constant 0 : index
    %c0_6 = arith.constant 0 : index
    %7 = vector.load %arg4[%c0_5, %c0_6] : memref<128x8xf32, #tpu.memory_space<vmem>>, vector<128x8xf32>
    tpu.vector_store %arg4[%c0_5, %c0_6], %6 {strides = array<i32>} : memref<128x8xf32, #tpu.memory_space<vmem>>, vector<128x8xf32>,
    return
  }
  func.func @transform_0(%arg0: i32) -> (i32, i32) {
    %c0_i32 = arith.constant 0 : i32
    %c0_i32_0 = arith.constant 0 : i32
    return %arg0, %c0_i32 : i32, i32
  }
  func.func @transform_1(%arg0: i32) -> (i32, i32) {
    %c0_i32 = arith.constant 0 : i32
    %c0_i32_0 = arith.constant 0 : i32
    %c0_i32_1 = arith.constant 0 : i32
    return %c0_i32, %c0_i32_0 : i32, i32
  }
  func.func @transform_2(%arg0: i32) -> (i32, i32) {
    %c0_i32 = arith.constant 0 : i32
    %c0_i32_0 = arith.constant 0 : i32
    %c0_i32_1 = arith.constant 0 : i32
    return %c0_i32, %c0_i32_0 : i32, i32
  }
  func.func @transform_3(%arg0: i32) -> (i32, i32) {
    %c0_i32 = arith.constant 0 : i32
    %c0_i32_0 = arith.constant 0 : i32
    return %arg0, %c0_i32 : i32, i32
  }
}

</mosaic_0001>

<bundles_post_ra>
// kernel: unet_down_forward.3
= control target key start
LH: loop header
LB: loop body
LE: loop exit
PB: predicated region body
PF: predicated region fallthrough
CT: control target
= control target key end

     0   :  { %s336_s6 = smov 0   ;;  %s338_s7 = smov 0   ;;  %s410_s0 = inlined_call_operand.vmem [shape: f32[2,16,8,8], index: 0, kind: input, shape index: {}]   ;;  %s411_s1 = inlined_call_operand.vmem [shape: f32[2,1,8], index: 1, kind: output, shape index: {}]  }
   0x1   :  { %s340_s8 = smov 0  }
   0x2 LB: > { %s23_s9 = sadd.s32 1, %s319_s7  ;;  %p270_p0 = scmp.ge.s32.totalorder %s323_s8, 1  ;;  %s323_s8 = sphi %s340_s8, %s11_s8   ;;  %s319_s7 = sphi %s338_s7, %s413_s7   ;;  %s315_s6 = sphi %s336_s6, %s412_s6  }
   0x3   : > { %p25_p1 = scmp.ge.s32.totalorder %s23_s9, 2  ;;  %p106_p2 = scmp.lt.s32.totalorder %s323_s8, 3 }
   0x5   : > { %s415_s9 = smov (%p25_p1, %s23_s9), 0  ;;  %p107_p3 = pnand %p270_p0, %p106_p2 }
   0x6   : > { %p129_p4 = scmp.lt.s32.totalorder (!%p107_p3), %s315_s6, 1 }
   0x7   : > { %110 = sbr.rel (%p107_p3) target bundleno = 62 (0x3e), region = 24 }
   0xc   : > { %s417_s6 = smov (!%p129_p4, %s315_s6), 1  ;;  %vm145_vm0 = vcmask 57344   ;;  %vm164_vm1 = vcmask 64512   ;;  %v325_v0 = vmov 0.0  }
   0xd   : > { %s275_s10 = sshll.u32 %s417_s6, 7  ;;  %s357_s13 = scalar_lea.vmem %s411_s1, %s417_s6 }
   0xe   : > { %s362_s16 = scalar_lea.vmem %s410_s0, %s275_s10  ;;  %146 = vst.msk [vmem:[%s357_s13] sm:$0x1] %vm145_vm0, %v325_v0 }
   0xf   : > { %v147_v1 = vld [vmem:[%s362_s16] sm:$0xff]  ;;  %v148_v2 = vld [vmem:[%s362_s16 + $0x8] sm:$0xff]  ;;  %v149_v3 = vld [vmem:[%s362_s16 + $0x10] sm:$0xff] }
  0x10   : > { %v150_v4 = vld [vmem:[%s362_s16 + $0x18] sm:$0xff]  ;;  %v165_v5 = vsel %vm164_vm1, %v147_v1, 0.0  ;;  %v166_v6 = vsel %vm164_vm1, %v148_v2, 0.0  ;;  %v168_v7 = vsel %vm164_vm1, %v149_v3, 0.0  ;;  %v151_v8 = vld [vmem:[%s362_s16 + $0x20] sm:$0xff]  ;;  %v152_v11 = vld [vmem:[%s362_s16 + $0x28] sm:$0xff] }
  0x11   : > { %v167_v9 = vadd.f32 %v166_v6, %v165_v5  ;;  %v170_v10 = vsel %vm164_vm1, %v150_v4, 0.0  ;;  %v172_v13 = vsel %vm164_vm1, %v151_v8, 0.0  ;;  %v153_v14 = vld [vmem:[%s362_s16 + $0x30] sm:$0xff]  ;;  %v174_v16 = vsel %vm164_vm1, %v152_v11, 0.0  ;;  %v154_v17 = vld [vmem:[%s362_s16 + $0x38] sm:$0xff]  ;;  %v155_v20 = vld [vmem:[%s362_s16 + $0x40] sm:$0xff] }
  0x12   : > { %v176_v19 = vsel %vm164_vm1, %v153_v14, 0.0  ;;  %v178_v22 = vsel %vm164_vm1, %v154_v17, 0.0  ;;  %v156_v23 = vld [vmem:[%s362_s16 + $0x48] sm:$0xff]  ;;  %v180_v25 = vsel %vm164_vm1, %v155_v20, 0.0  ;;  %v157_v26 = vld [vmem:[%s362_s16 + $0x50] sm:$0xff]  ;;  %v158_v29 = vld [vmem:[%s362_s16 + $0x58] sm:$0xff] }
  0x13   : > { %v169_v12 = vadd.f32 %v168_v7, %v167_v9  ;;  %v182_v28 = vsel %vm164_vm1, %v156_v23, 0.0  ;;  %v184_v31 = vsel %vm164_vm1, %v157_v26, 0.0  ;;  %v159_v32 = vld [vmem:[%s362_s16 + $0x60] sm:$0xff]  ;;  %v186_v34 = vsel %vm164_vm1, %v158_v29, 0.0  ;;  %v160_v35 = vld [vmem:[%s362_s16 + $0x68] sm:$0xff]  ;;  %v161_v38 = vld [vmem:[%s362_s16 + $0x70] sm:$0xff] }
  0x14   : > { %v188_v37 = vsel %vm164_vm1, %v159_v32, 0.0  ;;  %v190_v40 = vsel %vm164_vm1, %v160_v35, 0.0  ;;  %v162_v41 = vld [vmem:[%s362_s16 + $0x78] sm:$0xff]  ;;  %v192_v43 = vsel %vm164_vm1, %v161_v38, 0.0 }
  0x15   : > { %v171_v15 = vadd.f32 %v170_v10, %v169_v12  ;;  %v194_v45 = vsel %vm164_vm1, %v162_v41, 0.0  ;;  %v163_v53 = vld [vmem:[%s357_s13] sm:$0x1] }
  0x17   : > { %v173_v18 = vadd.f32 %v172_v13, %v171_v15 }
  0x19   : > { %v175_v21 = vadd.f32 %v174_v16, %v173_v18 }
  0x1b   : > { %v177_v24 = vadd.f32 %v176_v19, %v175_v21 }
  0x1d   : > { %v179_v27 = vadd.f32 %v178_v22, %v177_v24 }
  0x1f   : > { %v181_v30 = vadd.f32 %v180_v25, %v179_v27 }
  0x21   : > { %v183_v33 = vadd.f32 %v182_v28, %v181_v30 }
  0x23   : > { %v185_v36 = vadd.f32 %v184_v31, %v183_v33 }
  0x25   : > { %v187_v39 = vadd.f32 %v186_v34, %v185_v36 }
  0x27   : > { %v189_v42 = vadd.f32 %v188_v37, %v187_v39 }
  0x29   : > { %v191_v44 = vadd.f32 %v190_v40, %v189_v42 }
  0x2b   : > { %v193_v46 = vadd.f32 %v192_v43, %v191_v44 }
  0x2d   : > { %v195_v47 = vadd.f32 %v194_v45, %v193_v46 }
  0x2f   : > { %v196_v48 = vrot.slane %v195_v47, 4 }
  0x31   : > { %v197_v49 = vadd.f32 %v196_v48, %v195_v47 }
  0x33   : > { %v198_v50 = vrot.slane %v197_v49, 2 }
  0x35   : > { %v199_v51 = vadd.f32 %v198_v50, %v197_v49 }
  0x37   : > { %v200_v52 = vrot.slane %v199_v51, 1 }
  0x39   : > { %v201_v54 = vadd.f32 %v200_v52, %v199_v51 }
  0x3b   : > { %v202_v55 = vadd.f32 %v201_v54, %v163_v53 }
  0x3d   : > { %204 = vst.msk [vmem:[%s357_s13] sm:$0x1] %vm145_vm0, %v202_v55 }
  0x3e PF: > { %s11_s8 = sadd.s32 1, %s323_s8   ;;  %s412_s6 = smov %s319_s7 }
  0x3f   : > { %p8_p5 = scmp.ge.s32.totalorder %s11_s8, 4   ;;  %s413_s7 = smov %s415_s9 }
  0x41   :  { %10 = sbr.rel (!%p8_p5) target bundleno = 2 (0x2), region = 58 }

// kernel: unet_down_forward.5
= control target key start
LH: loop header
LB: loop body
LE: loop exit
PB: predicated region body
PF: predicated region fallthrough
CT: control target
= control target key end

     0   :  { %vm76_vm0 = vcmask 64512   ;;  %s237_s0 = inlined_call_operand.vmem [shape: f32[128,8], index: 0, kind: input, shape index: {}]   ;;  %s238_s1 = inlined_call_operand.vmem [shape: f32[1,8], index: 1, kind: input, shape index: {}]   ;;  %s239_s2 = inlined_call_operand.vmem [shape: f32[1,8], index: 2, kind: input, shape index: {}]   ;;  %s240_s3 = inlined_call_operand.vmem [shape: f32[128,8], index: 3, kind: output, shape index: {}]  }
   0x1   :  { %v14_v0 = vld [vmem:[%s237_s0] sm:$0xff]  ;;  %v15_v4 = vld [vmem:[%s237_s0 + $0x8] sm:$0xff]  ;;  %v16_v5 = vld [vmem:[%s237_s0 + $0x10] sm:$0xff] }
   0x2   :  { %v97_v1 = vld [vmem:[%s238_s1] ss:$0 sm:$0xff]  ;;  %v17_v6 = vld [vmem:[%s237_s0 + $0x18] sm:$0xff]  ;;  %v19_v11 = vld [vmem:[%s237_s0 + $0x28] sm:$0xff] }
   0x3   :  { %v98_v2 = vld [vmem:[%s239_s2] ss:$0 sm:$0xff]  ;;  %v37_v3 = vmul.f32 %v97_v1, %v14_v0  ;;  %v38_v7 = vmul.f32 %v97_v1, %v15_v4  ;;  %v39_v8 = vmul.f32 %v97_v1, %v16_v5  ;;  %v40_v9 = vmul.f32 %v97_v1, %v17_v6  ;;  %v20_v12 = vld [vmem:[%s237_s0 + $0x30] sm:$0xff]  ;;  %v21_v17 = vld [vmem:[%s237_s0 + $0x38] sm:$0xff] }
   0x4   :  { %v18_v10 = vld [vmem:[%s237_s0 + $0x20] sm:$0xff]  ;;  %v42_v15 = vmul.f32 %v97_v1, %v19_v11  ;;  %v43_v16 = vmul.f32 %v97_v1, %v20_v12  ;;  %v23_v19 = vld [vmem:[%s237_s0 + $0x48] sm:$0xff]  ;;  %v44_v23 = vmul.f32 %v97_v1, %v21_v17  ;;  %v24_v24 = vld [vmem:[%s237_s0 + $0x50] sm:$0xff] }
   0x5   :  { %v60_v13 = vadd.f32 %v98_v2, %v37_v3  ;;  %v41_v14 = vmul.f32 %v97_v1, %v18_v10  ;;  %v22_v18 = vld [vmem:[%s237_s0 + $0x40] sm:$0xff]  ;;  %v61_v20 = vadd.f32 %v98_v2, %v38_v7  ;;  %v62_v21 = vadd.f32 %v98_v2, %v39_v8  ;;  %v25_v25 = vld [vmem:[%s237_s0 + $0x58] sm:$0xff]  ;;  %v27_v31 = vld [vmem:[%s237_s0 + $0x68] sm:$0xff] }
   0x6   :  { %v63_v22 = vadd.f32 %v98_v2, %v40_v9  ;;  %v26_v26 = vld [vmem:[%s237_s0 + $0x60] sm:$0xff]  ;;  %v65_v28 = vadd.f32 %v98_v2, %v42_v15  ;;  %v66_v29 = vadd.f32 %v98_v2, %v43_v16  ;;  %v45_v30 = vmul.f32 %v97_v1, %v22_v18  ;;  %v28_v32 = vld [vmem:[%s237_s0 + $0x70] sm:$0xff]  ;;  %v29_v33 = vld [vmem:[%s237_s0 + $0x78] sm:$0xff] }
   0x7   :  { %77 = vst.msk [vmem:[%s240_s3] sm:$0xff] %vm76_vm0, %v60_v13  ;;  %v64_v27 = vadd.f32 %v98_v2, %v41_v14  ;;  %78 = vst.msk [vmem:[%s240_s3 + $0x8] sm:$0xff] %vm76_vm0, %v61_v20  ;;  %v67_v34 = vadd.f32 %v98_v2, %v44_v23  ;;  %v46_v35 = vmul.f32 %v97_v1, %v23_v19 }
   0x8   :  { %79 = vst.msk [vmem:[%s240_s3 + $0x10] sm:$0xff] %vm76_vm0, %v62_v21  ;;  %80 = vst.msk [vmem:[%s240_s3 + $0x18] sm:$0xff] %vm76_vm0, %v63_v22  ;;  %v47_v36 = vmul.f32 %v97_v1, %v24_v24  ;;  %v48_v37 = vmul.f32 %v97_v1, %v25_v25  ;;  %v68_v38 = vadd.f32 %v98_v2, %v45_v30 }
   0x9   :  { %81 = vst.msk [vmem:[%s240_s3 + $0x20] sm:$0xff] %vm76_vm0, %v64_v27  ;;  %82 = vst.msk [vmem:[%s240_s3 + $0x28] sm:$0xff] %vm76_vm0, %v65_v28  ;;  %v49_v39 = vmul.f32 %v97_v1, %v26_v26  ;;  %v50_v40 = vmul.f32 %v97_v1, %v27_v31  ;;  %v51_v41 = vmul.f32 %v97_v1, %v28_v32 }
   0xa   :  { %83 = vst.msk [vmem:[%s240_s3 + $0x30] sm:$0xff] %vm76_vm0, %v66_v29  ;;  %84 = vst.msk [vmem:[%s240_s3 + $0x38] sm:$0xff] %vm76_vm0, %v67_v34  ;;  %v69_v42 = vadd.f32 %v98_v2, %v46_v35  ;;  %v70_v43 = vadd.f32 %v98_v2, %v47_v36  ;;  %v71_v44 = vadd.f32 %v98_v2, %v48_v37 }
   0xb   :  { %v52_v45 = vmul.f32 %v97_v1, %v29_v33  ;;  %85 = vst.msk [vmem:[%s240_s3 + $0x40] sm:$0xff] %vm76_vm0, %v68_v38  ;;  %v72_v46 = vadd.f32 %v98_v2, %v49_v39  ;;  %v73_v47 = vadd.f32 %v98_v2, %v50_v40  ;;  %v74_v48 = vadd.f32 %v98_v2, %v51_v41 }
   0xc   :  { %86 = vst.msk [vmem:[%s240_s3 + $0x48] sm:$0xff] %vm76_vm0, %v69_v42  ;;  %87 = vst.msk [vmem:[%s240_s3 + $0x50] sm:$0xff] %vm76_vm0, %v70_v43 }
   0xd   :  { %88 = vst.msk [vmem:[%s240_s3 + $0x58] sm:$0xff] %vm76_vm0, %v71_v44  ;;  %v75_v49 = vadd.f32 %v98_v2, %v52_v45  ;;  %89 = vst.msk [vmem:[%s240_s3 + $0x60] sm:$0xff] %vm76_vm0, %v72_v46 }
   0xe   :  { %90 = vst.msk [vmem:[%s240_s3 + $0x68] sm:$0xff] %vm76_vm0, %v73_v47  ;;  %91 = vst.msk [vmem:[%s240_s3 + $0x70] sm:$0xff] %vm76_vm0, %v74_v48 }
   0xf   :  { %92 = vst.msk [vmem:[%s240_s3 + $0x78] sm:$0xff] %vm76_vm0, %v75_v49 }

// kernel: unet_down_forward.4
= control target key start
LH: loop header
LB: loop body
LE: loop exit
PB: predicated region body
PF: predicated region fallthrough
CT: control target
= control target key end

     0   :  { %s2329_s27 = smov 0   ;;  %s2331_s28 = smov 0   ;;  %s3420_s0 = inlined_call_operand.vmem [shape: f32[2,18,10,8], index: 0, kind: input, shape index: {}, may-alias: {0,1}]   ;;  %s3421_s1 = inlined_call_operand.vmem [shape: f32[2,18,10,8], index: 1, kind: input, shape index: {}, may-alias: {0,1}]   ;;  %s3422_s2 = inlined_call_operand.vmem [shape: f32[2,1,8], index: 2, kind: input, shape index: {}]   ;;  %s3423_s3 = inlined_call_operand.vmem [shape: f32[1,8], index: 3, kind: input, shape index: {}]   ;;  %s3424_s4 = inlined_call_operand.vmem [shape: f32[1,8], index: 4, kind: input, shape index: {}]   ;;  %s3425_s5 = inlined_call_operand.vmem [shape: bf16[64,8], index: 5, kind: input, shape index: {}]   ;;  %s3426_s6 = inlined_call_operand.vmem [shape: f32[1,8], index: 6, kind: input, shape index: {}]   ;;  %s3427_s7 = inlined_call_operand.vmem [shape: f32[2,64,8], index: 7, kind: output, shape index: {0}]   ;;  %s3428_s8 = inlined_call_operand.vmem [shape: f32[2,1,2,8], index: 8, kind: output, shape index: {1}]  }
   0x1   :  { %s2333_s29 = smov 0  }
   0x2 LB: > { %s31_s30 = sadd.s32 1, %s2269_s28  ;;  %p1977_p0 = scmp.ge.s32.totalorder %s2273_s29, 1  ;;  %s2273_s29 = sphi %s2333_s29, %s19_s29   ;;  %s2269_s28 = sphi %s2331_s28, %s3445_s28   ;;  %s2265_s27 = sphi %s2329_s27, %s3444_s27  }
   0x3   : > { %p33_p1 = scmp.ge.s32.totalorder %s31_s30, 2  ;;  %p333_p2 = scmp.lt.s32.totalorder %s2273_s29, 3 }
   0x5   : > { %s3447_s30 = smov (%p33_p1, %s31_s30), 0  ;;  %p334_p3 = pnand %p1977_p0, %p333_p2 }
   0x6   : > { %p409_p4 = scmp.lt.s32.totalorder (!%p334_p3), %s2265_s27, 1  ;;  %s2275_s20 = smov (!%p334_p3), 4  }
   0x7   : > { %337 = sbr.rel (%p334_p3) target bundleno = 757 (0x2f5), region = 48  ;;  %s2276_s21 = smov (!%p334_p3), 124  }
   0x8   : > { %s2277_s22 = smov (!%p334_p3), 12   ;;  %s2278_s23 = smov (!%p334_p3), 20  }
   0x9   : > { %s2279_s24 = smov (!%p334_p3), 28   ;;  %s2280_s25 = smov (!%p334_p3), 36  }
   0xa   : > { %s2281_s26 = smov (!%p334_p3), 44   ;;  %s2282_s9 = smov (!%p334_p3), 52  }
   0xb   : > { %s2283_s10 = smov (!%p334_p3), 60  }
   0xc   : > { %v460_v0 = vld [vmem:[%s3423_s3] sm:$0x1]  ;;  %v497_v2 = vlaneseq  ;;  %s3449_s27 = smov (!%p409_p4, %s2265_s27), 1  ;;  %vm918_vm0 = vcmask 31744   ;;  %vm927_vm1 = vcmask 97313   ;;  %vm929_vm2 = vcmask 90144  }
   0xd   : > { %v2353_v1 = vld [vmem:[%s3424_s4] sm:$0x1]  ;;  %s2066_s13 = smul.u32 288, %s3449_s27  ;;  %s2365_s16 = scalar_lea.vmem %s3422_s2, %s3449_s27  ;;  %vm939_vm3 = vcmask 124000   ;;  %vm937_vm4 = vcmask 130146   ;;  %vm945_vm5 = vcmask 162944  }
   0xe   : > { %v463_v3 = vsub.f32 %v460_v0, %v2353_v1  ;;  %v2358_v4 = vshrl.u32 %v497_v2, 7  ;;  %v2376_v6 = vld [vmem:[%s2365_s16] ss:$0 sm:$0xff]  ;;  %vm956_vm6 = vcmask 221344   ;;  %vm954_vm7 = vcmask 228513  }
   0xf   : > { %s2373_s19 = scalar_lea.vmem %s3420_s0, %s2066_s13  ;;  %vm966_vm8 = vcmask 255200   ;;  %vm964_vm9 = vcmask 261346   ;;  %vm972_vm10 = vcmask 294144   ;;  %vm983_vm11 = vcmask 352544  }
  0x10   : > { %v499_v5 = vsub.s32 0, %v2358_v4  ;;  %v2383_v8 = vld [vmem:[%s2373_s19] sm:$0xff]  ;;  %v2386_v9 = vld [vmem:[%s2373_s19 + $0x8] sm:$0x3]  ;;  %v2443_v33 = vld [vmem:[%s2373_s19 + $0x30] sm:$0xff]  ;;  %vm981_vm12 = vcmask 359713  }
  0x11   : > { %v2389_v10 = vld [vmem:[%s2373_s19 + $0x20] sm:$0xff]  ;;  %v2400_v13 = vld [vmem:[%s2373_s19 + $0x28] sm:$0x3]  ;;  %v2460_v39 = vld [vmem:[%s2373_s19 + $0x10] sm:$0xff]  ;;  %vm3430_vm13 = vcmask 386400   ;;  %vm3429_vm14 = vcmask 392546  }
  0x12   : > { %v2380_v7 = vrot.slane %v463_v3, %v499_v5  ;;  %v2403_v14 = vld [vmem:[%s2373_s19 + $0x60] sm:$0xff]  ;;  %v2435_v27 = vld [vmem:[%s2373_s19 + $0x48] sm:$0x3]  ;;  %v2473_v59 = vld [vmem:[%s2373_s19 + $0x18] sm:$0x3]  ;;  %v2485_v63 = vrot.slane %v2353_v1, %v499_v5  ;;  %vm3431_vm15 = vcmask 425344  }
  0x13   : > { %v2406_v15 = vld [vmem:[%s2373_s19 + $0x40] sm:$0xff]  ;;  %v2440_v31 = vld [vmem:[%s2373_s19 + $0x68] sm:$0x3]  ;;  %v2480_v62 = vld [vmem:[%s2373_s19 + $0x38] sm:$0x3] }
  0x14   : > { %v2393_v11 = vmul.f32 %v2380_v7, %v2383_v8  ;;  %v2397_v12 = vmul.f32 %v2380_v7, %v2386_v9  ;;  %v2410_v16 = vmul.f32 %v2380_v7, %v2389_v10  ;;  %v2414_v17 = vmul.f32 %v2380_v7, %v2400_v13  ;;  %v2492_v2 = vld [vmem:[%s2373_s19 + $0x70] sm:$0xff] }
  0x15   : > { %v2422_v20 = vmul.f32 %v2380_v7, %v2403_v14  ;;  %v2430_v23 = vmul.f32 %v2380_v7, %v2406_v15  ;;  %v2447_v35 = vmul.f32 %v2380_v7, %v2435_v27  ;;  %v2451_v36 = vmul.f32 %v2380_v7, %v2440_v31 }
  0x16   : > { %v540_v18 = vmul.f32 %v2376_v6, %v2393_v11  ;;  %v541_v19 = vmul.f32 %v2376_v6, %v2397_v12  ;;  %v544_v21 = vmul.f32 %v2376_v6, %v2410_v16  ;;  %v545_v22 = vmul.f32 %v2376_v6, %v2414_v17 }
  0x17   : > { %v552_v26 = vmul.f32 %v2376_v6, %v2422_v20  ;;  %v548_v30 = vmul.f32 %v2376_v6, %v2430_v23  ;;  %v2455_v37 = vmul.f32 %v2380_v7, %v2443_v33  ;;  %v549_v38 = vmul.f32 %v2376_v6, %v2447_v35 }
  0x18   : > { %v1984_v24 = vmul.f32 -1.442695, %v540_v18  ;;  %v1985_v25 = vmul.f32 -1.442695, %v541_v19  ;;  %v1988_v28 = vmul.f32 -1.442695, %v544_v21  ;;  %v553_v40 = vmul.f32 %v2376_v6, %v2451_v36 }
  0x19   : > { %v1989_v29 = vmul.f32 -1.442695, %v545_v22  ;;  %v1996_v32 = vmul.f32 -1.442695, %v552_v26  ;;  %v1992_v34 = vmul.f32 -1.442695, %v548_v30  ;;  %v546_v41 = vmul.f32 %v2376_v6, %v2455_v37 }
  0x1a   : > { %2106 = vpow2.f32 %v1984_v24  ;;  %v2468_v42 = vmul.f32 %v2380_v7, %v2460_v39  ;;  %v1993_v43 = vmul.f32 -1.442695, %v549_v38  ;;  %v1997_v44 = vmul.f32 -1.442695, %v553_v40  ;;  %v2497_v18 = vld [vmem:[%s2373_s19 + $0x50] sm:$0xff] }
  0x1b   : > { %2108 = vpow2.f32 %v1985_v25  ;;  %v1990_v45 = vmul.f32 -1.442695, %v546_v41  ;;  %v2477_v61 = vmul.f32 %v2380_v7, %v2473_v59  ;;  %v2489_v0 = vmul.f32 %v2380_v7, %v2480_v62 }
  0x1c   : > { %2110 = vpow2.f32 %v1988_v28  ;;  %v542_v46 = vmul.f32 %v2376_v6, %v2468_v42  ;;  %v2501_v22 = vmul.f32 %v2380_v7, %v2492_v2  ;;  %v802_v1 = vmul.f32 %v2485_v63, %v2383_v8 }
  0x1d   : > { %2112 = vpow2.f32 %v1989_v29  ;;  %v543_v3 = vmul.f32 %v2376_v6, %v2477_v61  ;;  %v547_v5 = vmul.f32 %v2376_v6, %v2489_v0  ;;  %v2509_v24 = vmul.f32 %v2380_v7, %v2497_v18 }
  0x1e   : > { %2114 = vpow2.f32 %v1996_v32  ;;  %v1986_v54 = vmul.f32 -1.442695, %v542_v46  ;;  %v803_v30 = vmul.f32 %v2485_v63, %v2386_v9  ;;  %v806_v32 = vmul.f32 %v2485_v63, %v2389_v10 }
  0x1f   : > { %2116 = vpow2.f32 %v1992_v34  ;;  %v1987_v26 = vmul.f32 -1.442695, %v543_v3  ;;  %v554_v40 = vmul.f32 %v2376_v6, %v2501_v22  ;;  %v807_v9 = vmul.f32 %v2485_v63, %v2400_v13 }
  0x20   : > { %2118 = vpow2.f32 %v1993_v43 }
  0x21   : > { %2120 = vpow2.f32 %v1997_v44 }
  0x22   : > { %2122 = vpow2.f32 %v1990_v45  ;;  %v1991_v45 = vmul.f32 -1.442695, %v547_v5 }
  0x27   : > { %v2107_v47 = vpop.eup %2106 }
  0x28   : > { %v2109_v48 = vpop.eup %2108  ;;  %v668_v49 = vadd.f32 1.0, %v2107_v47 }
  0x29   : > { %v2111_v50 = vpop.eup %2110  ;;  %v669_v51 = vadd.f32 1.0, %v2109_v48 }
  0x2a   : > { %v2113_v52 = vpop.eup %2112  ;;  %2124 = vrcp.f32 %v668_v49  ;;  %v672_v53 = vadd.f32 1.0, %v2111_v50  ;;  %v1998_v50 = vmul.f32 -1.442695, %v554_v40 }
  0x2b   : > { %v2115_v55 = vpop.eup %2114  ;;  %2126 = vrcp.f32 %v669_v51  ;;  %v673_v56 = vadd.f32 1.0, %v2113_v52  ;;  %v814_v51 = vmul.f32 %v2485_v63, %v2403_v14  ;;  %v810_v52 = vmul.f32 %v2485_v63, %v2406_v15 }
  0x2c   : > { %v2117_v57 = vpop.eup %2116  ;;  %2128 = vrcp.f32 %v672_v53  ;;  %v680_v58 = vadd.f32 1.0, %v2115_v55 }
  0x2d   : > { %2130 = vrcp.f32 %v673_v56  ;;  %v676_v60 = vadd.f32 1.0, %v2117_v57  ;;  %v2119_v19 = vpop.eup %2118  ;;  %v2541_v57 = vld [vmem:[%s2373_s19 + $0x58] sm:$0x3] }
  0x2e   : > { %2132 = vpow2.f32 %v1986_v54  ;;  %v2121_v21 = vpop.eup %2120  ;;  %v677_v34 = vadd.f32 1.0, %v2119_v19  ;;  %v2545_v14 = vmul.f32 %v2380_v7, %v2541_v57 }
  0x2f   : > { %2134 = vrcp.f32 %v680_v58  ;;  %v2123_v4 = vpop.eup %2122  ;;  %v681_v10 = vadd.f32 1.0, %v2121_v21 }
  0x30   : > { %2136 = vrcp.f32 %v676_v60  ;;  %v674_v53 = vadd.f32 1.0, %v2123_v4  ;;  %v551_v58 = vmul.f32 %v2376_v6, %v2545_v14 }
  0x31   : > { %2138 = vpow2.f32 %v1987_v26 }
  0x32   : > { %2140 = vrcp.f32 %v677_v34  ;;  %v1995_v4 = vmul.f32 -1.442695, %v551_v58 }
  0x33   : > { %2142 = vpow2.f32 %v1991_v45 }
  0x34   : > { %2144 = vrcp.f32 %v681_v10 }
  0x35   : > { %2146 = vpow2.f32 %v1998_v50  ;;  %v809_v50 = vmul.f32 %v2485_v63, %v2480_v62  ;;  %v816_v62 = vmul.f32 %v2485_v63, %v2492_v2 }
  0x37   : > { %v2125_v25 = vpop.eup %2124 }
  0x38   : > { %v2127_v28 = vpop.eup %2126  ;;  %v764_v29 = vmul.f32 %v2125_v25, %v2393_v11  ;;  %v550_v11 = vmul.f32 %v2376_v6, %v2509_v24  ;;  %v811_v25 = vmul.f32 %v2485_v63, %v2435_v27 }
  0x39   : > { %v2129_v8 = vpop.eup %2128  ;;  %v765_v38 = vmul.f32 %v2127_v28, %v2397_v12 }
  0x3a   : > { %v2131_v41 = vpop.eup %2130  ;;  %v834_v43 = vadd.f32 %v802_v1, %v764_v29  ;;  %v768_v44 = vmul.f32 %v2129_v8, %v2410_v16  ;;  %v1994_v13 = vmul.f32 -1.442695, %v550_v11 }
  0x3b   : > { %v2133_v46 = vpop.eup %2132  ;;  %v835_v12 = vadd.f32 %v803_v30, %v765_v38  ;;  %v769_v16 = vmul.f32 %v2131_v41, %v2414_v17  ;;  %v808_v41 = vmul.f32 %v2485_v63, %v2443_v33 }
  0x3c   : > { %v2135_v47 = vpop.eup %2134  ;;  %921 = vrot.lane.b32.xlu1 %v834_v43, %s2275_s20  ;;  %915 = vrot.lane.b32.xlu0 %v834_v43, %s2276_s21  ;;  %v2526_v48 = vadd.f32 %v806_v32, %v768_v44  ;;  %v670_v56 = vadd.f32 1.0, %v2133_v46  ;;  %2148 = vpow2.f32 %v1994_v13  ;;  %v815_v32 = vmul.f32 %v2485_v63, %v2440_v31 }
  0x3d   : > { %v2137_v49 = vpop.eup %2136  ;;  %v2536_v17 = vadd.f32 %v807_v9, %v769_v16  ;;  %v776_v54 = vmul.f32 %v2135_v47, %v2422_v20  ;;  %2150 = vrcp.f32 %v674_v53  ;;  %v804_v31 = vmul.f32 %v2485_v63, %v2460_v39 }
  0x3e   : > { %v772_v55 = vmul.f32 %v2137_v49, %v2430_v23  ;;  %2152 = vrcp.f32 %v670_v56  ;;  %v2556_v23 = vld [vmem:[%s2373_s19 + $0x78] sm:$0x3]  ;;  %v2139_v60 = vpop.eup %2138 }
  0x3f   : > { %v2551_v15 = vadd.f32 %v814_v51, %v776_v54  ;;  %v2566_v3 = vmul.f32 %v2380_v7, %v2556_v23  ;;  %v2141_v19 = vpop.eup %2140  ;;  %v671_v26 = vadd.f32 1.0, %v2139_v60  ;;  %2154 = vpow2.f32 %v1995_v4  ;;  %v2647_v60 = vld [vmem:[%s2373_s19 + $0x88] sm:$0x3] }
  0x40   : > { %923 = vrot.lane.b32.xlu1 %v835_v12, %s2275_s20  ;;  %1022 = vrot.lane.b32.xlu0 %v2526_v48, %s2276_s21  ;;  %v2553_v20 = vadd.f32 %v810_v52, %v772_v55  ;;  %v2143_v21 = vpop.eup %2142  ;;  %v773_v5 = vmul.f32 %v2141_v19, %v2447_v35  ;;  %v812_v54 = vmul.f32 %v2485_v63, %v2497_v18 }
  0x41   : > { %v2145_v1 = vpop.eup %2144  ;;  %v555_v28 = vmul.f32 %v2376_v6, %v2566_v3  ;;  %v675_v34 = vadd.f32 1.0, %v2143_v21  ;;  %2156 = vrcp.f32 %v671_v26 }
  0x42   : > { %v2147_v29 = vpop.eup %2146  ;;  %v2581_v35 = vadd.f32 %v811_v25, %v773_v5  ;;  %v777_v27 = vmul.f32 %v2145_v1, %v2451_v36  ;;  %v813_v1 = vmul.f32 %v2485_v63, %v2541_v57  ;;  %v817_v57 = vmul.f32 %v2485_v63, %v2556_v23  ;;  %v2697_v23 = vld [vmem:[%s2373_s19 + $0xa8] sm:$0x3] }
  0x43   : > { %v1999_v38 = vmul.f32 -1.442695, %v555_v28  ;;  %2158 = vrcp.f32 %v675_v34 }
  0x44   : > { %1028 = vrot.lane.b32.xlu1 %v2536_v17, %s2275_s20  ;;  %1026 = vrot.lane.b32.xlu0 %v2526_v48, %s2275_s20  ;;  %v2592_v36 = vadd.f32 %v815_v32, %v777_v27  ;;  %v2708_v27 = vld [vmem:[%s2373_s19 + $0xe0] sm:$0xff] }
  0x45   : > { %2160 = vpow2.f32 %v1999_v38 }
  0x48   : > { %1190 = vrot.lane.b32.xlu1 %v2551_v15, %s2276_s21  ;;  %1106 = vrot.lane.b32.xlu0 %v2553_v20, %s2276_s21 }
  0x49   : > { %v2149_v30 = vpop.eup %2148 }
  0x4a   : > { %v2151_v8 = vpop.eup %2150  ;;  %v678_v44 = vadd.f32 1.0, %v2149_v30 }
  0x4b   : > { %v2153_v40 = vpop.eup %2152  ;;  %v770_v45 = vmul.f32 %v2151_v8, %v2455_v37  ;;  %v2606_v37 = vld [vmem:[%s2373_s19 + $0x80] sm:$0xff] }
  0x4c   : > { %933 = vrot.lane.b32.xlu1 %v835_v12, %s2277_s22  ;;  %931 = vrot.lane.b32.xlu0 %v834_v43, %s2277_s22  ;;  %v682_v43 = vadd.f32 1.0, %v2147_v29  ;;  %v766_v11 = vmul.f32 %v2153_v40, %v2468_v42  ;;  %v2155_v46 = vpop.eup %2154  ;;  %v2610_v9 = vmul.f32 %v2380_v7, %v2606_v37  ;;  %v805_v12 = vmul.f32 %v2485_v63, %v2473_v59  ;;  %v2711_v40 = vld [vmem:[%s2373_s19 + $0xc0] sm:$0xff] }
  0x4d   : > { %v2600_v33 = vadd.f32 %v808_v41, %v770_v45  ;;  %v679_v16 = vadd.f32 1.0, %v2155_v46  ;;  %v2725_v45 = vmul.f32 %v2380_v7, %v2711_v40 }
  0x4e   : > { %2162 = vrcp.f32 %v682_v43  ;;  %v836_v39 = vadd.f32 %v804_v31, %v766_v11  ;;  %v2157_v42 = vpop.eup %2156  ;;  %v556_v13 = vmul.f32 %v2376_v6, %v2610_v9  ;;  %v2717_v31 = vmul.f32 %v2380_v7, %v2708_v27 }
  0x4f   : > { %2164 = vrcp.f32 %v678_v44  ;;  %v767_v47 = vmul.f32 %v2157_v42, %v2477_v61 }
  0x50   : > { %1036 = vrot.lane.b32.xlu1 %v2536_v17, %s2277_s22  ;;  %1034 = vrot.lane.b32.xlu0 %v2526_v48, %s2277_s22  ;;  %v2159_v10 = vpop.eup %2158  ;;  %2166 = vrcp.f32 %v679_v16  ;;  %v2000_v55 = vmul.f32 -1.442695, %v556_v13  ;;  %v568_v42 = vmul.f32 %v2376_v6, %v2717_v31 }
  0x51   : > { %v837_v52 = vadd.f32 %v805_v12, %v767_v47  ;;  %v771_v61 = vmul.f32 %v2159_v10, %v2489_v0  ;;  %v564_v12 = vmul.f32 %v2376_v6, %v2725_v45 }
  0x52   : > { %v2161_v49 = vpop.eup %2160 }
  0x53   : > { %v683_v59 = vadd.f32 1.0, %v2161_v49  ;;  %v2634_v56 = vadd.f32 %v809_v50, %v771_v61  ;;  %v2008_v49 = vmul.f32 -1.442695, %v564_v12  ;;  %v2745_v50 = vld [vmem:[%s2373_s19 + $0x90] sm:$0xff] }
  0x54   : > { %1112 = vrot.lane.b32.xlu1 %v2581_v35, %s2275_s20  ;;  %1110 = vrot.lane.b32.xlu0 %v2553_v20, %s2275_s20 }
  0x55   : > { %2168 = vrcp.f32 %v683_v59 }
  0x56   : > { %2170 = vpow2.f32 %v2000_v55 }
  0x58   : > { %1196 = vrot.lane.b32.xlu1 %v2592_v36, %s2275_s20  ;;  %1194 = vrot.lane.b32.xlu0 %v2551_v15, %s2275_s20 }
  0x5b   : > { %v2163_v51 = vpop.eup %2162 }
  0x5c   : > { %1042 = vrot.lane.b32.xlu1 %v2600_v33, %s2277_s22  ;;  %942 = vrot.lane.b32.xlu0 %v836_v39, %s2277_s22  ;;  %v2165_v53 = vpop.eup %2164  ;;  %v778_v0 = vmul.f32 %v2163_v51, %v2501_v22  ;;  %v2655_v22 = vmul.f32 %v2380_v7, %v2647_v60 }
  0x5d   : > { %v774_v58 = vmul.f32 %v2165_v53, %v2509_v24  ;;  %v2658_v24 = vld [vmem:[%s2373_s19 + $0xa0] sm:$0xff]  ;;  %v2167_v19 = vpop.eup %2166  ;;  %v2769_v53 = vld [vmem:[%s2373_s19 + $0xc8] sm:$0x3] }
  0x5e   : > { %v2642_v2 = vadd.f32 %v816_v62, %v778_v0  ;;  %v2662_v21 = vmul.f32 %v2380_v7, %v2658_v24  ;;  %v775_v4 = vmul.f32 %v2167_v19, %v2545_v14  ;;  %v557_v5 = vmul.f32 %v2376_v6, %v2655_v22 }
  0x5f   : > { %v2644_v18 = vadd.f32 %v812_v54, %v774_v58  ;;  %v822_v62 = vmul.f32 %v2485_v63, %v2658_v24  ;;  %v2775_v54 = vmul.f32 %v2380_v7, %v2769_v53  ;;  %v2785_v58 = vld [vmem:[%s2373_s19 + $0xe8] sm:$0x3] }
  0x60   : > { %1120 = vrot.lane.b32.xlu1 %v2581_v35, %s2277_s22  ;;  %1118 = vrot.lane.b32.xlu0 %v2553_v20, %s2277_s22  ;;  %v560_v26 = vmul.f32 %v2376_v6, %v2662_v21  ;;  %v2677_v28 = vadd.f32 %v813_v1, %v775_v4  ;;  %v2001_v29 = vmul.f32 -1.442695, %v557_v5  ;;  %v2791_v19 = vmul.f32 %v2380_v7, %v2785_v58 }
  0x61   : > { %v565_v24 = vmul.f32 %v2376_v6, %v2775_v54 }
  0x62   : > { %v2169_v25 = vpop.eup %2168  ;;  %v2004_v32 = vmul.f32 -1.442695, %v560_v26  ;;  %2172 = vpow2.f32 %v2001_v29  ;;  %v569_v5 = vmul.f32 %v2376_v6, %v2791_v19 }
  0x63   : > { %v779_v14 = vmul.f32 %v2169_v25, %v2566_v3  ;;  %v2171_v30 = vpop.eup %2170  ;;  %v2701_v3 = vmul.f32 %v2380_v7, %v2697_v23  ;;  %v2009_v1 = vmul.f32 -1.442695, %v565_v24 }
  0x64   : > { %1204 = vrot.lane.b32.xlu1 %v2592_v36, %s2277_s22  ;;  %1202 = vrot.lane.b32.xlu0 %v2551_v15, %s2277_s22  ;;  %v684_v8 = vadd.f32 1.0, %v2171_v30  ;;  %2174 = vpow2.f32 %v2004_v32 }
  0x65   : > { %v2686_v34 = vadd.f32 %v817_v57, %v779_v14  ;;  %v561_v41 = vmul.f32 %v2376_v6, %v2701_v3  ;;  %v2013_v14 = vmul.f32 -1.442695, %v569_v5 }
  0x66   : > { %2176 = vrcp.f32 %v684_v8  ;;  %v2818_v8 = vld [vmem:[%s2373_s19 + $0x98] sm:$0x3] }
  0x67   : > { %v2005_v46 = vmul.f32 -1.442695, %v561_v41 }
  0x68   : > { %950 = vrot.lane.b32.xlu1 %v837_v52, %s2278_s23  ;;  %948 = vrot.lane.b32.xlu0 %v836_v39, %s2278_s23 }
  0x6c   : > { %1048 = vrot.lane.b32.xlu1 %v2634_v56, %s2278_s23  ;;  %1046 = vrot.lane.b32.xlu0 %v2600_v33, %s2278_s23 }
  0x6f   : > { %v2173_v38 = vpop.eup %2172 }
  0x70   : > { %1210 = vrot.lane.b32.xlu1 %v2642_v2, %s2277_s22  ;;  %1126 = vrot.lane.b32.xlu0 %v2644_v18, %s2277_s22  ;;  %v685_v44 = vadd.f32 1.0, %v2173_v38 }
  0x71   : > { %v2175_v43 = vpop.eup %2174 }
  0x72   : > { %2178 = vrcp.f32 %v685_v44  ;;  %v688_v47 = vadd.f32 1.0, %v2175_v43  ;;  %v2824_v44 = vmul.f32 %v2380_v7, %v2818_v8 }
  0x73   : > { %v2177_v11 = vpop.eup %2176  ;;  %2180 = vpow2.f32 %v2005_v46 }
  0x74   : > { %960 = vrot.lane.b32.xlu1 %v837_v52, %s2279_s24  ;;  %958 = vrot.lane.b32.xlu0 %v836_v39, %s2279_s24  ;;  %v818_v39 = vmul.f32 %v2485_v63, %v2606_v37  ;;  %v780_v10 = vmul.f32 %v2177_v11, %v2610_v9  ;;  %v2012_v37 = vmul.f32 -1.442695, %v568_v42  ;;  %2182 = vrcp.f32 %v688_v47 }
  0x75   : > { %v2753_v9 = vmul.f32 %v2380_v7, %v2745_v50  ;;  %v830_v47 = vmul.f32 %v2485_v63, %v2708_v27 }
  0x76   : > { %v2742_v16 = vadd.f32 %v818_v39, %v780_v10  ;;  %2184 = vpow2.f32 %v2012_v37  ;;  %v2834_v39 = vld [vmem:[%s2373_s19 + $0xb0] sm:$0xff] }
  0x77   : > { %2186 = vpow2.f32 %v2008_v49  ;;  %v558_v13 = vmul.f32 %v2376_v6, %v2753_v9  ;;  %v2846_v12 = vmul.f32 %v2380_v7, %v2834_v39 }
  0x78   : > { %1056 = vrot.lane.b32.xlu1 %v2634_v56, %s2279_s24  ;;  %1054 = vrot.lane.b32.xlu0 %v2600_v33, %s2279_s24 }
  0x79   : > { %v2002_v59 = vmul.f32 -1.442695, %v558_v13 }
  0x7b   : > { %2188 = vpow2.f32 %v2002_v59 }
  0x7c   : > { %1132 = vrot.lane.b32.xlu1 %v2677_v28, %s2278_s23  ;;  %1130 = vrot.lane.b32.xlu0 %v2644_v18, %s2278_s23 }
  0x7f   : > { %v2179_v51 = vpop.eup %2178 }
  0x80   : > { %1216 = vrot.lane.b32.xlu1 %v2686_v34, %s2278_s23  ;;  %1214 = vrot.lane.b32.xlu0 %v2642_v2, %s2278_s23  ;;  %v2181_v52 = vpop.eup %2180  ;;  %v781_v61 = vmul.f32 %v2179_v51, %v2655_v22 }
  0x81   : > { %v689_v0 = vadd.f32 1.0, %v2181_v52 }
  0x83   : > { %2190 = vrcp.f32 %v689_v0 }
  0x84   : > { %1063 = vrot.lane.b32.xlu1 %v2553_v20, %s2279_s24  ;;  %969 = vrot.lane.b32.xlu0 %v2526_v48, %s2279_s24 }
  0x88   : > { %1140 = vrot.lane.b32.xlu1 %v2677_v28, %s2279_s24  ;;  %1138 = vrot.lane.b32.xlu0 %v2644_v18, %s2279_s24 }
  0x8c   : > { %1224 = vrot.lane.b32.xlu1 %v2686_v34, %s2279_s24  ;;  %1222 = vrot.lane.b32.xlu0 %v2642_v2, %s2279_s24 }
  0x90   : > { %977 = vrot.lane.b32.xlu1 %v2536_v17, %s2280_s25  ;;  %975 = vrot.lane.b32.xlu0 %v2526_v48, %s2280_s25 }
  0x94   : > { %1070 = vrot.lane.b32.xlu1 %v2581_v35, %s2280_s25  ;;  %1068 = vrot.lane.b32.xlu0 %v2553_v20, %s2280_s25 }
  0x98   : > { %1231 = vrot.lane.b32.xlu1 %v2742_v16, %s2279_s24  ;;  %1147 = vrot.lane.b32.xlu0 %v2551_v15, %s2279_s24 }
  0x9c   : > { %987 = vrot.lane.b32.xlu1 %v2536_v17, %s2281_s26  ;;  %985 = vrot.lane.b32.xlu0 %v2526_v48, %s2281_s26  ;;  %v819_v17 = vmul.f32 %v2485_v63, %v2647_v60  ;;  %v2183_v48 = vpop.eup %2182 }
  0x9d   : > { %v784_v55 = vmul.f32 %v2183_v48, %v2662_v21 }
  0x9f   : > { %v2797_v21 = vadd.f32 %v822_v62, %v784_v55 }
  0xa0   : > { %1078 = vrot.lane.b32.xlu1 %v2581_v35, %s2281_s26  ;;  %1076 = vrot.lane.b32.xlu0 %v2553_v20, %s2281_s26  ;;  %v2185_v35 = vpop.eup %2184  ;;  %v2781_v20 = vadd.f32 %v819_v17, %v781_v61 }
  0xa1   : > { %v2187_v60 = vpop.eup %2186  ;;  %v696_v22 = vadd.f32 1.0, %v2185_v35 }
  0xa2   : > { %v692_v4 = vadd.f32 1.0, %v2187_v60  ;;  %v2189_v57 = vpop.eup %2188 }
  0xa3   : > { %2192 = vrcp.f32 %v696_v22  ;;  %v686_v32 = vadd.f32 1.0, %v2189_v57  ;;  %v2191_v38 = vpop.eup %2190 }
  0xa4   : > { %1154 = vrot.lane.b32.xlu1 %v2592_v36, %s2280_s25  ;;  %1152 = vrot.lane.b32.xlu0 %v2551_v15, %s2280_s25  ;;  %2194 = vrcp.f32 %v692_v4  ;;  %v820_v4 = vmul.f32 %v2485_v63, %v2745_v50 }
  0xa5   : > { %2196 = vpow2.f32 %v2009_v1 }
  0xa6   : > { %2198 = vpow2.f32 %v2013_v14  ;;  %v2898_v14 = vld [vmem:[%s2373_s19 + $0xb8] sm:$0x3] }
  0xa7   : > { %2200 = vrcp.f32 %v686_v32  ;;  %v2904_v32 = vmul.f32 %v2380_v7, %v2898_v14 }
  0xa8   : > { %1238 = vrot.lane.b32.xlu1 %v2781_v20, %s2280_s25  ;;  %1236 = vrot.lane.b32.xlu0 %v2742_v16, %s2280_s25 }
  0xac   : > { %1358 = vrot.lane.b32.xlu1 %v2797_v21, %s2276_s21  ;;  %1274 = vrot.lane.b32.xlu0 %v2742_v16, %s2276_s21 }
  0xae   : > { %v922_v25 = vpop.permute.xlu1 %921  ;;  %v916_v26 = vpop.permute.xlu0 %915 }
  0xaf   : > { %919 = vst.msk [vmem:[#allocation2] sm:$0xff] %vm918_vm0, %v916_v26 }
  0xb0   : > { %928 = vst.msk [vmem:[#allocation2 - $0x1] sm:$0xfe] %vm927_vm1, %v922_v25  ;;  %1085 = vrot.lane.b32.xlu1 %v2644_v18, %s2281_s26  ;;  %996 = vrot.lane.b32.xlu0 %v2600_v33, %s2281_s26  ;;  %v2193_v11 = vpop.eup %2192 }
  0xb1   : > { %v2195_v46 = vpop.eup %2194  ;;  %v792_v27 = vmul.f32 %v2193_v11, %v2717_v31 }
  0xb2   : > { %v924_v29 = vpop.permute.xlu1 %923  ;;  %v1023_v30 = vpop.permute.xlu0 %1022 }
  0xb3   : > { %930 = vst.msk [vmem:[#allocation2 + $0x7] sm:$0x1] %vm929_vm2, %v924_v29  ;;  %v2197_v37 = vpop.eup %2196  ;;  %v2862_v17 = vadd.f32 %v830_v47, %v792_v27 }
  0xb4   : > { %1025 = vst.msk [vmem:[#allocation2 + $0x8] sm:$0xff] %vm918_vm0, %v1023_v30  ;;  %1162 = vrot.lane.b32.xlu1 %v2592_v36, %s2281_s26  ;;  %1160 = vrot.lane.b32.xlu0 %v2551_v15, %s2281_s26  ;;  %v785_v15 = vmul.f32 %v2191_v38, %v2701_v3  ;;  %v823_v36 = vmul.f32 %v2485_v63, %v2697_v23  ;;  %v693_v52 = vadd.f32 1.0, %v2197_v37  ;;  %v2199_v61 = vpop.eup %2198 }
  0xb5   : > { %v826_v3 = vmul.f32 %v2485_v63, %v2711_v40  ;;  %v559_v23 = vmul.f32 %v2376_v6, %v2824_v44  ;;  %v788_v40 = vmul.f32 %v2195_v46, %v2725_v45  ;;  %v562_v45 = vmul.f32 %v2376_v6, %v2846_v12  ;;  %v2201_v0 = vpop.eup %2200  ;;  %v2917_v46 = vld [vmem:[%s2373_s19 + $0xd0] sm:$0xff] }
  0xb6   : > { %v1029_v41 = vpop.permute.xlu1 %1028  ;;  %v1027_v43 = vpop.permute.xlu0 %1026  ;;  %v2852_v49 = vadd.f32 %v823_v36, %v785_v15  ;;  %2202 = vrcp.f32 %v693_v52  ;;  %v697_v35 = vadd.f32 1.0, %v2199_v61  ;;  %v782_v24 = vmul.f32 %v2201_v0, %v2753_v9  ;;  %v2914_v15 = vld [vmem:[%s2373_s19 + $0xf0] sm:$0xff]  ;;  %v2972_v0 = vld [vmem:[%s2373_s19 + $0xf8] sm:$0x3] }
  0xb7   : > { %1033 = vst.msk [vmem:[#allocation2 + $0xf] sm:$0x1] %vm929_vm2, %v1029_v41  ;;  %v2864_v59 = vadd.f32 %v826_v3, %v788_v40  ;;  %v2003_v31 = vmul.f32 -1.442695, %v559_v23  ;;  %v2006_v55 = vmul.f32 -1.442695, %v562_v45 }
  0xb8   : > { %1032 = vst.msk [vmem:[#allocation2 + $0x7] sm:$0xfe] %vm927_vm1, %v1027_v43  ;;  %1246 = vrot.lane.b32.xlu1 %v2781_v20, %s2281_s26  ;;  %1244 = vrot.lane.b32.xlu0 %v2742_v16, %s2281_s26  ;;  %v2889_v25 = vadd.f32 %v820_v4, %v782_v24  ;;  %v827_v43 = vmul.f32 %v2485_v63, %v2769_v53  ;;  %v2959_v45 = vld [vmem:[%s2373_s19 + $0xd8] sm:$0x3] }
  0xb9   : > { %2204 = vpow2.f32 %v2003_v31  ;;  %v563_v53 = vmul.f32 %v2376_v6, %v2904_v32  ;;  %v2987_v4 = vmul.f32 %v2380_v7, %v2972_v0 }
  0xba   : > { %v1191_v42 = vpop.permute.xlu1 %1190  ;;  %v1107_v10 = vpop.permute.xlu0 %1106  ;;  %2206 = vrcp.f32 %v697_v35  ;;  %v2969_v35 = vmul.f32 %v2380_v7, %v2959_v45 }
  0xbb   : > { %1193 = vst.msk [vmem:[#allocation2 + $0x18] sm:$0xff] %vm918_vm0, %v1191_v42  ;;  %1109 = vst.msk [vmem:[#allocation2 + $0x10] sm:$0xff] %vm918_vm0, %v1107_v10  ;;  %2208 = vpow2.f32 %v2006_v55  ;;  %v2007_v37 = vmul.f32 -1.442695, %v563_v53 }
  0xbc   : > { %1280 = vrot.lane.b32.xlu1 %v2781_v20, %s2275_s20  ;;  %1278 = vrot.lane.b32.xlu0 %v2742_v16, %s2275_s20  ;;  %v567_v24 = vmul.f32 %v2376_v6, %v2969_v35 }
  0xbe   : > { %v934_v13 = vpop.permute.xlu1 %933  ;;  %v932_v51 = vpop.permute.xlu0 %931 }
  0xbf   : > { %940 = vst.msk [vmem:[#allocation2 + $0x6] sm:$0x3] %vm939_vm3, %v934_v13 }
  0xc0   : > { %938 = vst.msk [vmem:[#allocation2 - $0x2] sm:$0xfc] %vm937_vm4, %v932_v51  ;;  %1364 = vrot.lane.b32.xlu1 %v2852_v49, %s2275_s20  ;;  %1362 = vrot.lane.b32.xlu0 %v2797_v21, %s2275_s20 }
  0xc2   : > { %v1037_v48 = vpop.permute.xlu1 %1036  ;;  %v1035_v62 = vpop.permute.xlu0 %1034 }
  0xc3   : > { %1041 = vst.msk [vmem:[#allocation2 + $0xe] sm:$0x3] %vm939_vm3, %v1037_v48  ;;  %v2203_v50 = vpop.eup %2202 }
  0xc4   : > { %1040 = vst.msk [vmem:[#allocation2 + $0x6] sm:$0xfc] %vm937_vm4, %v1035_v62  ;;  %1526 = vrot.lane.b32.xlu1 %v2862_v17, %s2276_s21  ;;  %1442 = vrot.lane.b32.xlu0 %v2864_v59, %s2276_s21  ;;  %v789_v41 = vmul.f32 %v2203_v50, %v2775_v54  ;;  %v831_v54 = vmul.f32 %v2485_v63, %v2785_v58 }
  0xc5   : > { %v2938_v58 = vmul.f32 %v2380_v7, %v2917_v46 }
  0xc6   : > { %v1113_v60 = vpop.permute.xlu1 %1112  ;;  %v1111_v22 = vpop.permute.xlu0 %1110  ;;  %v2934_v47 = vadd.f32 %v827_v43, %v789_v41 }
  0xc7   : > { %1117 = vst.msk [vmem:[#allocation2 + $0x17] sm:$0x1] %vm929_vm2, %v1113_v60  ;;  %v2205_v57 = vpop.eup %2204  ;;  %v566_v13 = vmul.f32 %v2376_v6, %v2938_v58 }
  0xc8   : > { %1116 = vst.msk [vmem:[#allocation2 + $0xf] sm:$0xfe] %vm927_vm1, %v1111_v22  ;;  %1004 = vrot.lane.b32.xlu1 %v2634_v56, %s2282_s9  ;;  %1002 = vrot.lane.b32.xlu0 %v2600_v33, %s2282_s9  ;;  %v2207_v38 = vpop.eup %2206  ;;  %v687_v11 = vadd.f32 1.0, %v2205_v57 }
  0xc9   : > { %v2209_v36 = vpop.eup %2208  ;;  %v2010_v31 = vmul.f32 -1.442695, %v566_v13 }
  0xca   : > { %v1197_v1 = vpop.permute.xlu1 %1196  ;;  %v1195_v5 = vpop.permute.xlu0 %1194  ;;  %2210 = vrcp.f32 %v687_v11 }
  0xcb   : > { %1201 = vst.msk [vmem:[#allocation2 + $0x1f] sm:$0x1] %vm929_vm2, %v1197_v1 }
  0xcc   : > { %1200 = vst.msk [vmem:[#allocation2 + $0x17] sm:$0xfe] %vm927_vm1, %v1195_v5  ;;  %1092 = vrot.lane.b32.xlu1 %v2677_v28, %s2282_s9  ;;  %1090 = vrot.lane.b32.xlu0 %v2644_v18, %s2282_s9 }
  0xce   : > { %v1043_v9 = vpop.permute.xlu1 %1042  ;;  %v943_v26 = vpop.permute.xlu0 %942 }
  0xcf   : > { %1045 = vst.msk [vmem:[#allocation2 + $0x8] sm:$0xff] %vm945_vm5, %v1043_v9  ;;  %946 = vst.msk [vmem:[#allocation2] sm:$0xff] %vm945_vm5, %v943_v26  ;;  %v3001_v26 = vld [vmem:[%s2365_s16] ss:$0 sm:$0xff]  ;;  %s2032_s16 = sadd.s32 256, %s2066_s13 }
  0xd0   : > { %1253 = vrot.lane.b32.xlu1 %v2889_v25, %s2281_s26  ;;  %1169 = vrot.lane.b32.xlu0 %v2642_v2, %s2281_s26  ;;  %v571_v50 = vmul.f32 %v3001_v26, %v2987_v4  ;;  %s3039_s21 = scalar_lea.vmem %s3421_s1, %s2032_s16 }
  0xd1   : > { %v3051_v13 = vld [vmem:[%s3039_s21] sm:$0xff] }
  0xd2   : > { %v1121_v29 = vpop.permute.xlu1 %1120  ;;  %v1119_v30 = vpop.permute.xlu0 %1118  ;;  %v2015_v41 = vmul.f32 -1.442695, %v571_v50 }
  0xd3   : > { %1125 = vst.msk [vmem:[#allocation2 + $0x16] sm:$0x3] %vm939_vm3, %v1121_v29 }
  0xd4   : > { %1124 = vst.msk [vmem:[#allocation2 + $0xe] sm:$0xfc] %vm937_vm4, %v1119_v30  ;;  %1288 = vrot.lane.b32.xlu1 %v2781_v20, %s2277_s22  ;;  %1286 = vrot.lane.b32.xlu0 %v2742_v16, %s2277_s22  ;;  %v793_v16 = vmul.f32 %v2207_v38, %v2791_v19  ;;  %v2928_v20 = vmul.f32 %v2380_v7, %v2914_v15  ;;  %v690_v19 = vadd.f32 1.0, %v2209_v36  ;;  %v2102_v30 = vld [vmem:[%s3425_s5 + $0x18] sm:$0xff]  }
  0xd5   : > { %2042 = vmatprep.subr.bf16.mxu0 %v2102_v30  ;;  %2058 = vmatprep.subr.bf16.mxu1 %v2102_v30 }
  0xd6   : > { %v1205_v42 = vpop.permute.xlu1 %1204  ;;  %v1203_v10 = vpop.permute.xlu0 %1202  ;;  %v570_v27 = vmul.f32 %v2376_v6, %v2928_v20  ;;  %v2948_v40 = vadd.f32 %v831_v54, %v793_v16  ;;  %2212 = vrcp.f32 %v690_v19  ;;  %2043 = vmatpush3.bf16.msra.mxu0 %v2102_v30  ;;  %2062 = vmatpush3.bf16.msra.mxu1 %v2102_v30  ;;  %v2104_v19 = vld [vmem:[%s3425_s5 + $0x8] sm:$0xff]  }
  0xd7   : > { %1209 = vst.msk [vmem:[#allocation2 + $0x1e] sm:$0x3] %vm939_vm3, %v1205_v42  ;;  %2214 = vpow2.f32 %v2007_v37  ;;  %v2211_v55 = vpop.eup %2210  ;;  %v2105_v37 = vld [vmem:[%s3425_s5] sm:$0xff]  }
  0xd8   : > { %1208 = vst.msk [vmem:[#allocation2 + $0x16] sm:$0xfc] %vm937_vm4, %v1203_v10  ;;  %1372 = vrot.lane.b32.xlu1 %v2852_v49, %s2277_s22  ;;  %1370 = vrot.lane.b32.xlu0 %v2797_v21, %s2277_s22  ;;  %v2014_v61 = vmul.f32 -1.442695, %v570_v27  ;;  %v2103_v10 = vld [vmem:[%s3425_s5 + $0x10] sm:$0xff]  }
  0xd9   : > { %2044 = vmatprep.subr.bf16.mxu0 %v2103_v10  ;;  %2059 = vmatprep.subr.bf16.mxu1 %v2103_v10 }
  0xda   : > { %v951_v3 = vpop.permute.xlu1 %950  ;;  %v949_v23 = vpop.permute.xlu0 %948  ;;  %2216 = vpow2.f32 %v2014_v61  ;;  %2045 = vmatpush3.bf16.msra.mxu0 %v2103_v10  ;;  %2063 = vmatpush3.bf16.msra.mxu1 %v2103_v10 }
  0xdb   : > { %957 = vst.msk [vmem:[#allocation2 + $0x7] sm:$0x1] %vm956_vm6, %v951_v3  ;;  %2218 = vpow2.f32 %v2010_v31  ;;  %2046 = vmatprep.subr.bf16.mxu0 %v2104_v19  ;;  %2060 = vmatprep.subr.bf16.mxu1 %v2104_v19 }
  0xdc   : > { %955 = vst.msk [vmem:[#allocation2 - $0x1] sm:$0xfe] %vm954_vm7, %v949_v23  ;;  %1448 = vrot.lane.b32.xlu1 %v2934_v47, %s2275_s20  ;;  %1446 = vrot.lane.b32.xlu0 %v2864_v59, %s2275_s20 }
  0xde   : > { %v1049_v51 = vpop.permute.xlu1 %1048  ;;  %v1047_v52 = vpop.permute.xlu0 %1046  ;;  %2047 = vmatpush3.bf16.msra.mxu0 %v2104_v19  ;;  %2064 = vmatpush3.bf16.msra.mxu1 %v2104_v19 }
  0xdf   : > { %1053 = vst.msk [vmem:[#allocation2 + $0xf] sm:$0x1] %vm956_vm6, %v1049_v51  ;;  %2048 = vmatprep.subr.bf16.mxu0 %v2105_v37  ;;  %2061 = vmatprep.subr.bf16.mxu1 %v2105_v37 }
  0xe0   : > { %1052 = vst.msk [vmem:[#allocation2 + $0x7] sm:$0xfe] %vm954_vm7, %v1047_v52  ;;  %1532 = vrot.lane.b32.xlu1 %v2948_v40, %s2275_s20  ;;  %1530 = vrot.lane.b32.xlu0 %v2862_v17, %s2275_s20 }
  0xe2   : > { %v1211_v48 = vpop.permute.xlu1 %1210  ;;  %v1127_v62 = vpop.permute.xlu0 %1126  ;;  %2049 = vmatpush3.bf16.msra.mxu0 %v2105_v37  ;;  %2065 = vmatpush3.bf16.msra.mxu1 %v2105_v37 }
  0xe3   : > { %1213 = vst.msk [vmem:[#allocation2 + $0x18] sm:$0xff] %vm945_vm5, %v1211_v48  ;;  %1129 = vst.msk [vmem:[#allocation2 + $0x10] sm:$0xff] %vm945_vm5, %v1127_v62  ;;  %v2213_v1 = vpop.eup %2212  ;;  %v3061_v48 = vmul.f32 %v3051_v13, %v2380_v7 }
  0xe4   : > { %1014 = vrot.lane.b32.xlu1 %v2634_v56, %s2283_s10  ;;  %1012 = vrot.lane.b32.xlu0 %v2600_v33, %s2283_s10  ;;  %v821_v56 = vmul.f32 %v2485_v63, %v2818_v8  ;;  %v783_v33 = vmul.f32 %v2211_v55, %v2824_v44  ;;  %v786_v8 = vmul.f32 %v2213_v1, %v2846_v12  ;;  %v2011_v44 = vmul.f32 -1.442695, %v567_v24 }
  0xe6   : > { %v961_v60 = vpop.permute.xlu1 %960  ;;  %v959_v22 = vpop.permute.xlu0 %958  ;;  %v2997_v6 = vadd.f32 %v821_v56, %v783_v33  ;;  %2220 = vpow2.f32 %v2011_v44  ;;  %v874_v33 = vmul.f32 %v3001_v26, %v3061_v48 }
  0xe7   : > { %967 = vst.msk [vmem:[#allocation2 + $0x6] sm:$0x3] %vm966_vm8, %v961_v60 }
  0xe8   : > { %965 = vst.msk [vmem:[#allocation2 - $0x2] sm:$0xfc] %vm964_vm9, %v959_v22  ;;  %1100 = vrot.lane.b32.xlu1 %v2677_v28, %s2283_s10  ;;  %1098 = vrot.lane.b32.xlu0 %v2644_v18, %s2283_s10  ;;  %v824_v18 = vmul.f32 %v2485_v63, %v2834_v39  ;;  %v2215_v28 = vpop.eup %2214 }
  0xe9   : > { %v691_v39 = vadd.f32 1.0, %v2215_v28  ;;  %v2217_v38 = vpop.eup %2216  ;;  %v828_v28 = vmul.f32 %v2485_v63, %v2917_v46  ;;  %v3099_v46 = vld [vmem:[%s3039_s21 + $0x8] sm:$0x3] }
  0xea   : > { %v1057_v5 = vpop.permute.xlu1 %1056  ;;  %v1055_v9 = vpop.permute.xlu0 %1054  ;;  %v3014_v12 = vadd.f32 %v824_v18, %v786_v8  ;;  %v698_v42 = vadd.f32 1.0, %v2217_v38  ;;  %v2016_v8 = vmul.f32 -1.442695, %v874_v33 }
  0xeb   : > { %1061 = vst.msk [vmem:[#allocation2 + $0xe] sm:$0x3] %vm966_vm8, %v1057_v5  ;;  %v2219_v43 = vpop.eup %2218  ;;  %2222 = vrcp.f32 %v691_v39 }
  0xec   : > { %1060 = vst.msk [vmem:[#allocation2 + $0x6] sm:$0xfc] %vm964_vm9, %v1055_v9  ;;  %1176 = vrot.lane.b32.xlu1 %v2686_v34, %s2282_s9  ;;  %1174 = vrot.lane.b32.xlu0 %v2642_v2, %s2282_s9  ;;  %v694_v16 = vadd.f32 1.0, %v2219_v43  ;;  %2224 = vpow2.f32 %v2015_v41  ;;  %v832_v9 = vmul.f32 %v2485_v63, %v2914_v15  ;;  %v829_v43 = vmul.f32 %v2485_v63, %v2959_v45 }
  0xed   : > { %2226 = vrcp.f32 %v698_v42 }
  0xee   : > { %v1133_v57 = vpop.permute.xlu1 %1132  ;;  %v1131_v29 = vpop.permute.xlu0 %1130  ;;  %2228 = vrcp.f32 %v694_v16 }
  0xef   : > { %1137 = vst.msk [vmem:[#allocation2 + $0x17] sm:$0x1] %vm956_vm6, %v1133_v57 }
  0xf0   : > { %1136 = vst.msk [vmem:[#allocation2 + $0xf] sm:$0xfe] %vm954_vm7, %v1131_v29  ;;  %1260 = vrot.lane.b32.xlu1 %v2997_v6, %s2282_s9  ;;  %1258 = vrot.lane.b32.xlu0 %v2889_v25, %s2282_s9  ;;  %v3109_v29 = vmul.f32 %v3099_v46, %v2380_v7 }
  0xf2   : > { %v1217_v11 = vpop.permute.xlu1 %1216  ;;  %v1215_v36 = vpop.permute.xlu0 %1214 }
  0xf3   : > { %1221 = vst.msk [vmem:[#allocation2 + $0x1f] sm:$0x1] %vm956_vm6, %v1217_v11  ;;  %v2221_v27 = vpop.eup %2220  ;;  %v875_v11 = vmul.f32 %v3001_v26, %v3109_v29 }
  0xf4   : > { %1220 = vst.msk [vmem:[#allocation2 + $0x17] sm:$0xfe] %vm954_vm7, %v1215_v36  ;;  %1378 = vrot.lane.b32.xlu1 %v3014_v12, %s2277_s22  ;;  %1294 = vrot.lane.b32.xlu0 %v2889_v25, %s2277_s22  ;;  %v695_v31 = vadd.f32 1.0, %v2221_v27  ;;  %v3154_v27 = vld [vmem:[%s3039_s21 + $0x10] sm:$0xff] }
  0xf6   : > { %v1064_v54 = vpop.permute.xlu1 %1063  ;;  %v970_v53 = vpop.permute.xlu0 %969  ;;  %2230 = vrcp.f32 %v695_v31 }
  0xf7   : > { %1066 = vst.msk [vmem:[#allocation2 + $0x8] sm:$0xff] %vm972_vm10, %v1064_v54  ;;  %973 = vst.msk [vmem:[#allocation2] sm:$0xff] %vm972_vm10, %v970_v53 }
  0xf8   : > { %1456 = vrot.lane.b32.xlu1 %v2934_v47, %s2277_s22  ;;  %1454 = vrot.lane.b32.xlu0 %v2864_v59, %s2277_s22  ;;  %v2223_v61 = vpop.eup %2222 }
  0xf9   : > { %v2225_v62 = vpop.eup %2224  ;;  %v787_v22 = vmul.f32 %v2223_v61, %v2904_v32  ;;  %v3164_v61 = vmul.f32 %v3154_v27, %v2380_v7 }
  0xfa   : > { %v1141_v3 = vpop.permute.xlu1 %1140  ;;  %v1139_v23 = vpop.permute.xlu0 %1138  ;;  %v699_v56 = vadd.f32 1.0, %v2225_v62 }
  0xfb   : > { %1145 = vst.msk [vmem:[#allocation2 + $0x16] sm:$0x3] %vm966_vm8, %v1141_v3 }
  0xfc   : > { %1144 = vst.msk [vmem:[#allocation2 + $0xe] sm:$0xfc] %vm964_vm9, %v1139_v23  ;;  %1540 = vrot.lane.b32.xlu1 %v2948_v40, %s2277_s22  ;;  %1538 = vrot.lane.b32.xlu0 %v2862_v17, %s2277_s22  ;;  %2232 = vrcp.f32 %v699_v56 }
  0xfd   : > { %2234 = vpow2.f32 %v2016_v8 }
  0xfe   : > { %v1225_v51 = vpop.permute.xlu1 %1224  ;;  %v1223_v52 = vpop.permute.xlu0 %1222 }
  0xff   : > { %1229 = vst.msk [vmem:[#allocation2 + $0x1e] sm:$0x3] %vm966_vm8, %v1225_v51 }
 0x100   : > { %1228 = vst.msk [vmem:[#allocation2 + $0x16] sm:$0xfc] %vm964_vm9, %v1223_v52  ;;  %1184 = vrot.lane.b32.xlu1 %v2686_v34, %s2283_s10  ;;  %1182 = vrot.lane.b32.xlu0 %v2642_v2, %s2283_s10  ;;  %v825_v34 = vmul.f32 %v2485_v63, %v2898_v14  ;;  %v2227_v2 = vpop.eup %2226 }
 0x101   : > { %v2229_v24 = vpop.eup %2228  ;;  %v794_v32 = vmul.f32 %v2227_v2, %v2928_v20 }
 0x102   : > { %v978_v55 = vpop.permute.xlu1 %977  ;;  %v976_v60 = vpop.permute.xlu0 %975  ;;  %v3076_v14 = vadd.f32 %v825_v34, %v787_v22  ;;  %v790_v18 = vmul.f32 %v2229_v24, %v2938_v58  ;;  %v876_v22 = vmul.f32 %v3001_v26, %v3164_v61  ;;  %v906_v24 = vmul.f32 %v3051_v13, %v2485_v63 }
 0x103   : > { %984 = vst.msk [vmem:[#allocation2 + $0x7] sm:$0x1] %vm983_vm11, %v978_v55  ;;  %v3094_v15 = vadd.f32 %v832_v9, %v794_v32  ;;  %v2231_v39 = vpop.eup %2230 }
 0x104   : > { %982 = vst.msk [vmem:[#allocation2 - $0x1] sm:$0xfe] %vm981_vm12, %v976_v60  ;;  %1268 = vrot.lane.b32.xlu1 %v2997_v6, %s2283_s10  ;;  %1266 = vrot.lane.b32.xlu0 %v2889_v25, %s2283_s10  ;;  %v3096_v20 = vadd.f32 %v828_v28, %v790_v18  ;;  %v791_v41 = vmul.f32 %v2231_v39, %v2969_v35 }
 0x105   : > { %v833_v35 = vmul.f32 %v2485_v63, %v2972_v0 }
 0x106   : > { %v1071_v1 = vpop.permute.xlu1 %1070  ;;  %v1069_v5 = vpop.permute.xlu0 %1068 }
 0x107   : > { %1075 = vst.msk [vmem:[#allocation2 + $0xf] sm:$0x1] %vm983_vm11, %v1071_v1  ;;  %v2018_v1 = vmul.f32 -1.442695, %v876_v22 }
 0x108   : > { %1074 = vst.msk [vmem:[#allocation2 + $0x7] sm:$0xfe] %vm981_vm12, %v1069_v5  ;;  %1300 = vrot.lane.b32.xlu1 %v2997_v6, %s2278_s23  ;;  %1298 = vrot.lane.b32.xlu0 %v2889_v25, %s2278_s23 }
 0x109   : > { %v2233_v36 = vpop.eup %2232 }
 0x10a   : > { %v1232_v44 = vpop.permute.xlu1 %1231  ;;  %v1148_v50 = vpop.permute.xlu0 %1147  ;;  %v795_v45 = vmul.f32 %v2233_v36, %v2987_v4 }
 0x10b   : > { %1234 = vst.msk [vmem:[#allocation2 + $0x18] sm:$0xff] %vm972_vm10, %v1232_v44  ;;  %1150 = vst.msk [vmem:[#allocation2 + $0x10] sm:$0xff] %vm972_vm10, %v1148_v50  ;;  %v2235_v16 = vpop.eup %2234 }
 0x10c   : > { %1384 = vrot.lane.b32.xlu1 %v3076_v14, %s2278_s23  ;;  %1382 = vrot.lane.b32.xlu0 %v3014_v12, %s2278_s23  ;;  %v3139_v19 = vadd.f32 %v833_v35, %v795_v45  ;;  %v890_v4 = vadd.f32 1.0, %v2235_v16 }
 0x10e   : > { %v988_v58 = vpop.permute.xlu1 %987  ;;  %v986_v57 = vpop.permute.xlu0 %985 }
 0x10f   : > { %994 = vst.msk [vmem:[#allocation2 + $0x6] sm:$0x3] %vm3430_vm13, %v988_v58 }
 0x110   : > { %992 = vst.msk [vmem:[#allocation2 - $0x2] sm:$0xfc] %vm3429_vm14, %v986_v57  ;;  %1546 = vrot.lane.b32.xlu1 %v3094_v15, %s2277_s22  ;;  %1462 = vrot.lane.b32.xlu0 %v3096_v20, %s2277_s22  ;;  %s2033_s22 = sshll.u32 %s3449_s27, 6 }
 0x112   : > { %v1079_v30 = vpop.permute.xlu1 %1078  ;;  %v1077_v38 = vpop.permute.xlu0 %1076 }
 0x113   : > { %1083 = vst.msk [vmem:[#allocation2 + $0xe] sm:$0x3] %vm3430_vm13, %v1079_v30 }
 0x114   : > { %1082 = vst.msk [vmem:[#allocation2 + $0x6] sm:$0xfc] %vm3429_vm14, %v1077_v38  ;;  %1308 = vrot.lane.b32.xlu1 %v2997_v6, %s2279_s24  ;;  %1306 = vrot.lane.b32.xlu0 %v2889_v25, %s2279_s24  ;;  %v3128_v25 = vadd.f32 %v829_v43, %v791_v41  ;;  %v2017_v6 = vmul.f32 -1.442695, %v875_v11 }
 0x116   : > { %v1155_v42 = vpop.permute.xlu1 %1154  ;;  %v1153_v10 = vpop.permute.xlu0 %1152  ;;  %2236 = vpow2.f32 %v2017_v6 }
 0x117   : > { %1159 = vst.msk [vmem:[#allocation2 + $0x17] sm:$0x1] %vm983_vm11, %v1155_v42  ;;  %2238 = vrcp.f32 %v890_v4 }
 0x118   : > { %1158 = vst.msk [vmem:[#allocation2 + $0xf] sm:$0xfe] %vm981_vm12, %v1153_v10  ;;  %1392 = vrot.lane.b32.xlu1 %v3076_v14, %s2279_s24  ;;  %1390 = vrot.lane.b32.xlu0 %v3014_v12, %s2279_s24 }
 0x11a   : > { %v1239_v54 = vpop.permute.xlu1 %1238  ;;  %v1237_v53 = vpop.permute.xlu0 %1236 }
 0x11b   : > { %1243 = vst.msk [vmem:[#allocation2 + $0x1f] sm:$0x1] %vm983_vm11, %v1239_v54  ;;  %v908_v54 = vmul.f32 %v3154_v27, %v2485_v63 }
 0x11c   : > { %1242 = vst.msk [vmem:[#allocation2 + $0x17] sm:$0xfe] %vm981_vm12, %v1237_v53  ;;  %1468 = vrot.lane.b32.xlu1 %v3128_v25, %s2278_s23  ;;  %1466 = vrot.lane.b32.xlu0 %v3096_v20, %s2278_s23 }
 0x11e   : > { %v1359_v0 = vpop.permute.xlu1 %1358  ;;  %v1275_v3 = vpop.permute.xlu0 %1274 }
 0x11f   : > { %1361 = vst.msk [vmem:[#allocation2 + $0x28] sm:$0xff] %vm918_vm0, %v1359_v0  ;;  %1277 = vst.msk [vmem:[#allocation2 + $0x20] sm:$0xff] %vm918_vm0, %v1275_v3 }
 0x120   : > { %1552 = vrot.lane.b32.xlu1 %v3139_v19, %s2278_s23  ;;  %1550 = vrot.lane.b32.xlu0 %v3094_v15, %s2278_s23 }
 0x122   : > { %v1086_v23 = vpop.permute.xlu1 %1085  ;;  %v997_v37 = vpop.permute.xlu0 %996 }
 0x123   : > { %1088 = vst.msk [vmem:[#allocation2 + $0x8] sm:$0xff] %vm3431_vm15, %v1086_v23  ;;  %1000 = vst.msk [vmem:[#allocation2] sm:$0xff] %vm3431_vm15, %v997_v37  ;;  %v2237_v31 = vpop.eup %2236 }
 0x124   : > { %1399 = vrot.lane.b32.xlu1 %v2864_v59, %s2279_s24  ;;  %1315 = vrot.lane.b32.xlu0 %v2797_v21, %s2279_s24  ;;  %v891_v60 = vadd.f32 1.0, %v2237_v31  ;;  %v2239_v34 = vpop.eup %2238 }
 0x125   : > { %v902_v33 = vmul.f32 %v2239_v34, %v3061_v48  ;;  %v3192_v48 = vld [vmem:[%s3039_s21 + $0x18] sm:$0x3] }
 0x126   : > { %v1163_v51 = vpop.permute.xlu1 %1162  ;;  %v1161_v52 = vpop.permute.xlu0 %1160  ;;  %2240 = vrcp.f32 %v891_v60  ;;  %v3202_v28 = vmul.f32 %v3192_v48, %v2380_v7 }
 0x127   : > { %1167 = vst.msk [vmem:[#allocation2 + $0x16] sm:$0x3] %vm3430_vm13, %v1163_v51  ;;  %v3189_v9 = vadd.f32 %v906_v24, %v902_v33  ;;  %2242 = vpow2.f32 %v2018_v1 }
 0x128   : > { %1166 = vst.msk [vmem:[#allocation2 + $0xe] sm:$0xfc] %vm3429_vm14, %v1161_v52  ;;  %1476 = vrot.lane.b32.xlu1 %v3128_v25, %s2279_s24  ;;  %1474 = vrot.lane.b32.xlu0 %v3096_v20, %s2279_s24  ;;  %v877_v50 = vmul.f32 %v3001_v26, %v3202_v28 }
 0x12a   : > { %v1247_v62 = vpop.permute.xlu1 %1246  ;;  %v1245_v55 = vpop.permute.xlu0 %1244 }
 0x12b   : > { %1251 = vst.msk [vmem:[#allocation2 + $0x1e] sm:$0x3] %vm3430_vm13, %v1247_v62  ;;  %vm1008_vm13 = vcmask 490913  }
 0x12c   : > { %1250 = vst.msk [vmem:[#allocation2 + $0x16] sm:$0xfc] %vm3429_vm14, %v1245_v55  ;;  %1560 = vrot.lane.b32.xlu1 %v3139_v19, %s2279_s24  ;;  %1558 = vrot.lane.b32.xlu0 %v3094_v15, %s2279_s24  ;;  %vm1010_vm14 = vcmask 483744  }
 0x12e   : > { %v1281_v2 = vpop.permute.xlu1 %1280  ;;  %v1279_v56 = vpop.permute.xlu0 %1278 }
 0x12f   : > { %1285 = vst.msk [vmem:[#allocation2 + $0x27] sm:$0x1] %vm929_vm2, %v1281_v2 }
 0x130   : > { %1284 = vst.msk [vmem:[#allocation2 + $0x1f] sm:$0xfe] %vm927_vm1, %v1279_v56  ;;  %1322 = vrot.lane.b32.xlu1 %v2852_v49, %s2280_s25  ;;  %1320 = vrot.lane.b32.xlu0 %v2797_v21, %s2280_s25 }
 0x132   : > { %v1365_v5 = vpop.permute.xlu1 %1364  ;;  %v1363_v32 = vpop.permute.xlu0 %1362 }
 0x133   : > { %1369 = vst.msk [vmem:[#allocation2 + $0x2f] sm:$0x1] %vm929_vm2, %v1365_v5  ;;  %v2241_v58 = vpop.eup %2240 }
 0x134   : > { %1368 = vst.msk [vmem:[#allocation2 + $0x27] sm:$0xfe] %vm927_vm1, %v1363_v32  ;;  %1406 = vrot.lane.b32.xlu1 %v2934_v47, %s2280_s25  ;;  %1404 = vrot.lane.b32.xlu0 %v2864_v59, %s2280_s25  ;;  %v903_v7 = vmul.f32 %v2241_v58, %v3109_v29  ;;  %v2243_v26 = vpop.eup %2242 }
 0x136   : > { %v1527_v13 = vpop.permute.xlu1 %1526  ;;  %v1443_v18 = vpop.permute.xlu0 %1442 }
 0x137   : > { %1529 = vst.msk [vmem:[#allocation2 + $0x38] sm:$0xff] %vm918_vm0, %v1527_v13  ;;  %1445 = vst.msk [vmem:[#allocation2 + $0x30] sm:$0xff] %vm918_vm0, %v1443_v18  ;;  %vm1020_vm0 = vcmask 517600  }
 0x138   : > { %1567 = vrot.lane.b32.xlu1 %v3189_v9, %s2279_s24  ;;  %1483 = vrot.lane.b32.xlu0 %v2862_v17, %s2279_s24 }
 0x13a   : > { %v1005_v8 = vpop.permute.xlu1 %1004  ;;  %v1003_v44 = vpop.permute.xlu0 %1002 }
 0x13b   : > { %1011 = vst.msk [vmem:[#allocation2 + $0x7] sm:$0x1] %vm1010_vm14, %v1005_v8 }
 0x13c   : > { %1009 = vst.msk [vmem:[#allocation2 - $0x1] sm:$0xfe] %vm1008_vm13, %v1003_v44  ;;  %1330 = vrot.lane.b32.xlu1 %v2852_v49, %s2281_s26  ;;  %1328 = vrot.lane.b32.xlu0 %v2797_v21, %s2281_s26  ;;  %v907_v21 = vmul.f32 %v3099_v46, %v2485_v63  ;;  %v2019_v49 = vmul.f32 -1.442695, %v877_v50 }
 0x13e   : > { %v1093_v57 = vpop.permute.xlu1 %1092  ;;  %v1091_v39 = vpop.permute.xlu0 %1090  ;;  %2244 = vpow2.f32 %v2019_v49 }
 0x13f   : > { %1097 = vst.msk [vmem:[#allocation2 + $0xf] sm:$0x1] %vm1010_vm14, %v1093_v57 }
 0x140   : > { %1096 = vst.msk [vmem:[#allocation2 + $0x7] sm:$0xfe] %vm1008_vm13, %v1091_v39  ;;  %1414 = vrot.lane.b32.xlu1 %v2934_v47, %s2281_s26  ;;  %1412 = vrot.lane.b32.xlu0 %v2864_v59, %s2281_s26  ;;  %v911_v59 = vadd.f32 %v907_v21, %v903_v7  ;;  %v892_v47 = vadd.f32 1.0, %v2243_v26 }
 0x142   : > { %v1254_v30 = vpop.permute.xlu1 %1253  ;;  %v1170_v38 = vpop.permute.xlu0 %1169  ;;  %2246 = vrcp.f32 %v892_v47 }
 0x143   : > { %1256 = vst.msk [vmem:[#allocation2 + $0x18] sm:$0xff] %vm3431_vm15, %v1254_v30  ;;  %1172 = vst.msk [vmem:[#allocation2 + $0x10] sm:$0xff] %vm3431_vm15, %v1170_v38  ;;  %vm1018_vm15 = vcmask 523746  }
 0x144   : > { %1490 = vrot.lane.b32.xlu1 %v2948_v40, %s2280_s25  ;;  %1488 = vrot.lane.b32.xlu0 %v2862_v17, %s2280_s25 }
 0x146   : > { %v1289_v29 = vpop.permute.xlu1 %1288  ;;  %v1287_v41 = vpop.permute.xlu0 %1286 }
 0x147   : > { %1293 = vst.msk [vmem:[#allocation2 + $0x26] sm:$0x3] %vm939_vm3, %v1289_v29 }
 0x148   : > { %1292 = vst.msk [vmem:[#allocation2 + $0x1e] sm:$0xfc] %vm937_vm4, %v1287_v41  ;;  %1574 = vrot.lane.b32.xlu1 %v911_v59, %s2280_s25  ;;  %1572 = vrot.lane.b32.xlu0 %v3189_v9, %s2280_s25 }
 0x14a   : > { %v1373_v46 = vpop.permute.xlu1 %1372  ;;  %v1371_v43 = vpop.permute.xlu0 %1370 }
 0x14b   : > { %1377 = vst.msk [vmem:[#allocation2 + $0x2e] sm:$0x3] %vm939_vm3, %v1373_v46  ;;  %v2245_v42 = vpop.eup %2244 }
 0x14c   : > { %1376 = vst.msk [vmem:[#allocation2 + $0x26] sm:$0xfc] %vm937_vm4, %v1371_v43  ;;  %1421 = vrot.lane.b32.xlu1 %v3096_v20, %s2281_s26  ;;  %1337 = vrot.lane.b32.xlu0 %v3014_v12, %s2281_s26  ;;  %v893_v35 = vadd.f32 1.0, %v2245_v42 }
 0x14e   : > { %v1449_v11 = vpop.permute.xlu1 %1448  ;;  %v1447_v36 = vpop.permute.xlu0 %1446  ;;  %2248 = vrcp.f32 %v893_v35 }
 0x14f   : > { %1453 = vst.msk [vmem:[#allocation2 + $0x37] sm:$0x1] %vm929_vm2, %v1449_v11  ;;  %v2247_v6 = vpop.eup %2246 }
 0x150   : > { %1452 = vst.msk [vmem:[#allocation2 + $0x2f] sm:$0xfe] %vm927_vm1, %v1447_v36  ;;  %1498 = vrot.lane.b32.xlu1 %v2948_v40, %s2281_s26  ;;  %1496 = vrot.lane.b32.xlu0 %v2862_v17, %s2281_s26  ;;  %v904_v17 = vmul.f32 %v2247_v6, %v3164_v61 }
 0x152   : > { %v1533_v10 = vpop.permute.xlu1 %1532  ;;  %v1531_v45 = vpop.permute.xlu0 %1530  ;;  %v912_v0 = vadd.f32 %v908_v54, %v904_v17 }
 0x153   : > { %1537 = vst.msk [vmem:[#allocation2 + $0x3f] sm:$0x1] %vm929_vm2, %v1533_v10  ;;  %vm3432_vm2 = vcmask 386400  }
 0x154   : > { %1536 = vst.msk [vmem:[#allocation2 + $0x37] sm:$0xfe] %vm927_vm1, %v1531_v45  ;;  %1582 = vrot.lane.b32.xlu1 %v911_v59, %s2281_s26  ;;  %1580 = vrot.lane.b32.xlu0 %v3189_v9, %s2281_s26  ;;  %vm1661_vm1 = vcmask 523264  }
 0x156   : > { %v1015_v40 = vpop.permute.xlu1 %1014  ;;  %v1013_v16 = vpop.permute.xlu0 %1012 }
 0x157   : > { %1021 = vst.msk [vmem:[#allocation2 + $0x6] sm:$0x3] %vm1020_vm0, %v1015_v40 }
 0x158   : > { %1019 = vst.msk [vmem:[#allocation2 - $0x2] sm:$0xfc] %vm1018_vm15, %v1013_v16  ;;  %1344 = vrot.lane.b32.xlu1 %v3076_v14, %s2282_s9  ;;  %1342 = vrot.lane.b32.xlu0 %v3014_v12, %s2282_s9 }
 0x15a   : > { %v1101_v53 = vpop.permute.xlu1 %1100  ;;  %v1099_v4 = vpop.permute.xlu0 %1098 }
 0x15b   : > { %1105 = vst.msk [vmem:[#allocation2 + $0xe] sm:$0x3] %vm1020_vm0, %v1101_v53  ;;  %v2249_v31 = vpop.eup %2248 }
 0x15c   : > { %1104 = vst.msk [vmem:[#allocation2 + $0x6] sm:$0xfc] %vm1018_vm15, %v1099_v4  ;;  %1428 = vrot.lane.b32.xlu1 %v3128_v25, %s2282_s9  ;;  %1426 = vrot.lane.b32.xlu0 %v3096_v20, %s2282_s9 }
 0x15e   : > { %v1177_v3 = vpop.permute.xlu1 %1176  ;;  %v1175_v23 = vpop.permute.xlu0 %1174 }
 0x15f   : > { %1181 = vst.msk [vmem:[#allocation2 + $0x17] sm:$0x1] %vm1010_vm14, %v1177_v3  ;;  %v1610_v51 = vld [vmem:[#allocation2] sm:$0xff] }
 0x160   : > { %1180 = vst.msk [vmem:[#allocation2 + $0xf] sm:$0xfe] %vm1008_vm13, %v1175_v23  ;;  %1589 = vrot.lane.b32.xlu1 %v912_v0, %s2281_s26  ;;  %1505 = vrot.lane.b32.xlu0 %v3094_v15, %s2281_s26 }
 0x162   : > { %v1261_v37 = vpop.permute.xlu1 %1260  ;;  %v1259_v27 = vpop.permute.xlu0 %1258 }
 0x163   : > { %v1611_v52 = vld [vmem:[#allocation2 + $0x8] sm:$0xff]  ;;  %1265 = vst.msk [vmem:[#allocation2 + $0x1f] sm:$0x1] %vm1010_vm14, %v1261_v37 }
 0x164   : > { %1264 = vst.msk [vmem:[#allocation2 + $0x17] sm:$0xfe] %vm1008_vm13, %v1259_v27  ;;  %v1618_v61 = vpack.c.bf16 %v1611_v52, %v1610_v51  ;;  %1352 = vrot.lane.b32.xlu1 %v3076_v14, %s2283_s10  ;;  %1350 = vrot.lane.b32.xlu0 %v3014_v12, %s2283_s10  ;;  %v905_v14 = vmul.f32 %v2249_v31, %v3202_v28 }
 0x165   : > { %v909_v12 = vmul.f32 %v3192_v48, %v2485_v63 }
 0x166   : > { %2050 = vmatprep.mubr.msk.bf16.mxu0 %vm1661_vm1, %v1618_v61  ;;  %v1379_v62 = vpop.permute.xlu1 %1378  ;;  %v1295_v55 = vpop.permute.xlu0 %1294 }
 0x167   : > { %1381 = vst.msk [vmem:[#allocation2 + $0x28] sm:$0xff] %vm945_vm5, %v1379_v62  ;;  %1297 = vst.msk [vmem:[#allocation2 + $0x20] sm:$0xff] %vm945_vm5, %v1295_v55 }
 0x168   : > { %1436 = vrot.lane.b32.xlu1 %v3128_v25, %s2283_s10  ;;  %1434 = vrot.lane.b32.xlu0 %v3096_v20, %s2283_s10  ;;  %v913_v25 = vadd.f32 %v909_v12, %v905_v14 }
 0x16a   : > { %v1457_v60 = vpop.permute.xlu1 %1456  ;;  %v1455_v22 = vpop.permute.xlu0 %1454 }
 0x16b   : > { %1461 = vst.msk [vmem:[#allocation2 + $0x36] sm:$0x3] %vm939_vm3, %v1457_v60 }
 0x16c   : > { %1460 = vst.msk [vmem:[#allocation2 + $0x2e] sm:$0xfc] %vm937_vm4, %v1455_v22  ;;  %1512 = vrot.lane.b32.xlu1 %v3139_v19, %s2282_s9  ;;  %1510 = vrot.lane.b32.xlu0 %v3094_v15, %s2282_s9 }
 0x16e   : > { %v1541_v34 = vpop.permute.xlu1 %1540  ;;  %v1539_v20 = vpop.permute.xlu0 %1538 }
 0x16f   : > { %1545 = vst.msk [vmem:[#allocation2 + $0x3e] sm:$0x3] %vm939_vm3, %v1541_v34  ;;  %vm3433_vm3 = vcmask 392546  }
 0x170   : > { %1544 = vst.msk [vmem:[#allocation2 + $0x36] sm:$0xfc] %vm937_vm4, %v1539_v20  ;;  %1596 = vrot.lane.b32.xlu1 %v913_v25, %s2282_s9  ;;  %1594 = vrot.lane.b32.xlu0 %v912_v0, %s2282_s9  ;;  %vm3434_vm4 = vmmov %vm3432_vm2  ;;  %s3373_s9 = scalar_lea.vmem %s3427_s7, %s2033_s22 }
 0x172   : > { %v1185_v63 = vpop.permute.xlu1 %1184  ;;  %v1183_v2 = vpop.permute.xlu0 %1182 }
 0x173   : > { %1189 = vst.msk [vmem:[#allocation2 + $0x16] sm:$0x3] %vm1020_vm0, %v1185_v63 }
 0x174   : > { %1188 = vst.msk [vmem:[#allocation2 + $0xe] sm:$0xfc] %vm1018_vm15, %v1183_v2  ;;  %1520 = vrot.lane.b32.xlu1 %v3139_v19, %s2283_s10  ;;  %1518 = vrot.lane.b32.xlu0 %v3094_v15, %s2283_s10 }
 0x176   : > { %v1269_v56 = vpop.permute.xlu1 %1268  ;;  %v1267_v33 = vpop.permute.xlu0 %1266 }
 0x177   : > { %1273 = vst.msk [vmem:[#allocation2 + $0x1e] sm:$0x3] %vm1020_vm0, %v1269_v56 }
 0x178   : > { %1272 = vst.msk [vmem:[#allocation2 + $0x16] sm:$0xfc] %vm1018_vm15, %v1267_v33  ;;  %1604 = vrot.lane.b32.xlu1 %v913_v25, %s2283_s10  ;;  %1602 = vrot.lane.b32.xlu0 %v912_v0, %s2283_s10  ;;  %s1982_s10 = sshll.u32 %s3449_s27, 1 }
 0x179   : > { %s458_s15 = scalar_lea.vmem %s3428_s8, %s1982_s10 }
 0x17a   : > { %v1301_v24 = vpop.permute.xlu1 %1300  ;;  %v1299_v1 = vpop.permute.xlu0 %1298 }
 0x17b   : > { %1305 = vst.msk [vmem:[#allocation2 + $0x27] sm:$0x1] %vm956_vm6, %v1301_v24  ;;  %v1612_v32 = vld [vmem:[#allocation2 + $0x10] sm:$0xff] }
 0x17c   : > { %1304 = vst.msk [vmem:[#allocation2 + $0x1f] sm:$0xfe] %vm954_vm7, %v1299_v1 }
 0x17e   : > { %v1385_v19 = vpop.permute.xlu1 %1384  ;;  %v1383_v5 = vpop.permute.xlu0 %1382 }
 0x17f   : > { %v1613_v15 = vld [vmem:[#allocation2 + $0x18] sm:$0xff]  ;;  %1389 = vst.msk [vmem:[#allocation2 + $0x2f] sm:$0x1] %vm956_vm6, %v1385_v19 }
 0x180   : > { %1388 = vst.msk [vmem:[#allocation2 + $0x27] sm:$0xfe] %vm954_vm7, %v1383_v5  ;;  %v1619_v9 = vpack.c.bf16 %v1613_v15, %v1612_v32  ;;  %v2020_v5 = vld [vmem:[%s3426_s6] ss:$0 sm:$0xff] }
 0x182   : > { %2051 = vmatmul.mubr.msk.bf16.vlgmr.msra.gmra.mxu0 %vm1661_vm1, %v1619_v9  ;;  %v1547_v48 = vpop.permute.xlu1 %1546  ;;  %v1463_v13 = vpop.permute.xlu0 %1462 }
 0x183   : > { %1549 = vst.msk [vmem:[#allocation2 + $0x38] sm:$0xff] %vm945_vm5, %v1547_v48  ;;  %1465 = vst.msk [vmem:[#allocation2 + $0x30] sm:$0xff] %vm945_vm5, %v1463_v13 }
 0x184   : > { %vm3435_vm5 = vmmov %vm3433_vm3 }
 0x186   : > { %v1309_v18 = vpop.permute.xlu1 %1308  ;;  %v1307_v28 = vpop.permute.xlu0 %1306 }
 0x187   : > { %1313 = vst.msk [vmem:[#allocation2 + $0x26] sm:$0x3] %vm966_vm8, %v1309_v18 }
 0x188   : > { %1312 = vst.msk [vmem:[#allocation2 + $0x1e] sm:$0xfc] %vm964_vm9, %v1307_v28 }
 0x18a   : > { %v1393_v8 = vpop.permute.xlu1 %1392  ;;  %v1391_v44 = vpop.permute.xlu0 %1390 }
 0x18b   : > { %1397 = vst.msk [vmem:[#allocation2 + $0x2e] sm:$0x3] %vm966_vm8, %v1393_v8 }
 0x18c   : > { %1396 = vst.msk [vmem:[#allocation2 + $0x26] sm:$0xfc] %vm964_vm9, %v1391_v44 }
 0x18e   : > { %v1469_v50 = vpop.permute.xlu1 %1468  ;;  %v1467_v58 = vpop.permute.xlu0 %1466 }
 0x18f   : > { %1473 = vst.msk [vmem:[#allocation2 + $0x37] sm:$0x1] %vm956_vm6, %v1469_v50 }
 0x190   : > { %1472 = vst.msk [vmem:[#allocation2 + $0x2f] sm:$0xfe] %vm954_vm7, %v1467_v58 }
 0x192   : > { %v1553_v57 = vpop.permute.xlu1 %1552  ;;  %v1551_v39 = vpop.permute.xlu0 %1550 }
 0x193   : > { %1557 = vst.msk [vmem:[#allocation2 + $0x3f] sm:$0x1] %vm956_vm6, %v1553_v57  ;;  %vm3436_vm6 = vcmask 425344  }
 0x194   : > { %1556 = vst.msk [vmem:[#allocation2 + $0x37] sm:$0xfe] %vm954_vm7, %v1551_v39  ;;  %vm3437_vm7 = vmmov %vm3436_vm6 }
 0x196   : > { %v1400_v7 = vpop.permute.xlu1 %1399  ;;  %v1316_v21 = vpop.permute.xlu0 %1315 }
 0x197   : > { %1402 = vst.msk [vmem:[#allocation2 + $0x28] sm:$0xff] %vm972_vm10, %v1400_v7  ;;  %1318 = vst.msk [vmem:[#allocation2 + $0x20] sm:$0xff] %vm972_vm10, %v1316_v21 }
 0x19a   : > { %v1477_v49 = vpop.permute.xlu1 %1476  ;;  %v1475_v26 = vpop.permute.xlu0 %1474 }
 0x19b   : > { %1481 = vst.msk [vmem:[#allocation2 + $0x36] sm:$0x3] %vm966_vm8, %v1477_v49 }
 0x19c   : > { %1480 = vst.msk [vmem:[#allocation2 + $0x2e] sm:$0xfc] %vm964_vm9, %v1475_v26 }
 0x19e   : > { %v1561_v30 = vpop.permute.xlu1 %1560  ;;  %v1559_v38 = vpop.permute.xlu0 %1558 }
 0x19f   : > { %1565 = vst.msk [vmem:[#allocation2 + $0x3e] sm:$0x3] %vm966_vm8, %v1561_v30  ;;  %vm3438_vm8 = vmmov %vm3432_vm2 }
 0x1a0   : > { %1564 = vst.msk [vmem:[#allocation2 + $0x36] sm:$0xfc] %vm964_vm9, %v1559_v38  ;;  %vm3439_vm9 = vmmov %vm3433_vm3 }
 0x1a2   : > { %v1323_v59 = vpop.permute.xlu1 %1322  ;;  %v1321_v47 = vpop.permute.xlu0 %1320 }
 0x1a3   : > { %1327 = vst.msk [vmem:[#allocation2 + $0x27] sm:$0x1] %vm983_vm11, %v1323_v59 }
 0x1a4   : > { %1326 = vst.msk [vmem:[#allocation2 + $0x1f] sm:$0xfe] %vm981_vm12, %v1321_v47 }
 0x1a6   : > { %v1407_v29 = vpop.permute.xlu1 %1406  ;;  %v1405_v41 = vpop.permute.xlu0 %1404 }
 0x1a7   : > { %1411 = vst.msk [vmem:[#allocation2 + $0x2f] sm:$0x1] %vm983_vm11, %v1407_v29 }
 0x1a8   : > { %1410 = vst.msk [vmem:[#allocation2 + $0x27] sm:$0xfe] %vm981_vm12, %v1405_v41 }
 0x1aa   : > { %v1568_v46 = vpop.permute.xlu1 %1567  ;;  %v1484_v43 = vpop.permute.xlu0 %1483 }
 0x1ab   : > { %1570 = vst.msk [vmem:[#allocation2 + $0x38] sm:$0xff] %vm972_vm10, %v1568_v46  ;;  %1486 = vst.msk [vmem:[#allocation2 + $0x30] sm:$0xff] %vm972_vm10, %v1484_v43 }
 0x1ac   : > { %vm3440_vm10 = vmmov %vm3432_vm2 }
 0x1ae   : > { %v1331_v11 = vpop.permute.xlu1 %1330  ;;  %v1329_v36 = vpop.permute.xlu0 %1328 }
 0x1af   : > { %1335 = vst.msk [vmem:[#allocation2 + $0x26] sm:$0x3] %vm3432_vm2, %v1331_v11  ;;  %vm3441_vm2 = vmmov %vm3433_vm3 }
 0x1b0   : > { %1334 = vst.msk [vmem:[#allocation2 + $0x1e] sm:$0xfc] %vm3433_vm3, %v1329_v36 }
 0x1b2   : > { %v1415_v42 = vpop.permute.xlu1 %1414  ;;  %v1413_v10 = vpop.permute.xlu0 %1412 }
 0x1b3   : > { %1419 = vst.msk [vmem:[#allocation2 + $0x2e] sm:$0x3] %vm3434_vm4, %v1415_v42 }
 0x1b4   : > { %1418 = vst.msk [vmem:[#allocation2 + $0x26] sm:$0xfc] %vm3435_vm5, %v1413_v10 }
 0x1b6   : > { %v1491_v45 = vpop.permute.xlu1 %1490  ;;  %v1489_v35 = vpop.permute.xlu0 %1488 }
 0x1b7   : > { %1495 = vst.msk [vmem:[#allocation2 + $0x37] sm:$0x1] %vm983_vm11, %v1491_v45 }
 0x1b8   : > { %1494 = vst.msk [vmem:[#allocation2 + $0x2f] sm:$0xfe] %vm981_vm12, %v1489_v35 }
 0x1ba   : > { %v1575_v6 = vpop.permute.xlu1 %1574  ;;  %v1573_v40 = vpop.permute.xlu0 %1572 }
 0x1bb   : > { %1579 = vst.msk [vmem:[#allocation2 + $0x3f] sm:$0x1] %vm983_vm11, %v1575_v6  ;;  %vm3442_vm11 = vmmov %vm3436_vm6 }
 0x1bc   : > { %1578 = vst.msk [vmem:[#allocation2 + $0x37] sm:$0xfe] %vm981_vm12, %v1573_v40  ;;  %vm3443_vm12 = vmmov %vm3436_vm6 }
 0x1be   : > { %v1422_v16 = vpop.permute.xlu1 %1421  ;;  %v1338_v17 = vpop.permute.xlu0 %1337 }
 0x1bf   : > { %1424 = vst.msk [vmem:[#allocation2 + $0x28] sm:$0xff] %vm3436_vm6, %v1422_v16 }
 0x1c0   : > { %1340 = vst.msk [vmem:[#allocation2 + $0x20] sm:$0xff] %vm3437_vm7, %v1338_v17 }
 0x1c2   : > { %v1499_v54 = vpop.permute.xlu1 %1498  ;;  %v1497_v53 = vpop.permute.xlu0 %1496 }
 0x1c3   : > { %1503 = vst.msk [vmem:[#allocation2 + $0x36] sm:$0x3] %vm3438_vm8, %v1499_v54 }
 0x1c4   : > { %1502 = vst.msk [vmem:[#allocation2 + $0x2e] sm:$0xfc] %vm3439_vm9, %v1497_v53 }
 0x1c6   : > { %v1583_v4 = vpop.permute.xlu1 %1582  ;;  %v1581_v0 = vpop.permute.xlu0 %1580 }
 0x1c7   : > { %1587 = vst.msk [vmem:[#allocation2 + $0x3e] sm:$0x3] %vm3440_vm10, %v1583_v4 }
 0x1c8   : > { %1586 = vst.msk [vmem:[#allocation2 + $0x36] sm:$0xfc] %vm3441_vm2, %v1581_v0 }
 0x1ca   : > { %v1345_v3 = vpop.permute.xlu1 %1344  ;;  %v1343_v23 = vpop.permute.xlu0 %1342 }
 0x1cb   : > { %1349 = vst.msk [vmem:[#allocation2 + $0x27] sm:$0x1] %vm1010_vm14, %v1345_v3 }
 0x1cc   : > { %1348 = vst.msk [vmem:[#allocation2 + $0x1f] sm:$0xfe] %vm1008_vm13, %v1343_v23 }
 0x1ce   : > { %v1429_v37 = vpop.permute.xlu1 %1428  ;;  %v1427_v27 = vpop.permute.xlu0 %1426 }
 0x1cf   : > { %1433 = vst.msk [vmem:[#allocation2 + $0x2f] sm:$0x1] %vm1010_vm14, %v1429_v37 }
 0x1d0   : > { %1432 = vst.msk [vmem:[#allocation2 + $0x27] sm:$0xfe] %vm1008_vm13, %v1427_v27 }
 0x1d2   : > { %v1590_v51 = vpop.permute.xlu1 %1589  ;;  %v1506_v52 = vpop.permute.xlu0 %1505 }
 0x1d3   : > { %1592 = vst.msk [vmem:[#allocation2 + $0x38] sm:$0xff] %vm3442_vm11, %v1590_v51 }
 0x1d4   : > { %1508 = vst.msk [vmem:[#allocation2 + $0x30] sm:$0xff] %vm3443_vm12, %v1506_v52 }
 0x1d6   : > { %v1353_v61 = vpop.permute.xlu1 %1352  ;;  %v1351_v31 = vpop.permute.xlu0 %1350 }
 0x1d7   : > { %1357 = vst.msk [vmem:[#allocation2 + $0x26] sm:$0x3] %vm1020_vm0, %v1353_v61 }
 0x1d8   : > { %1356 = vst.msk [vmem:[#allocation2 + $0x1e] sm:$0xfc] %vm1018_vm15, %v1351_v31 }
 0x1da   : > { %v1437_v62 = vpop.permute.xlu1 %1436  ;;  %v1435_v55 = vpop.permute.xlu0 %1434 }
 0x1db   : > { %1441 = vst.msk [vmem:[#allocation2 + $0x2e] sm:$0x3] %vm1020_vm0, %v1437_v62 }
 0x1dc   : > { %1440 = vst.msk [vmem:[#allocation2 + $0x26] sm:$0xfc] %vm1018_vm15, %v1435_v55 }
 0x1de   : > { %v1513_v14 = vpop.permute.xlu1 %1512  ;;  %v1511_v12 = vpop.permute.xlu0 %1510 }
 0x1df   : > { %1517 = vst.msk [vmem:[#allocation2 + $0x37] sm:$0x1] %vm1010_vm14, %v1513_v14  ;;  %v1614_v25 = vld [vmem:[#allocation2 + $0x20] sm:$0xff] }
 0x1e0   : > { %1516 = vst.msk [vmem:[#allocation2 + $0x2f] sm:$0xfe] %vm1008_vm13, %v1511_v12 }
 0x1e2   : > { %v1597_v60 = vpop.permute.xlu1 %1596  ;;  %v1595_v22 = vpop.permute.xlu0 %1594 }
 0x1e3   : > { %v1615_v34 = vld [vmem:[#allocation2 + $0x28] sm:$0xff]  ;;  %1601 = vst.msk [vmem:[#allocation2 + $0x3f] sm:$0x1] %vm1010_vm14, %v1597_v60  ;;  %vm1808_vm14 = vcmask 1040384  }
 0x1e4   : > { %1600 = vst.msk [vmem:[#allocation2 + $0x37] sm:$0xfe] %vm1008_vm13, %v1595_v22  ;;  %v1620_v20 = vpack.c.bf16 %v1615_v34, %v1614_v25  ;;  %vm1739_vm13 = vcmask 64512  }
 0x1e6   : > { %2054 = vmatprep.mubr.msk.bf16.mxu1 %vm1661_vm1, %v1620_v20  ;;  %v1521_v63 = vpop.permute.xlu1 %1520  ;;  %v1519_v2 = vpop.permute.xlu0 %1518 }
 0x1e7   : > { %1525 = vst.msk [vmem:[#allocation2 + $0x36] sm:$0x3] %vm1020_vm0, %v1521_v63 }
 0x1e8   : > { %1524 = vst.msk [vmem:[#allocation2 + $0x2e] sm:$0xfc] %vm1018_vm15, %v1519_v2 }
 0x1ea   : > { %v1605_v56 = vpop.permute.xlu1 %1604  ;;  %v1603_v33 = vpop.permute.xlu0 %1602 }
 0x1eb   : > { %1609 = vst.msk [vmem:[#allocation2 + $0x3e] sm:$0x3] %vm1020_vm0, %v1605_v56 }
 0x1ec   : > { %1608 = vst.msk [vmem:[#allocation2 + $0x36] sm:$0xfc] %vm1018_vm15, %v1603_v33  ;;  %vm1810_vm15 = vcmask 58368  }
 0x1ef   : > { %v1616_v24 = vld [vmem:[#allocation2 + $0x30] sm:$0xff] }
 0x1f3   : > { %v1617_v1 = vld [vmem:[#allocation2 + $0x38] sm:$0xff] }
 0x1f4   : > { %v1621_v19 = vpack.c.bf16 %v1617_v1, %v1616_v24 }
 0x1f6   : > { %2055 = vmatmul.mubr.msk.bf16.vlgmr.msra.gmra.mxu1 %vm1661_vm1, %v1621_v19 }
 0x242   : > { %v2052_v32 = vpop.f32.mrf.mxu0 }
 0x243   : > { %v1717_v15 = vadd.f32 %v2052_v32, %v2020_v5 }
 0x244   : > { %v1708_v9 = vpop.f32.mrf.mxu0 }
 0x245   : > { %1742 = vst.msk [vmem:[%s3373_s9 + $0x10] sm:$0xff] %vm1739_vm13, %v1717_v15  ;;  %v1709_v48 = vadd.f32 %v2020_v5, %v1708_v9  ;;  %v1751_v39 = vsel %vm1739_vm13, %v1717_v15, 0.0 }
 0x246   : > { %v2053_v13 = vpop.f32.mrf.mxu0 }
 0x247   : > { %1740 = vst.msk [vmem:[%s3373_s9] sm:$0xff] %vm1739_vm13, %v1709_v48  ;;  %v1720_v18 = vadd.f32 %v2053_v13, %v2020_v5  ;;  %v1748_v50 = vsel %vm1739_vm13, %v1709_v48, 0.0 }
 0x248   : > { %v1711_v28 = vpop.f32.mrf.mxu0 }
 0x249   : > { %1743 = vst.msk [vmem:[%s3373_s9 + $0x18] sm:$0xff] %vm1739_vm13, %v1720_v18  ;;  %v1712_v8 = vadd.f32 %v2020_v5, %v1711_v28  ;;  %v1753_v38 = vsel %vm1739_vm13, %v1720_v18, 0.0 }
 0x24b   : > { %1741 = vst.msk [vmem:[%s3373_s9 + $0x8] sm:$0xff] %vm1739_vm13, %v1712_v8  ;;  %v1749_v44 = vsel %vm1739_vm13, %v1712_v8, 0.0 }
 0x24c   : > { %v1750_v58 = vadd.f32 %v1749_v44, %v1748_v50 }
 0x24e   : > { %v1752_v21 = vadd.f32 %v1751_v39, %v1750_v58 }
 0x250   : > { %v1754_v29 = vadd.f32 %v1753_v38, %v1752_v21 }
 0x2b6   : > { %v2056_v57 = vpop.f32.mrf.mxu1 }
 0x2b7   : > { %v1733_v7 = vadd.f32 %v2056_v57, %v2020_v5 }
 0x2b8   : > { %v1724_v49 = vpop.f32.mrf.mxu1 }
 0x2b9   : > { %1746 = vst.msk [vmem:[%s3373_s9 + $0x30] sm:$0xff] %vm1739_vm13, %v1733_v7  ;;  %v1725_v26 = vadd.f32 %v2020_v5, %v1724_v49  ;;  %v1759_v42 = vsel %vm1739_vm13, %v1733_v7, 0.0 }
 0x2ba   : > { %v2057_v30 = vpop.f32.mrf.mxu1 }
 0x2bb   : > { %1744 = vst.msk [vmem:[%s3373_s9 + $0x20] sm:$0xff] %vm1739_vm13, %v1725_v26  ;;  %v1755_v59 = vsel %vm1739_vm13, %v1725_v26, 0.0  ;;  %v1736_v47 = vadd.f32 %v2057_v30, %v2020_v5 }
 0x2bc   : > { %v1727_v41 = vpop.f32.mrf.mxu1  ;;  %v1756_v43 = vadd.f32 %v1755_v59, %v1754_v29 }
 0x2bd   : > { %1747 = vst.msk [vmem:[%s3373_s9 + $0x38] sm:$0xff] %vm1739_vm13, %v1736_v47  ;;  %v1728_v46 = vadd.f32 %v2020_v5, %v1727_v41  ;;  %v1761_v45 = vsel %vm1739_vm13, %v1736_v47, 0.0 }
 0x2bf   : > { %1745 = vst.msk [vmem:[%s3373_s9 + $0x28] sm:$0xff] %vm1739_vm13, %v1728_v46  ;;  %v1757_v11 = vsel %vm1739_vm13, %v1728_v46, 0.0 }
 0x2c0   : > { %v1758_v36 = vadd.f32 %v1757_v11, %v1756_v43 }
 0x2c2   : > { %v1760_v10 = vadd.f32 %v1759_v42, %v1758_v36 }
 0x2c4   : > { %v1762_v35 = vadd.f32 %v1761_v45, %v1760_v10 }
 0x2c6   : > { %v1763_v6 = vrot.slane %v1762_v35, 4 }
 0x2c8   : > { %v1764_v40 = vadd.f32 %v1763_v6, %v1762_v35 }
 0x2ca   : > { %v1765_v16 = vrot.slane %v1764_v40, 2 }
 0x2cc   : > { %v1766_v17 = vadd.f32 %v1765_v16, %v1764_v40 }
 0x2ce   : > { %v1767_v54 = vrot.slane %v1766_v17, 1 }
 0x2d0   : > { %v1768_v53 = vadd.f32 %v1767_v54, %v1766_v17 }
 0x2d2   : > { %v1770_v4 = vmul.f32 0.015625, %v1768_v53 }
 0x2d4   : > { %v1771_v0 = vsub.f32 %v1709_v48, %v1770_v4  ;;  %v1772_v3 = vsub.f32 %v1712_v8, %v1770_v4  ;;  %v1773_v23 = vsub.f32 %v1717_v15, %v1770_v4  ;;  %v1774_v37 = vsub.f32 %v1720_v18, %v1770_v4 }
 0x2d5   : > { %v1775_v27 = vsub.f32 %v1725_v26, %v1770_v4  ;;  %v1776_v31 = vsub.f32 %v1728_v46, %v1770_v4  ;;  %v1777_v60 = vsub.f32 %v1733_v7, %v1770_v4  ;;  %v1778_v20 = vsub.f32 %v1736_v47, %v1770_v4 }
 0x2d6   : > { %v1779_v51 = vmul.f32 %v1771_v0, %v1771_v0  ;;  %v1780_v52 = vmul.f32 %v1772_v3, %v1772_v3  ;;  %v1781_v61 = vmul.f32 %v1773_v23, %v1773_v23  ;;  %v1782_v62 = vmul.f32 %v1774_v37, %v1774_v37 }
 0x2d7   : > { %v1783_v22 = vmul.f32 %v1775_v27, %v1775_v27  ;;  %v1784_v63 = vmul.f32 %v1776_v31, %v1776_v31  ;;  %v1785_v33 = vmul.f32 %v1777_v60, %v1777_v60  ;;  %v1786_v19 = vmul.f32 %v1778_v20, %v1778_v20 }
 0x2d8   : > { %v1787_v55 = vsel %vm1739_vm13, %v1779_v51, 0.0  ;;  %v1788_v14 = vsel %vm1739_vm13, %v1780_v52, 0.0  ;;  %v1790_v25 = vsel %vm1739_vm13, %v1781_v61, 0.0  ;;  %v1792_v2 = vsel %vm1739_vm13, %v1782_v62, 0.0 }
 0x2d9   : > { %v1789_v12 = vadd.f32 %v1788_v14, %v1787_v55  ;;  %v1794_v24 = vsel %vm1739_vm13, %v1783_v22, 0.0  ;;  %v1796_v5 = vsel %vm1739_vm13, %v1784_v63, 0.0  ;;  %v1798_v15 = vsel %vm1739_vm13, %v1785_v33, 0.0 }
 0x2da   : > { %v1800_v48 = vsel %vm1739_vm13, %v1786_v19, 0.0 }
 0x2db   : > { %v1791_v34 = vadd.f32 %v1790_v25, %v1789_v12 }
 0x2dd   : > { %v1793_v56 = vadd.f32 %v1792_v2, %v1791_v34 }
 0x2df   : > { %v1795_v1 = vadd.f32 %v1794_v24, %v1793_v56 }
 0x2e1   : > { %v1797_v32 = vadd.f32 %v1796_v5, %v1795_v1 }
 0x2e3   : > { %v1799_v9 = vadd.f32 %v1798_v15, %v1797_v32 }
 0x2e5   : > { %v1801_v13 = vadd.f32 %v1800_v48, %v1799_v9 }
 0x2e7   : > { %v1802_v18 = vrot.slane %v1801_v13, 4 }
 0x2e9   : > { %v1803_v28 = vadd.f32 %v1802_v18, %v1801_v13 }
 0x2eb   : > { %v1804_v8 = vrot.slane %v1803_v28, 2 }
 0x2ed   : > { %v1805_v44 = vadd.f32 %v1804_v8, %v1803_v28 }
 0x2ef   : > { %v1806_v50 = vrot.slane %v1805_v44, 1 }
 0x2f1   : > { %v1807_v58 = vadd.f32 %v1806_v50, %v1805_v44 }
 0x2f3   : > { %v1809_v57 = vsel %vm1808_vm14, %v1770_v4, %v1807_v58 }
 0x2f4   : > { %1811 = vst.msk [vmem:[%s458_s15] sm:$0x3] %vm1810_vm15, %v1809_v57 }
 0x2f5 PF: > { %s19_s29 = sadd.s32 1, %s2273_s29   ;;  %s3444_s27 = smov %s2269_s28 }
 0x2f6   : > { %p16_p5 = scmp.ge.s32.totalorder %s19_s29, 4   ;;  %s3445_s28 = smov %s3447_s30 }
 0x2f8   :  { %18 = sbr.rel (!%p16_p5) target bundleno = 2 (0x2), region = 96 }

</bundles_post_ra>
